<compile_context>
chip_gen: v7x
topology: tpu7x:2x2x1
jax: 0.10.0
libtpu: 0.0.40
codegen_flags: <defaults>
</compile_context>

<pallas_src>
import jax
import jax.numpy as jnp
from jax.experimental import pallas as pl
from jax.experimental.pallas import tpu as pltpu


def mha_kernel(q_ref, k_ref, v_ref, e_ref, bias_ref,
               wq_ref, bq_ref, wk_ref, bk_ref, wv_ref, bv_ref,
               we_ref, be_ref, wo_ref, bo_ref, weo_ref, beo_ref,
               seg_ref, segt_ref,
               x_ref, w_ref):
    f32 = jnp.float32
    TI = q_ref.shape[1]          # query rows in this tile
    N = k_ref.shape[1]           # full sequence length
    hidden = q_ref.shape[2]
    Hd = wq_ref.shape[1]         # num_heads * att_size (== hidden)
    H = seg_ref.shape[1]
    d = Hd // H
    scale = float(d) ** -0.5

    # ---- q / k / v projections (small, MXU) -------------------------------
    qp = (jnp.dot(q_ref[0], wq_ref[...], preferred_element_type=f32)
          + bq_ref[...]) * scale                                     # [TI, Hd]
    kp = jnp.dot(k_ref[0], wk_ref[...], preferred_element_type=f32) + bk_ref[...]   # [N, Hd]
    vp = jnp.dot(v_ref[0], wv_ref[...], preferred_element_type=f32) + bv_ref[...]   # [N, Hd]

    # ---- edge projection: the dominant matmul, one call per tile ----------
    ep = jnp.dot(e_ref[0].reshape(TI * N, hidden), we_ref[...],
                 preferred_element_type=f32) + be_ref[...]           # [TI*N, Hd]
    ep = ep.reshape(TI, N, Hd)

    # qk_e[i, j, h*d + dd] = q[i,h,dd] * k[j,h,dd] * e[i,j,h,dd]
    # (lane index encodes the flattened (h, d) channel, matching the PyTorch
    #  '(h k)' flattening of linear_e / linear_q outputs).
    qk_e = qp[:, None, :] * kp[None, :, :] * ep                      # [TI, N, Hd]
    qk_flat = qk_e.reshape(TI * N, Hd)

    # ---- edge output: e_output_layer over (h d) lanes, one big matmul -----
    w_out = jnp.dot(qk_flat, weo_ref[...],
                    preferred_element_type=f32) + beo_ref[...]       # [TI*N, hidden]
    w_ref[0] = w_out.reshape(TI, N, hidden).astype(w_ref.dtype)

    # ---- attention logits: per-head sum over d via 0/1 segment matmul -----
    logits = jnp.dot(qk_flat, seg_ref[...],
                     preferred_element_type=f32).reshape(TI, N, H)
    logits = logits + bias_ref[0]                                    # [TI, N, H]

    # softmax over j (axis=1, sublane reduction)
    m = jnp.max(logits, axis=1, keepdims=True)
    p = jnp.exp(logits - m)
    p = p * pl.reciprocal(jnp.sum(p, axis=1, keepdims=True), approx=False)   # [TI, N, H]

    # broadcast head-probabilities back to the (h d) lanes and apply to v
    p_exp = jnp.dot(p.reshape(TI * N, H), segt_ref[...],
                    preferred_element_type=f32).reshape(TI, N, Hd)
    x_attn = jnp.sum(p_exp * vp[None, :, :], axis=1)                 # [TI, Hd]

    # ---- node output projection -------------------------------------------
    x_out = jnp.dot(x_attn, wo_ref[...], preferred_element_type=f32) + bo_ref[...]
    x_ref[0] = x_out.astype(x_ref.dtype)


def _pick_row_tile(N, row_bytes, target_bytes=2 << 20):
    """Largest divisor of N whose [TI, N, hidden] e-block stays under target."""
    cap = max(1, target_bytes // max(1, row_bytes))
    best = 1
    for ti in range(1, N + 1):
        if N % ti == 0 and ti <= cap:
            best = ti
    return best


def mha_forward(q, k, v, e, attn_bias, params, num_heads, tile_i=None):
    (wq, bq, wk, bk, wv, bv, we, be, wo, bo, weo, beo) = params
    B, N, hidden = q.shape
    H = num_heads
    Hd = wq.shape[0]            # nn.Linear weight is [out, in]
    d = Hd // H

    if tile_i is None:
        TI = _pick_row_tile(N, N * hidden * e.dtype.itemsize)
    else:
        TI = tile_i
    assert N % TI == 0, "N must be divisible by the row tile"

    if attn_bias is None:
        attn_bias = jnp.zeros((B, H, N, N), dtype=jnp.float32)
    # channels-last bias so the kernel adds it without an in-kernel transpose
    # (small tensor; the dominant tensor e stays in its native layout).
    bias_t = jnp.transpose(attn_bias, (0, 2, 3, 1)).astype(jnp.float32)   # [B, N, N, H]

    # weights to [in, out]; biases as 2-D rows
    wq_t, wk_t, wv_t, we_t = wq.T, wk.T, wv.T, we.T
    wo_t, weo_t = wo.T, weo.T
    bq_r, bk_r, bv_r, be_r = (b.reshape(1, -1) for b in (bq, bk, bv, be))
    bo_r, beo_r = bo.reshape(1, -1), beo.reshape(1, -1)

    # 0/1 segment matrix mapping lanes (h*d+dd) <-> heads h
    seg = jnp.repeat(jnp.eye(H, dtype=jnp.float32), d, axis=0)   # [Hd, H]
    seg_t = seg.T                                                # [H, Hd]

    row_tile = lambda b, it: (b, it, 0)
    row_full = lambda b, it: (b, 0, 0)
    sq_tile = lambda b, it: (b, it, 0, 0)
    const2 = lambda b, it: (0, 0)

    return pl.pallas_call(
        mha_kernel,
        out_shape=(jax.ShapeDtypeStruct((B, N, hidden), q.dtype),
                   jax.ShapeDtypeStruct((B, N, N, hidden), e.dtype)),
        grid_spec=pltpu.PrefetchScalarGridSpec(
            num_scalar_prefetch=0,
            grid=(B, N // TI),
            in_specs=[
                pl.BlockSpec((1, TI, hidden), row_tile),     # q
                pl.BlockSpec((1, N, hidden), row_full),      # k
                pl.BlockSpec((1, N, hidden), row_full),      # v
                pl.BlockSpec((1, TI, N, hidden), sq_tile),   # e (native layout)
                pl.BlockSpec((1, TI, N, H), sq_tile),        # attn_bias (channels-last)
                pl.BlockSpec((hidden, Hd), const2),          # Wq^T
                pl.BlockSpec((1, Hd), const2),               # bq
                pl.BlockSpec((hidden, Hd), const2),          # Wk^T
                pl.BlockSpec((1, Hd), const2),               # bk
                pl.BlockSpec((hidden, Hd), const2),          # Wv^T
                pl.BlockSpec((1, Hd), const2),               # bv
                pl.BlockSpec((hidden, Hd), const2),          # We^T
                pl.BlockSpec((1, Hd), const2),               # be
                pl.BlockSpec((Hd, hidden), const2),          # Wo^T
                pl.BlockSpec((1, hidden), const2),           # bo
                pl.BlockSpec((Hd, hidden), const2),          # Weo^T
                pl.BlockSpec((1, hidden), const2),           # beo
                pl.BlockSpec((Hd, H), const2),               # seg
                pl.BlockSpec((H, Hd), const2),               # seg^T
            ],
            out_specs=(
                pl.BlockSpec((1, TI, hidden), row_tile),     # x
                pl.BlockSpec((1, TI, N, hidden), sq_tile),   # w (edge output)
            ),
        ),
        compiler_params=pltpu.CompilerParams(
            dimension_semantics=("parallel", "parallel")),
    )(q, k, v, e, bias_t,
      wq_t, bq_r, wk_t, bk_r, wv_t, bv_r,
      we_t, be_r, wo_t, bo_r, weo_t, beo_r,
      seg, seg_t)


def mha_ref(q, k, v, e, attn_bias, params, num_heads):
    """Pure-JAX reference mirroring the PyTorch forward (eval-mode dropout)."""
    (wq, bq, wk, bk, wv, bv, we, be, wo, bo, weo, beo) = params
    B, N, hidden = q.shape
    H = num_heads
    d = wq.shape[0] // H
    scale = float(d) ** -0.5
    pr = jax.lax.Precision.HIGHEST

    qp = (jnp.dot(q, wq.T, precision=pr) + bq).reshape(B, N, H, d).transpose(0, 2, 1, 3) * scale
    kp = (jnp.dot(k, wk.T, precision=pr) + bk).reshape(B, N, H, d).transpose(0, 2, 1, 3)
    vp = (jnp.dot(v, wv.T, precision=pr) + bv).reshape(B, N, H, d).transpose(0, 2, 1, 3)
    ep = (jnp.dot(e, we.T, precision=pr) + be).reshape(B, N, N, H, d).transpose(0, 3, 1, 2, 4)

    qk_e = qp[:, :, :, None, :] * kp[:, :, None, :, :] * ep          # [B,H,N,N,d]
    w = qk_e.sum(-1)
    if attn_bias is not None:
        w = w + attn_bias
    p = jax.nn.softmax(w, axis=3)
    x = jnp.einsum('bhij,bhjd->bhid', p, vp, precision=pr)
    x = x.transpose(0, 2, 1, 3).reshape(B, N, H * d)
    x = jnp.dot(x, wo.T, precision=pr) + bo

    wq_flat = qk_e.transpose(0, 2, 3, 1, 4).reshape(B, N, N, H * d)
    w_out = jnp.dot(wq_flat, weo.T, precision=pr) + beo
    return x, w_out


if __name__ == "__main__":
    B, N, hidden, H = 2, 16, 128, 8          # batch, seq, hidden_size, num_heads
    d = hidden // H

    key = jax.random.PRNGKey(0)
    ks = jax.random.split(key, 17)

    q = jax.random.normal(ks[0], (B, N, hidden), dtype=jnp.float32)
    k = jax.random.normal(ks[1], (B, N, hidden), dtype=jnp.float32)
    v = jax.random.normal(ks[2], (B, N, hidden), dtype=jnp.float32)
    e = jax.random.normal(ks[3], (B, N, N, hidden), dtype=jnp.float32)
    attn_bias = jax.random.normal(ks[4], (B, H, N, N), dtype=jnp.float32)

    # nn.Linear params ([out, in] weight + [out] bias). Random (non-zero) values
    # so the forward math is fully exercised.
    def lin(kw, kb, out_dim, in_dim):
        w = jax.random.normal(kw, (out_dim, in_dim), dtype=jnp.float32) * 0.1
        b = jax.random.normal(kb, (out_dim,), dtype=jnp.float32) * 0.1
        return w, b

    wq, bq = lin(ks[5], ks[6], hidden, hidden)     # linear_q
    wk, bk = lin(ks[7], ks[8], hidden, hidden)     # linear_k
    wv, bv = lin(ks[9], ks[10], hidden, hidden)    # linear_v
    we, be = lin(ks[11], ks[12], hidden, hidden)   # linear_e
    wo, bo = lin(ks[13], ks[14], hidden, hidden)   # output_layer
    weo, beo = lin(ks[15], ks[16], hidden, hidden) # e_output_layer
    params = (wq, bq, wk, bk, wv, bv, we, be, wo, bo, weo, beo)

    # Default (adaptive) row tile -- whole-N tile at this size.
    x_out, w_out = mha_forward(q, k, v, e, attn_bias, params, num_heads=H)
    (x_out, w_out) = jax.block_until_ready((x_out, w_out))

    x_ref, w_ref = mha_ref(q, k, v, e, attn_bias, params, num_heads=H)

    assert x_out.shape == (B, N, hidden)
    assert w_out.shape == (B, N, N, hidden)
    if not jnp.allclose(x_out, x_ref, rtol=1e-2, atol=1e-2):
        raise AssertionError("Pallas kernel x output mismatch vs JAX reference")
    if not jnp.allclose(w_out, w_ref, rtol=1e-2, atol=1e-2):
        raise AssertionError("Pallas kernel w output mismatch vs JAX reference")

    # Also exercise the tiled-query path (grid = (B, 2)).
    x_t, w_t = mha_forward(q, k, v, e, attn_bias, params, num_heads=H, tile_i=8)
    (x_t, w_t) = jax.block_until_ready((x_t, w_t))
    if not jnp.allclose(x_t, x_ref, rtol=1e-2, atol=1e-2):
        raise AssertionError("Pallas kernel (tiled) x output mismatch vs JAX reference")
    if not jnp.allclose(w_t, w_ref, rtol=1e-2, atol=1e-2):
        raise AssertionError("Pallas kernel (tiled) w output mismatch vs JAX reference")

    print("KERNEL_OK")
</pallas_src>

<mosaic_0001>
module attributes {stable_mosaic.version = 11 : i64} {
  func.func @mha_kernel(%arg0: i32, %arg1: i32, %arg2: memref<1x16x128xf32, #tpu.memory_space<vmem>>, %arg3: memref<1x16x128xf32, #tpu.memory_space<vmem>>, %arg4: memref<1x16x128xf32, #tpu.memory_space<vmem>>, %arg5: memref<1x16x16x128xf32, #tpu.memory_space<vmem>>, %arg6: memref<1x16x16x8xf32, #tpu.memory_space<vmem>>, %arg7: memref<128x128xf32, #tpu.memory_space<vmem>>, %arg8: memref<1x128xf32, #tpu.memory_space<vmem>>, %arg9: memref<128x128xf32, #tpu.memory_space<vmem>>, %arg10: memref<1x128xf32, #tpu.memory_space<vmem>>, %arg11: memref<128x128xf32, #tpu.memory_space<vmem>>, %arg12: memref<1x128xf32, #tpu.memory_space<vmem>>, %arg13: memref<128x128xf32, #tpu.memory_space<vmem>>, %arg14: memref<1x128xf32, #tpu.memory_space<vmem>>, %arg15: memref<128x128xf32, #tpu.memory_space<vmem>>, %arg16: memref<1x128xf32, #tpu.memory_space<vmem>>, %arg17: memref<128x128xf32, #tpu.memory_space<vmem>>, %arg18: memref<1x128xf32, #tpu.memory_space<vmem>>, %arg19: memref<128x8xf32, #tpu.memory_space<vmem>>, %arg20: memref<8x128xf32, #tpu.memory_space<vmem>>, %arg21: memref<1x16x128xf32, #tpu.memory_space<vmem>>, %arg22: memref<1x16x16x128xf32, #tpu.memory_space<vmem>>) attributes {dimension_semantics = [#tpu.dimension_semantics<parallel>, #tpu.dimension_semantics<parallel>], iteration_bounds = array<i64: 2, 1>, scalar_prefetch = 0 : i64, scratch_operands = 0 : i64, tpu.core_type = #tpu.core_type<tc>, window_params = [{transform_indices = @transform_0, window_bounds = array<i64: 1, 16, 128>}, {transform_indices = @transform_1, window_bounds = array<i64: 1, 16, 128>}, {transform_indices = @transform_2, window_bounds = array<i64: 1, 16, 128>}, {transform_indices = @transform_3, window_bounds = array<i64: 1, 16, 16, 128>}, {transform_indices = @transform_4, window_bounds = array<i64: 1, 16, 16, 8>}, {pipeline_mode = #tpu.pipeline_mode<synchronous>, transform_indices = @transform_5, window_bounds = array<i64: 128, 128>}, {pipeline_mode = #tpu.pipeline_mode<synchronous>, transform_indices = @transform_6, window_bounds = array<i64: 1, 128>}, {pipeline_mode = #tpu.pipeline_mode<synchronous>, transform_indices = @transform_7, window_bounds = array<i64: 128, 128>}, {pipeline_mode = #tpu.pipeline_mode<synchronous>, transform_indices = @transform_8, window_bounds = array<i64: 1, 128>}, {pipeline_mode = #tpu.pipeline_mode<synchronous>, transform_indices = @transform_9, window_bounds = array<i64: 128, 128>}, {pipeline_mode = #tpu.pipeline_mode<synchronous>, transform_indices = @transform_10, window_bounds = array<i64: 1, 128>}, {pipeline_mode = #tpu.pipeline_mode<synchronous>, transform_indices = @transform_11, window_bounds = array<i64: 128, 128>}, {pipeline_mode = #tpu.pipeline_mode<synchronous>, transform_indices = @transform_12, window_bounds = array<i64: 1, 128>}, {pipeline_mode = #tpu.pipeline_mode<synchronous>, transform_indices = @transform_13, window_bounds = array<i64: 128, 128>}, {pipeline_mode = #tpu.pipeline_mode<synchronous>, transform_indices = @transform_14, window_bounds = array<i64: 1, 128>}, {pipeline_mode = #tpu.pipeline_mode<synchronous>, transform_indices = @transform_15, window_bounds = array<i64: 128, 128>}, {pipeline_mode = #tpu.pipeline_mode<synchronous>, transform_indices = @transform_16, window_bounds = array<i64: 1, 128>}, {pipeline_mode = #tpu.pipeline_mode<synchronous>, transform_indices = @transform_17, window_bounds = array<i64: 128, 8>}, {pipeline_mode = #tpu.pipeline_mode<synchronous>, transform_indices = @transform_18, window_bounds = array<i64: 8, 128>}, {transform_indices = @transform_19, window_bounds = array<i64: 1, 16, 128>}, {transform_indices = @transform_20, window_bounds = array<i64: 1, 16, 16, 128>}]} {
    %c0 = arith.constant 0 : index
    %c0_0 = arith.constant 0 : index
    %c0_1 = arith.constant 0 : index
    %0 = vector.load %arg2[%c0, %c0_0, %c0_1] : memref<1x16x128xf32, #tpu.memory_space<vmem>>, vector<1x16x128xf32>
    %1 = vector.shape_cast %0 : vector<1x16x128xf32> to vector<16x128xf32>
    %c0_2 = arith.constant 0 : index
    %c0_3 = arith.constant 0 : index
    %2 = vector.load %arg7[%c0_2, %c0_3] : memref<128x128xf32, #tpu.memory_space<vmem>>, vector<128x128xf32>
    %cst = arith.constant dense<0.000000e+00> : vector<16x128xf32>
    %3 = tpu.matmul %1, %2, %cst {dimension_numbers = #tpu.dot_dimension_numbers<[1], [0], [0], [1], [0, 0, 1, 1], [], []>} : vector<16x128xf32>, vector<128x128xf32>, vector<16x128xf32> -> vector<16x128xf32>
    %c0_4 = arith.constant 0 : index
    %c0_5 = arith.constant 0 : index
    %4 = vector.load %arg8[%c0_4, %c0_5] : memref<1x128xf32, #tpu.memory_space<vmem>>, vector<1x128xf32>
    %5 = vector.broadcast %4 : vector<1x128xf32> to vector<16x128xf32>
    %6 = arith.addf %3, %5 : vector<16x128xf32>
    %cst_6 = arith.constant 2.500000e-01 : f32
    %7 = vector.broadcast %cst_6 : f32 to vector<16x128xf32>
    %8 = arith.mulf %6, %7 : vector<16x128xf32>
    %c0_7 = arith.constant 0 : index
    %c0_8 = arith.constant 0 : index
    %c0_9 = arith.constant 0 : index
    %9 = vector.load %arg3[%c0_7, %c0_8, %c0_9] : memref<1x16x128xf32, #tpu.memory_space<vmem>>, vector<1x16x128xf32>
    %10 = vector.shape_cast %9 : vector<1x16x128xf32> to vector<16x128xf32>
    %c0_10 = arith.constant 0 : index
    %c0_11 = arith.constant 0 : index
    %11 = vector.load %arg9[%c0_10, %c0_11] : memref<128x128xf32, #tpu.memory_space<vmem>>, vector<128x128xf32>
    %cst_12 = arith.constant dense<0.000000e+00> : vector<16x128xf32>
    %12 = tpu.matmul %10, %11, %cst_12 {dimension_numbers = #tpu.dot_dimension_numbers<[1], [0], [0], [1], [0, 0, 1, 1], [], []>} : vector<16x128xf32>, vector<128x128xf32>, vector<16x128xf32> -> vector<16x128xf32>
    %c0_13 = arith.constant 0 : index
    %c0_14 = arith.constant 0 : index
    %13 = vector.load %arg10[%c0_13, %c0_14] : memref<1x128xf32, #tpu.memory_space<vmem>>, vector<1x128xf32>
    %14 = vector.broadcast %13 : vector<1x128xf32> to vector<16x128xf32>
    %15 = arith.addf %12, %14 : vector<16x128xf32>
    %c0_15 = arith.constant 0 : index
    %c0_16 = arith.constant 0 : index
    %c0_17 = arith.constant 0 : index
    %16 = vector.load %arg4[%c0_15, %c0_16, %c0_17] : memref<1x16x128xf32, #tpu.memory_space<vmem>>, vector<1x16x128xf32>
    %17 = vector.shape_cast %16 : vector<1x16x128xf32> to vector<16x128xf32>
    %c0_18 = arith.constant 0 : index
    %c0_19 = arith.constant 0 : index
    %18 = vector.load %arg11[%c0_18, %c0_19] : memref<128x128xf32, #tpu.memory_space<vmem>>, vector<128x128xf32>
    %cst_20 = arith.constant dense<0.000000e+00> : vector<16x128xf32>
    %19 = tpu.matmul %17, %18, %cst_20 {dimension_numbers = #tpu.dot_dimension_numbers<[1], [0], [0], [1], [0, 0, 1, 1], [], []>} : vector<16x128xf32>, vector<128x128xf32>, vector<16x128xf32> -> vector<16x128xf32>
    %c0_21 = arith.constant 0 : index
    %c0_22 = arith.constant 0 : index
    %20 = vector.load %arg12[%c0_21, %c0_22] : memref<1x128xf32, #tpu.memory_space<vmem>>, vector<1x128xf32>
    %21 = vector.broadcast %20 : vector<1x128xf32> to vector<16x128xf32>
    %22 = arith.addf %19, %21 : vector<16x128xf32>
    %c0_23 = arith.constant 0 : index
    %c0_24 = arith.constant 0 : index
    %c0_25 = arith.constant 0 : index
    %c0_26 = arith.constant 0 : index
    %23 = vector.load %arg5[%c0_23, %c0_24, %c0_25, %c0_26] : memref<1x16x16x128xf32, #tpu.memory_space<vmem>>, vector<1x16x16x128xf32>
    %24 = vector.shape_cast %23 : vector<1x16x16x128xf32> to vector<16x16x128xf32>
    %25 = vector.shape_cast %24 : vector<16x16x128xf32> to vector<256x128xf32>
    %c0_27 = arith.constant 0 : index
    %c0_28 = arith.constant 0 : index
    %26 = vector.load %arg13[%c0_27, %c0_28] : memref<128x128xf32, #tpu.memory_space<vmem>>, vector<128x128xf32>
    %cst_29 = arith.constant dense<0.000000e+00> : vector<256x128xf32>
    %27 = tpu.matmul %25, %26, %cst_29 {dimension_numbers = #tpu.dot_dimension_numbers<[1], [0], [0], [1], [0, 0, 1, 1], [], []>} : vector<256x128xf32>, vector<128x128xf32>, vector<256x128xf32> -> vector<256x128xf32>
    %c0_30 = arith.constant 0 : index
    %c0_31 = arith.constant 0 : index
    %28 = vector.load %arg14[%c0_30, %c0_31] : memref<1x128xf32, #tpu.memory_space<vmem>>, vector<1x128xf32>
    %29 = vector.broadcast %28 : vector<1x128xf32> to vector<256x128xf32>
    %30 = arith.addf %27, %29 : vector<256x128xf32>
    %31 = vector.shape_cast %30 : vector<256x128xf32> to vector<16x16x128xf32>
    %32 = vector.shape_cast %8 : vector<16x128xf32> to vector<16x1x128xf32>
    %33 = vector.shape_cast %15 : vector<16x128xf32> to vector<1x16x128xf32>
    %34 = vector.broadcast %32 : vector<16x1x128xf32> to vector<16x16x128xf32>
    %35 = vector.broadcast %33 : vector<1x16x128xf32> to vector<16x16x128xf32>
    %36 = arith.mulf %34, %35 : vector<16x16x128xf32>
    %37 = arith.mulf %36, %31 : vector<16x16x128xf32>
    %38 = vector.shape_cast %37 : vector<16x16x128xf32> to vector<256x128xf32>
    %c0_32 = arith.constant 0 : index
    %c0_33 = arith.constant 0 : index
    %39 = vector.load %arg17[%c0_32, %c0_33] : memref<128x128xf32, #tpu.memory_space<vmem>>, vector<128x128xf32>
    %cst_34 = arith.constant dense<0.000000e+00> : vector<256x128xf32>
    %40 = tpu.matmul %38, %39, %cst_34 {dimension_numbers = #tpu.dot_dimension_numbers<[1], [0], [0], [1], [0, 0, 1, 1], [], []>} : vector<256x128xf32>, vector<128x128xf32>, vector<256x128xf32> -> vector<256x128xf32>
    %c0_35 = arith.constant 0 : index
    %c0_36 = arith.constant 0 : index
    %41 = vector.load %arg18[%c0_35, %c0_36] : memref<1x128xf32, #tpu.memory_space<vmem>>, vector<1x128xf32>
    %42 = vector.broadcast %41 : vector<1x128xf32> to vector<256x128xf32>
    %43 = arith.addf %40, %42 : vector<256x128xf32>
    %44 = vector.shape_cast %43 : vector<256x128xf32> to vector<16x16x128xf32>
    %c0_37 = arith.constant 0 : index
    %c0_38 = arith.constant 0 : index
    %c0_39 = arith.constant 0 : index
    %c0_40 = arith.constant 0 : index
    %45 = vector.load %arg22[%c0_37, %c0_38, %c0_39, %c0_40] : memref<1x16x16x128xf32, #tpu.memory_space<vmem>>, vector<1x16x16x128xf32>
    %46 = vector.shape_cast %45 : vector<1x16x16x128xf32> to vector<16x16x128xf32>
    %47 = vector.shape_cast %44 : vector<16x16x128xf32> to vector<1x16x16x128xf32>
    tpu.vector_store %arg22[%c0_37, %c0_38, %c0_39, %c0_40], %47 {strides = array<i32>} : memref<1x16x16x128xf32, #tpu.memory_space<vmem>>, vector<1x16x16x128xf32>,
    %c0_41 = arith.constant 0 : index
    %c0_42 = arith.constant 0 : index
    %48 = vector.load %arg19[%c0_41, %c0_42] : memref<128x8xf32, #tpu.memory_space<vmem>>, vector<128x8xf32>
    %cst_43 = arith.constant dense<0.000000e+00> : vector<256x8xf32>
    %49 = tpu.matmul %38, %48, %cst_43 {dimension_numbers = #tpu.dot_dimension_numbers<[1], [0], [0], [1], [0, 0, 1, 1], [], []>} : vector<256x128xf32>, vector<128x8xf32>, vector<256x8xf32> -> vector<256x8xf32>
    %50 = vector.shape_cast %49 : vector<256x8xf32> to vector<16x16x8xf32>
    %c0_44 = arith.constant 0 : index
    %c0_45 = arith.constant 0 : index
    %c0_46 = arith.constant 0 : index
    %c0_47 = arith.constant 0 : index
    %51 = vector.load %arg6[%c0_44, %c0_45, %c0_46, %c0_47] : memref<1x16x16x8xf32, #tpu.memory_space<vmem>>, vector<1x16x16x8xf32>
    %52 = vector.shape_cast %51 : vector<1x16x16x8xf32> to vector<16x16x8xf32>
    %53 = arith.addf %50, %52 : vector<16x16x8xf32>
    %cst_48 = arith.constant dense<0xFF800000> : vector<16x8xf32>
    %54 = vector.multi_reduction <maximumf>, %53, %cst_48 [1] : vector<16x16x8xf32> to vector<16x8xf32>
    %55 = vector.shape_cast %54 : vector<16x8xf32> to vector<16x1x8xf32>
    %56 = vector.broadcast %55 : vector<16x1x8xf32> to vector<16x16x8xf32>
    %57 = arith.subf %53, %56 : vector<16x16x8xf32>
    %58 = math.exp %57 : vector<16x16x8xf32>
    %cst_49 = arith.constant dense<0.000000e+00> : vector<16x8xf32>
    %59 = vector.multi_reduction <add>, %58, %cst_49 [1] : vector<16x16x8xf32> to vector<16x8xf32>
    %60 = vector.shape_cast %59 : vector<16x8xf32> to vector<16x1x8xf32>
    %61 = tpu.reciprocal %60 : vector<16x1x8xf32> -> vector<16x1x8xf32>
    %62 = vector.broadcast %61 : vector<16x1x8xf32> to vector<16x16x8xf32>
    %63 = arith.mulf %58, %62 : vector<16x16x8xf32>
    %64 = vector.shape_cast %63 : vector<16x16x8xf32> to vector<256x8xf32>
    %c0_50 = arith.constant 0 : index
    %c0_51 = arith.constant 0 : index
    %65 = vector.load %arg20[%c0_50, %c0_51] : memref<8x128xf32, #tpu.memory_space<vmem>>, vector<8x128xf32>
    %cst_52 = arith.constant dense<0.000000e+00> : vector<256x128xf32>
    %66 = tpu.matmul %64, %65, %cst_52 {dimension_numbers = #tpu.dot_dimension_numbers<[1], [0], [0], [1], [0, 0, 1, 1], [], []>} : vector<256x8xf32>, vector<8x128xf32>, vector<256x128xf32> -> vector<256x128xf32>
    %67 = vector.shape_cast %66 : vector<256x128xf32> to vector<16x16x128xf32>
    %68 = vector.shape_cast %22 : vector<16x128xf32> to vector<1x16x128xf32>
    %69 = vector.broadcast %68 : vector<1x16x128xf32> to vector<16x16x128xf32>
    %70 = arith.mulf %67, %69 : vector<16x16x128xf32>
    %cst_53 = arith.constant dense<0.000000e+00> : vector<16x128xf32>
    %71 = vector.multi_reduction <add>, %70, %cst_53 [1] : vector<16x16x128xf32> to vector<16x128xf32>
    %c0_54 = arith.constant 0 : index
    %c0_55 = arith.constant 0 : index
    %72 = vector.load %arg15[%c0_54, %c0_55] : memref<128x128xf32, #tpu.memory_space<vmem>>, vector<128x128xf32>
    %cst_56 = arith.constant dense<0.000000e+00> : vector<16x128xf32>
    %73 = tpu.matmul %71, %72, %cst_56 {dimension_numbers = #tpu.dot_dimension_numbers<[1], [0], [0], [1], [0, 0, 1, 1], [], []>} : vector<16x128xf32>, vector<128x128xf32>, vector<16x128xf32> -> vector<16x128xf32>
    %c0_57 = arith.constant 0 : index
    %c0_58 = arith.constant 0 : index
    %74 = vector.load %arg16[%c0_57, %c0_58] : memref<1x128xf32, #tpu.memory_space<vmem>>, vector<1x128xf32>
    %75 = vector.broadcast %74 : vector<1x128xf32> to vector<16x128xf32>
    %76 = arith.addf %73, %75 : vector<16x128xf32>
    %c0_59 = arith.constant 0 : index
    %c0_60 = arith.constant 0 : index
    %c0_61 = arith.constant 0 : index
    %77 = vector.load %arg21[%c0_59, %c0_60, %c0_61] : memref<1x16x128xf32, #tpu.memory_space<vmem>>, vector<1x16x128xf32>
    %78 = vector.shape_cast %77 : vector<1x16x128xf32> to vector<16x128xf32>
    %79 = vector.shape_cast %76 : vector<16x128xf32> to vector<1x16x128xf32>
    tpu.vector_store %arg21[%c0_59, %c0_60, %c0_61], %79 {strides = array<i32>} : memref<1x16x128xf32, #tpu.memory_space<vmem>>, vector<1x16x128xf32>,
    return
  }
  func.func @transform_0(%arg0: i32, %arg1: i32) -> (i32, i32, i32) {
    %c0_i32 = arith.constant 0 : i32
    %c0_i32_0 = arith.constant 0 : i32
    return %arg0, %arg1, %c0_i32 : i32, i32, i32
  }
  func.func @transform_1(%arg0: i32, %arg1: i32) -> (i32, i32, i32) {
    %c0_i32 = arith.constant 0 : i32
    %c0_i32_0 = arith.constant 0 : i32
    %c0_i32_1 = arith.constant 0 : i32
    return %arg0, %c0_i32, %c0_i32_0 : i32, i32, i32
  }
  func.func @transform_2(%arg0: i32, %arg1: i32) -> (i32, i32, i32) {
    %c0_i32 = arith.constant 0 : i32
    %c0_i32_0 = arith.constant 0 : i32
    %c0_i32_1 = arith.constant 0 : i32
    return %arg0, %c0_i32, %c0_i32_0 : i32, i32, i32
  }
  func.func @transform_3(%arg0: i32, %arg1: i32) -> (i32, i32, i32, i32) {
    %c0_i32 = arith.constant 0 : i32
    %c0_i32_0 = arith.constant 0 : i32
    %c0_i32_1 = arith.constant 0 : i32
    return %arg0, %arg1, %c0_i32, %c0_i32_0 : i32, i32, i32, i32
  }
  func.func @transform_4(%arg0: i32, %arg1: i32) -> (i32, i32, i32, i32) {
    %c0_i32 = arith.constant 0 : i32
    %c0_i32_0 = arith.constant 0 : i32
    %c0_i32_1 = arith.constant 0 : i32
    return %arg0, %arg1, %c0_i32, %c0_i32_0 : i32, i32, i32, i32
  }
  func.func @transform_5(%arg0: i32, %arg1: i32) -> (i32, i32) {
    %c0_i32 = arith.constant 0 : i32
    %c0_i32_0 = arith.constant 0 : i32
    %c0_i32_1 = arith.constant 0 : i32
    return %c0_i32, %c0_i32_0 : i32, i32
  }
  func.func @transform_6(%arg0: i32, %arg1: i32) -> (i32, i32) {
    %c0_i32 = arith.constant 0 : i32
    %c0_i32_0 = arith.constant 0 : i32
    %c0_i32_1 = arith.constant 0 : i32
    return %c0_i32, %c0_i32_0 : i32, i32
  }
  func.func @transform_7(%arg0: i32, %arg1: i32) -> (i32, i32) {
    %c0_i32 = arith.constant 0 : i32
    %c0_i32_0 = arith.constant 0 : i32
    %c0_i32_1 = arith.constant 0 : i32
    return %c0_i32, %c0_i32_0 : i32, i32
  }
  func.func @transform_8(%arg0: i32, %arg1: i32) -> (i32, i32) {
    %c0_i32 = arith.constant 0 : i32
    %c0_i32_0 = arith.constant 0 : i32
    %c0_i32_1 = arith.constant 0 : i32
    return %c0_i32, %c0_i32_0 : i32, i32
  }
  func.func @transform_9(%arg0: i32, %arg1: i32) -> (i32, i32) {
    %c0_i32 = arith.constant 0 : i32
    %c0_i32_0 = arith.constant 0 : i32
    %c0_i32_1 = arith.constant 0 : i32
    return %c0_i32, %c0_i32_0 : i32, i32
  }
  func.func @transform_10(%arg0: i32, %arg1: i32) -> (i32, i32) {
    %c0_i32 = arith.constant 0 : i32
    %c0_i32_0 = arith.constant 0 : i32
    %c0_i32_1 = arith.constant 0 : i32
    return %c0_i32, %c0_i32_0 : i32, i32
  }
  func.func @transform_11(%arg0: i32, %arg1: i32) -> (i32, i32) {
    %c0_i32 = arith.constant 0 : i32
    %c0_i32_0 = arith.constant 0 : i32
    %c0_i32_1 = arith.constant 0 : i32
    return %c0_i32, %c0_i32_0 : i32, i32
  }
  func.func @transform_12(%arg0: i32, %arg1: i32) -> (i32, i32) {
    %c0_i32 = arith.constant 0 : i32
    %c0_i32_0 = arith.constant 0 : i32
    %c0_i32_1 = arith.constant 0 : i32
    return %c0_i32, %c0_i32_0 : i32, i32
  }
  func.func @transform_13(%arg0: i32, %arg1: i32) -> (i32, i32) {
    %c0_i32 = arith.constant 0 : i32
    %c0_i32_0 = arith.constant 0 : i32
    %c0_i32_1 = arith.constant 0 : i32
    return %c0_i32, %c0_i32_0 : i32, i32
  }
  func.func @transform_14(%arg0: i32, %arg1: i32) -> (i32, i32) {
    %c0_i32 = arith.constant 0 : i32
    %c0_i32_0 = arith.constant 0 : i32
    %c0_i32_1 = arith.constant 0 : i32
    return %c0_i32, %c0_i32_0 : i32, i32
  }
  func.func @transform_15(%arg0: i32, %arg1: i32) -> (i32, i32) {
    %c0_i32 = arith.constant 0 : i32
    %c0_i32_0 = arith.constant 0 : i32
    %c0_i32_1 = arith.constant 0 : i32
    return %c0_i32, %c0_i32_0 : i32, i32
  }
  func.func @transform_16(%arg0: i32, %arg1: i32) -> (i32, i32) {
    %c0_i32 = arith.constant 0 : i32
    %c0_i32_0 = arith.constant 0 : i32
    %c0_i32_1 = arith.constant 0 : i32
    return %c0_i32, %c0_i32_0 : i32, i32
  }
  func.func @transform_17(%arg0: i32, %arg1: i32) -> (i32, i32) {
    %c0_i32 = arith.constant 0 : i32
    %c0_i32_0 = arith.constant 0 : i32
    %c0_i32_1 = arith.constant 0 : i32
    return %c0_i32, %c0_i32_0 : i32, i32
  }
  func.func @transform_18(%arg0: i32, %arg1: i32) -> (i32, i32) {
    %c0_i32 = arith.constant 0 : i32
    %c0_i32_0 = arith.constant 0 : i32
    %c0_i32_1 = arith.constant 0 : i32
    return %c0_i32, %c0_i32_0 : i32, i32
  }
  func.func @transform_19(%arg0: i32, %arg1: i32) -> (i32, i32, i32) {
    %c0_i32 = arith.constant 0 : i32
    %c0_i32_0 = arith.constant 0 : i32
    return %arg0, %arg1, %c0_i32 : i32, i32, i32
  }
  func.func @transform_20(%arg0: i32, %arg1: i32) -> (i32, i32, i32, i32) {
    %c0_i32 = arith.constant 0 : i32
    %c0_i32_0 = arith.constant 0 : i32
    %c0_i32_1 = arith.constant 0 : i32
    return %arg0, %arg1, %c0_i32, %c0_i32_0 : i32, i32, i32, i32
  }
}

</mosaic_0001>

<bundles_post_ra>
// kernel: tpu_custom_call.1
= control target key start
LH: loop header
LB: loop body
LE: loop exit
PB: predicated region body
PF: predicated region fallthrough
CT: control target
= control target key end

     0   :  { %s6753_s0 = inlined_call_operand.hbm [shape: f32[2,16,128], index: 0, kind: input, shape index: {}]   ;;  %s6754_s1 = inlined_call_operand.hbm [shape: f32[2,16,128], index: 1, kind: input, shape index: {}]   ;;  %s6755_s2 = inlined_call_operand.hbm [shape: f32[2,16,128], index: 2, kind: input, shape index: {}]   ;;  %s6756_s3 = inlined_call_operand.vmem [shape: f32[2,16,16,128], index: 3, kind: input, shape index: {}]   ;;  %s6757_s4 = inlined_call_operand.vmem [shape: f32[2,16,16,8], index: 4, kind: input, shape index: {}]   ;;  %s6758_s5 = inlined_call_operand.vmem [shape: f32[128,128], index: 5, kind: input, shape index: {}]   ;;  %s6759_s6 = inlined_call_operand.vmem [shape: f32[1,128], index: 6, kind: input, shape index: {}]   ;;  %s6760_s7 = inlined_call_operand.vmem [shape: f32[128,128], index: 7, kind: input, shape index: {}]   ;;  %s6761_s8 = inlined_call_operand.vmem [shape: f32[1,128], index: 8, kind: input, shape index: {}]   ;;  %s6762_s9 = inlined_call_operand.vmem [shape: f32[128,128], index: 9, kind: input, shape index: {}]   ;;  %s6763_s10 = inlined_call_operand.vmem [shape: f32[1,128], index: 10, kind: input, shape index: {}]   ;;  %s6764_s11 = inlined_call_operand.hbm [shape: f32[128,128], index: 11, kind: input, shape index: {}]   ;;  %s6765_s12 = inlined_call_operand.vmem [shape: f32[1,128], index: 12, kind: input, shape index: {}]   ;;  %s6766_s13 = inlined_call_operand.hbm [shape: f32[128,128], index: 13, kind: input, shape index: {}]   ;;  %s6767_s14 = inlined_call_operand.vmem [shape: f32[1,128], index: 14, kind: input, shape index: {}]   ;;  %s6768_s15 = inlined_call_operand.hbm [shape: f32[128,128], index: 15, kind: input, shape index: {}]   ;;  %s6769_s16 = inlined_call_operand.vmem [shape: f32[1,128], index: 16, kind: input, shape index: {}]   ;;  %s6770_s17 = inlined_call_operand.vmem [shape: f32[128,8], index: 17, kind: input, shape index: {}]   ;;  %s6771_s18 = inlined_call_operand.vmem [shape: f32[8,128], index: 18, kind: input, shape index: {}]   ;;  %s6772_s19 = inlined_call_operand.hbm [shape: f32[2,16,128], index: 19, kind: output, shape index: {0}]   ;;  %s6773_s20 = inlined_call_operand.hbm [shape: f32[2,16,16,128], index: 20, kind: output, shape index: {1}]  }
   0x1   :  { %6812 = sst [smem:[#allocation36_spill]] %s6753_s0 }
   0x2   :  { %6813 = sst [smem:[#allocation37_spill]] %s6754_s1 }
   0x3   :  { %6814 = sst [smem:[#allocation38_spill]] %s6755_s2 }
   0x4   :  { %6815 = sst [smem:[#allocation39_spill]] %s6756_s3 }
   0x5   :  { %6816 = sst [smem:[#allocation40_spill]] %s6757_s4 }
   0x6   :  { %6817 = sst [smem:[#allocation41_spill]] %s6759_s6 }
   0x7   :  { %6818 = sst [smem:[#allocation42_spill]] %s6761_s8 }
   0x8   :  { %6819 = sst [smem:[#allocation43_spill]] %s6762_s9 }
   0x9   :  { %6820 = sst [smem:[#allocation44_spill]] %s6763_s10 }
   0xa   :  { %6821 = sst [smem:[#allocation45_spill]] %s6764_s11 }
   0xb   :  { %6822 = sst [smem:[#allocation46_spill]] %s6765_s12 }
   0xc   :  { %6823 = sst [smem:[#allocation47_spill]] %s6767_s14 }
   0xd   :  { %6824 = sst [smem:[#allocation48_spill]] %s6769_s16 }
   0xe   :  { %6825 = sst [smem:[#allocation49_spill]] %s6770_s17 }
   0xf   :  { %6826 = sst [smem:[#allocation50_spill]] %s6771_s18 }
  0x10   :  { %6827 = sst [smem:[#allocation51_spill]] %s6772_s19 }
  0x11   :  { %6828 = sst [smem:[#allocation52_spill]] %s6773_s20 }
  0x12   :  { %26 = vsyncpa [#allocation3], 0 }
  0x13   :  { %28 = vsyncpa [#allocation3 + $0x1], 0 }
  0x14   :  { %29 = vsyncpa [#allocation6], 0 }
  0x15   :  { %31 = vsyncpa [#allocation6 + $0x1], 0 }
  0x16   :  { %32 = vsyncpa [#allocation9], 0 }
  0x17   :  { %33 = vsyncpa [#allocation12], 0 }
  0x18   :  { %34 = vsyncpa [#allocation4], 0 }
  0x19   :  { %36 = vsyncpa [#allocation4 + $0x1], 0 }
  0x1a   :  { %37 = vsyncpa [#allocation15], 0 }
  0x1b   :  { %39 = vsyncpa [#allocation15 + $0x1], 0  ;;  %s5220_s1 = smov 0   ;;  %s5222_s22 = smov 0  }
  0x1c   :  { %s5224_s23 = smov 0   ;;  %s5226_s24 = smov 0  }
  0x1d   :  { %s5228_s2 = smov 0   ;;  %s5230_s25 = smov 0  }
  0x1e LB: > { %6829 = sst [smem:[#allocation22_spill]] %s5080_s1  ;;  %s5251_s3 = sadd.s32 4294967295, %s5100_s25   ;;  %s5100_s25 = sphi %s5230_s25, %s45_s25   ;;  %s5096_s2 = sphi %s5228_s2, %s6901_s2   ;;  %s5092_s24 = sphi %s5226_s24, %s6900_s24   ;;  %s5088_s23 = sphi %s5224_s23, %s6904_s23   ;;  %s5084_s22 = sphi %s5222_s22, %s6903_s22   ;;  %s5080_s1 = sphi %s5220_s1, %s6902_s1  }
  0x1f   : > { %6830 = sst [smem:[#allocation23_spill]] %s5096_s2  ;;  %s3607_s26 = sadd.s32 4294967294, %s5100_s25  }
  0x20   : > { %6831 = sst [smem:[#allocation24_spill]] %s5100_s25  ;;  %p73_p0 = scmp.ne.s32.totalorder %s5088_s23, %s5084_s22 }
  0x21   : > { %p74_p1 = scmp.eq.s32.totalorder %s5100_s25, 0  ;;  %p79_p2 = scmp.ne.s32.totalorder %s5084_s22, %s5080_s1 }
  0x22   : > { %p6783_p3 = scmp.eq.s32.totalorder %s5251_s3, 0  ;;  %p507_p5 = scmp.eq.s32.totalorder %s5251_s3, 1 }
  0x23   : > { %p5260_p4 = por %p74_p1, %p73_p0  ;;  %p513_p7 = scmp.eq.s32.totalorder %s3607_s26, 1 }
  0x24   : > { %p5267_p6 = por %p6783_p3, %p79_p2  ;;  %p5271_p8 = por %p507_p5, %p73_p0 }
  0x25   : > { %p3608_p9 = scmp.ge.s32.totalorder %s5100_s25, 1  ;;  %p5276_p10 = por %p513_p7, %p79_p2 }
  0x26   : > { %s6833_s28 = scalar_select %p5267_p6, 1, 0 }
  0x27   : > { %s6834_s4 = scalar_select %p5271_p8, 1, 0 }
  0x28   : > { %s6836_s29 = scalar_select %p5276_p10, 1, 0 }
  0x29   : > { %6835 = sst [smem:[#allocation25_spill]] %s6834_s4  ;;  %p548_p11 = scmp.lt.s32.totalorder %s5100_s25, 3 }
  0x2a   : > { %6837 = sst [smem:[#allocation26_spill]] %s6836_s29  ;;  %s5102_s0 = smov [#allocation8]  }
  0x2b   : > { %p5281_p12 = pnand %p3608_p9, %p548_p11  ;;  %s578_s21 = sshll.u32 %s5102_s0, 4  ;;  %s5285_s21 = int_to_ptr.vmem [resolvable:$true] %s578_s21 }
  0x2c   : > { %s57_s29 = sadd.s32 1, %s5096_s2  ;;  %s6841_s11 = sld [smem:[#allocation45_spill]] }
  0x2d   : > { %s6838_s30 = scalar_select %p5281_p12, 1, 0 }
  0x2e   : > { %p4613_p13 = pneg %p5281_p12  ;;  %p5298_p2 = scmp.ge.s32.totalorder %s57_s29, 2 }
  0x30   : > { %p5292_p1 = pnand %p4613_p13, %p6783_p3 }
  0x32   : > { %s6839_s26 = scalar_select %p5292_p1, 1, 0 }
  0x33   : > { %s4800_s0 = scalar_lea.hbm %s6841_s11, 2048  ;;  %p5310_p7 = pneg %p5292_p1 }
  0x34   : > { %p4801_p5 = scmp.ne.s32.totalorder %s6841_s11, %s4800_s0  ;;  %p4807_p13 = scmp.lt.u32.totalorder %s4800_s0, %s6841_s11 }
  0x35   : > { %s6842_s16 = scalar_select %p5310_p7, 1, 0 }
  0x36   : > { %p4803_p9 = pnand %p5310_p7, %p4801_p5 }
  0x38   : > { %p4804_p11 = pneg %p4803_p9 }
  0x3a   : > { %p4809_p0 = pnand %p4807_p13, %p4804_p11 }
  0x3c   : > { %4812 = shalt.err (!%p4809_p0)
}
  0x3d   : > { %s4813_s10 = scalar_lea.vmem %s5285_s21, 2048  ;;  %p4821_p6 = scmp.lt.s32.totalorder %s5285_s21, %s5285_s21 }
  0x3e   : > { %p4814_p3 = scmp.ne.s32.totalorder %s5285_s21, %s4813_s10  ;;  %p4822_p12 = scmp.lt.s32.totalorder %s4813_s10, %s4813_s10 }
  0x40   : > { %p4816_p10 = pnand %p4814_p3, %p5310_p7  ;;  %p4823_p5 = por %p4822_p12, %p4821_p6 }
  0x42   : > { %p4817_p8 = pneg %p4816_p10 }
  0x44   : > { %p4824_p9 = pnand %p4823_p5, %p4817_p8 }
  0x46   : > { %4827 = shalt.err (!%p4824_p9)
}
  0x47   : > { %s6787_s14 = smov 128   ;;  %s6789_s12 = smov 8  }
  0x48   : > { %4616 = dma.hbm_to_vmem [thread:$0]  (!%p5292_p1), %s6841_s11, 2048, %s5285_s21, [#allocation9], %s6787_s14, %s6787_s14, %s6789_s12  }
  0x49   : > { %s6906_s29 = smov (%p5298_p2, %s57_s29), 0  ;;  %p4643_p3 = scmp.lt.s32.totalorder %s5100_s25, 2 }
  0x4a   : > { %6843 = sst [smem:[#allocation27_spill]] %s6906_s29  ;;  %s6791_s4 = sand.u32 1, %s5088_s23  }
  0x4b   : > { %s61_s0 = ssub.s32 %s5096_s2, %s6906_s29  ;;  %s5344_s10 = sshll.u32 %s6791_s4, 4 }
  0x4c   : > { %p64_p6 = scmp.eq.s32.totalorder %s61_s0, 0  ;;  %s5347_s8 = sshll.u32 %s5096_s2, 8 }
  0x4d   : > { %p5351_p8 = pnand %p4643_p3, %p5260_p4  ;;  %s656_s19 = sand.u32 1, %s5100_s25  }
  0x4e   : > { %s6845_s21 = sadd.s32 1, %s5088_s23  ;;  %s6847_s12 = sld [smem:[#allocation37_spill]] }
  0x4f   : > { %s6844_s6 = scalar_select %p5351_p8, 1, 0 }
  0x50   : > { %s5359_s20 = scalar_select %p64_p6, %s5088_s23, %s6845_s21  }
  0x51   : > { %s660_s27 = scalar_lea.vmem [#allocation5], %s5344_s10  ;;  %s5105_s11 = smov [#allocation10]  }
  0x52   : > { %6846 = sst [smem:[#allocation28_spill]] %s5359_s20  ;;  %s667_s0 = sshll.u32 %s660_s27, 4  ;;  %s5368_s0 = int_to_ptr.vmem [resolvable:$true] %s667_s0 }
  0x53   : > { %s5370_s29 = sshll.u32 %s5105_s11, 4  ;;  %s5372_s2 = scalar_lea.sflag [#allocation6], %s656_s19  ;;  %s595_s29 = int_to_ptr.vmem [resolvable:$true] %s5370_s29 }
  0x54   : > { %s5365_s4 = scalar_lea.hbm %s6847_s12, %s5347_s8  ;;  %p5378_p10 = pneg %p5351_p8 }
  0x55   : > { %s4828_s21 = scalar_lea.hbm %s5365_s4, 256  ;;  %s4833_s20 = scalar_lea.hbm %s6847_s12, 512 }
  0x56   : > { %p4829_p4 = scmp.ne.s32.totalorder %s5365_s4, %s4828_s21  ;;  %p4834_p2 = scmp.lt.u32.totalorder %s5365_s4, %s6847_s12 }
  0x57   : > { %s6848_s14 = scalar_select %p5378_p10, 1, 0 }
  0x58   : > { %p4831_p12 = pnand %p5378_p10, %p4829_p4  ;;  %p4835_p11 = scmp.lt.u32.totalorder %s4833_s20, %s4828_s21 }
  0x59   : > { %p4837_p5 = scmp.lt.u32.totalorder %s4828_s21, %s5365_s4 }
  0x5a   : > { %p4832_p0 = pneg %p4831_p12  ;;  %p4836_p13 = por %p4835_p11, %p4834_p2 }
  0x5c   : > { %p4838_p9 = por %p4837_p5, %p4836_p13 }
  0x5e   : > { %p4839_p3 = pnand %p4838_p9, %p4832_p0 }
  0x60   : > { %4842 = shalt.err (!%p4839_p3)
}
  0x61   : > { %s4843_s19 = scalar_lea.vmem %s5368_s0, 256  ;;  %s5106_s1 = smov [#allocation5]  }
  0x62   : > { %p4844_p6 = scmp.ne.s32.totalorder %s5368_s0, %s4843_s19  ;;  %s4848_s27 = sshll.u32 %s5106_s1, 4  ;;  %s4849_s27 = int_to_ptr.vmem [resolvable:$false] %s4848_s27 }
  0x63   : > { %s4850_s25 = scalar_lea.vmem %s4849_s27, 512  ;;  %p4851_p1 = scmp.lt.s32.totalorder %s5368_s0, %s4849_s27 }
  0x64   : > { %p4846_p4 = pnand %p4844_p6, %p5378_p10  ;;  %p4852_p7 = scmp.lt.s32.totalorder %s4850_s25, %s4843_s19 }
  0x66   : > { %p4847_p12 = pneg %p4846_p4  ;;  %p4853_p2 = por %p4852_p7, %p4851_p1 }
  0x68   : > { %p4854_p11 = pnand %p4853_p2, %p4847_p12 }
  0x6a   : > { %4857 = shalt.err (!%p4854_p11)
}
  0x6b   : > { %s6849_s20 = smov 8   ;;  %s6850_s21 = smov 128  }
  0x6c   : > { %4629 = dma.hbm_to_vmem [thread:$0]  (!%p5351_p8), %s5365_s4, 256, %s5368_s0, %s5372_s2, %s6850_s21, %s6850_s21, %s6849_s20  }
  0x6d   : > { %s4858_s27 = scalar_lea.hbm %s6766_s13, 2048  ;;  %p6851_p7 = scmp.ne.s32.totalorder %s6842_s16, 0 }
  0x6e   : > { %p4859_p1 = scmp.ne.s32.totalorder %s6766_s13, %s4858_s27  ;;  %p4865_p5 = scmp.lt.u32.totalorder %s4858_s27, %s6766_s13 }
  0x70   : > { %p4861_p0 = pnand %p4859_p1, %p6851_p7 }
  0x72   : > { %p4862_p13 = pneg %p4861_p0 }
  0x74   : > { %p4867_p9 = pnand %p4865_p5, %p4862_p13 }
  0x76   : > { %4870 = shalt.err (!%p4867_p9)
}
  0x77   : > { %s4871_s17 = scalar_lea.vmem %s595_s29, 2048  ;;  %p4879_p12 = scmp.lt.s32.totalorder %s595_s29, %s595_s29 }
  0x78   : > { %p4872_p3 = scmp.ne.s32.totalorder %s595_s29, %s4871_s17  ;;  %p4880_p2 = scmp.lt.s32.totalorder %s4871_s17, %s4871_s17 }
  0x7a   : > { %p4874_p6 = pnand %p4872_p3, %p6851_p7  ;;  %p4881_p11 = por %p4880_p2, %p4879_p12 }
  0x7c   : > { %p4875_p4 = pneg %p4874_p6 }
  0x7e   : > { %p4882_p8 = pnand %p4881_p11, %p4875_p4 }
  0x80   : > { %4885 = shalt.err (!%p4882_p8)
}
  0x81   : > { %p6852_p1 = scmp.ne.s32.totalorder %s6839_s26, 0  ;;  %s5107_s4 = smov [#allocation11]  }
  0x82   : > { %s610_s0 = sshll.u32 %s5107_s4, 4  ;;  %s4886_s17 = scalar_lea.hbm %s6768_s15, 2048  ;;  %s611_s0 = int_to_ptr.vmem [resolvable:$true] %s610_s0 }
  0x83   : > { %4619 = dma.hbm_to_vmem [thread:$0]  (!%p6852_p1), %s6766_s13, 2048, %s595_s29, [#allocation9], %s6850_s21, %s6850_s21, %s6849_s20  }
  0x84   : > { %p4887_p8 = scmp.ne.s32.totalorder %s6768_s15, %s4886_s17  ;;  %p4893_p5 = scmp.lt.u32.totalorder %s4886_s17, %s6768_s15 }
  0x86   : > { %p4889_p0 = pnand %p4887_p8, %p6851_p7 }
  0x88   : > { %p4890_p13 = pneg %p4889_p0 }
  0x8a   : > { %p4895_p9 = pnand %p4893_p5, %p4890_p13 }
  0x8c   : > { %4898 = shalt.err (!%p4895_p9)
}
  0x8d   : > { %s4899_s29 = scalar_lea.vmem %s611_s0, 2048  ;;  %p4907_p12 = scmp.lt.s32.totalorder %s611_s0, %s611_s0 }
  0x8e   : > { %p4900_p3 = scmp.ne.s32.totalorder %s611_s0, %s4899_s29  ;;  %p4908_p2 = scmp.lt.s32.totalorder %s4899_s29, %s4899_s29 }
  0x90   : > { %p4902_p6 = pnand %p4900_p3, %p6851_p7  ;;  %p4909_p11 = por %p4908_p2, %p4907_p12 }
  0x92   : > { %p4903_p4 = pneg %p4902_p6 }
  0x94   : > { %p4910_p10 = pnand %p4909_p11, %p4903_p4 }
  0x96   : > { %4913 = shalt.err (!%p4910_p10)
}
  0x97   : > { %4622 = dma.hbm_to_vmem [thread:$0]  (!%p6852_p1), %s6768_s15, 2048, %s611_s0, [#allocation12], %s6850_s21, %s6850_s21, %s6849_s20  }
  0x98   : > { %s6853_s4 = sld [smem:[#allocation36_spill]]  ;;  %s637_s26 = scalar_lea.vmem [#allocation2], %s5344_s10 }
  0x99   : > { %s646_s1 = sshll.u32 %s637_s26, 4  ;;  %s6854_s17 = sand.u32 1, %s5088_s23   ;;  %s5455_s1 = int_to_ptr.vmem [resolvable:$true] %s646_s1 }
  0x9a   : > { %s5459_s27 = scalar_lea.sflag [#allocation3], %s6854_s17  ;;  %p6855_p7 = scmp.ne.s32.totalorder %s6848_s14, 0 }
  0x9e   : > { %s5452_s11 = scalar_lea.hbm %s6853_s4, %s5347_s8  ;;  %s4919_s29 = scalar_lea.hbm %s6853_s4, 512 }
  0x9f   : > { %s4914_s19 = scalar_lea.hbm %s5452_s11, 256  ;;  %p4920_p0 = scmp.lt.u32.totalorder %s5452_s11, %s6853_s4 }
  0xa0   : > { %p4915_p10 = scmp.ne.s32.totalorder %s5452_s11, %s4914_s19  ;;  %p4921_p13 = scmp.lt.u32.totalorder %s4919_s29, %s4914_s19 }
  0xa1   : > { %p4923_p9 = scmp.lt.u32.totalorder %s4914_s19, %s5452_s11 }
  0xa2   : > { %p4917_p1 = pnand %p4915_p10, %p6855_p7  ;;  %p4922_p5 = por %p4921_p13, %p4920_p0 }
  0xa4   : > { %p4918_p8 = pneg %p4917_p1  ;;  %p4924_p3 = por %p4923_p9, %p4922_p5 }
  0xa6   : > { %p4925_p6 = pnand %p4924_p3, %p4918_p8 }
  0xa8   : > { %4928 = shalt.err (!%p4925_p6)
}
  0xa9   : > { %s4929_s16 = scalar_lea.vmem %s5455_s1, 256  ;;  %s5108_s12 = smov [#allocation2]  }
  0xaa   : > { %p4930_p4 = scmp.ne.s32.totalorder %s5455_s1, %s4929_s16  ;;  %s4934_s26 = sshll.u32 %s5108_s12, 4  ;;  %s4935_s26 = int_to_ptr.vmem [resolvable:$false] %s4934_s26 }
  0xab   : > { %s4936_s17 = scalar_lea.vmem %s4935_s26, 512  ;;  %p4937_p11 = scmp.lt.s32.totalorder %s5455_s1, %s4935_s26 }
  0xac   : > { %p4932_p12 = pnand %p4930_p4, %p6855_p7  ;;  %p4938_p10 = scmp.lt.s32.totalorder %s4936_s17, %s4929_s16 }
  0xae   : > { %p4933_p2 = pneg %p4932_p12  ;;  %p4939_p1 = por %p4938_p10, %p4937_p11 }
  0xb0   : > { %p4940_p0 = pnand %p4939_p1, %p4933_p2 }
  0xb2   : > { %4943 = shalt.err (!%p4940_p0)
}
  0xb3   : > { %p6856_p8 = scmp.ne.s32.totalorder %s6844_s6, 0  ;;  %s6857_s25 = sld [smem:[#allocation38_spill]] }
  0xb4   : > { %s681_s18 = scalar_lea.vmem [#allocation7], %s5344_s10 }
  0xb5   : > { %4626 = dma.hbm_to_vmem [thread:$0]  (!%p6856_p8), %s5452_s11, 256, %s5455_s1, %s5459_s27, %s6850_s21, %s6850_s21, %s6849_s20  }
  0xb6   : > { %s688_s16 = sshll.u32 %s681_s18, 4  ;;  %s5493_s16 = int_to_ptr.vmem [resolvable:$true] %s688_s16 }
  0xb9   : > { %s6858_s29 = smov %s6857_s25  ;;  %s5490_s9 = scalar_lea.hbm %s6857_s25, %s5347_s8 }
  0xba   : > { %s4944_s12 = scalar_lea.hbm %s5490_s9, 256  ;;  %s4949_s1 = scalar_lea.hbm %s6858_s29, 512 }
  0xbb   : > { %p4945_p13 = scmp.ne.s32.totalorder %s5490_s9, %s4944_s12  ;;  %p4950_p3 = scmp.lt.u32.totalorder %s5490_s9, %s6858_s29 }
  0xbc   : > { %p4951_p6 = scmp.lt.u32.totalorder %s4949_s1, %s4944_s12  ;;  %p4953_p12 = scmp.lt.u32.totalorder %s4944_s12, %s5490_s9 }
  0xbd   : > { %p4947_p5 = pnand %p4945_p13, %p6855_p7 }
  0xbe   : > { %p4952_p4 = por %p4951_p6, %p4950_p3 }
  0xbf   : > { %p4948_p9 = pneg %p4947_p5 }
  0xc0   : > { %p4954_p2 = por %p4953_p12, %p4952_p4 }
  0xc2   : > { %p4955_p11 = pnand %p4954_p2, %p4948_p9 }
  0xc4   : > { %4958 = shalt.err (!%p4955_p11)
}
  0xc5   : > { %s4959_s10 = scalar_lea.vmem %s5493_s16, 256  ;;  %s5109_s17 = smov [#allocation7]  }
  0xc6   : > { %p4960_p10 = scmp.ne.s32.totalorder %s5493_s16, %s4959_s10  ;;  %s4964_s19 = sshll.u32 %s5109_s17, 4  ;;  %s4965_s19 = int_to_ptr.vmem [resolvable:$false] %s4964_s19 }
  0xc7   : > { %s4966_s0 = scalar_lea.vmem %s4965_s19, 512  ;;  %p4967_p13 = scmp.lt.s32.totalorder %s5493_s16, %s4965_s19 }
  0xc8   : > { %p4962_p1 = pnand %p4960_p10, %p6855_p7  ;;  %p4968_p5 = scmp.lt.s32.totalorder %s4966_s0, %s4959_s10 }
  0xca   : > { %p4963_p0 = pneg %p4962_p1  ;;  %p4969_p3 = por %p4968_p5, %p4967_p13 }
  0xcc   : > { %p4970_p6 = pnand %p4969_p3, %p4963_p0 }
  0xce   : > { %4973 = shalt.err (!%p4970_p6)
}
  0xcf   : > { %4632 = dma.hbm_to_vmem [thread:$0]  (!%p6856_p8), %s5490_s9, 256, %s5493_s16, %s5372_s2, %s6850_s21, %s6850_s21, %s6849_s20  }
  0xd0   : > { %p6859_p7 = scmp.ne.s32.totalorder %s6838_s30, 0 }
  0xd2   : > { %728 = sbr.rel (%p6859_p7) target bundleno = 1361 (0x551), region = 96 }
  0xd9   : > { %s5523_s14 = sand.u32 1, %s5084_s22   ;;  %p6860_p9 = scmp.ne.s32.totalorder %s6833_s28, 0 }
  0xda   : > { %s5526_s25 = sshll.u32 %s5523_s14, 4  ;;  %s731_s6 = scalar_lea.sflag [#allocation3], %s5523_s14 }
  0xdb   : > { %s734_s18 = scalar_lea.vmem [#allocation2], %s5526_s25 }
  0xdc   : > { %5055 = dma.done.wait (%p6860_p9), %s731_s6, 256  }
  0xdd   : > { %5057 = vsyncadd (%p6860_p9), %s731_s6, 4294967040  ;;  %s739_s2 = sand.u32 1, %s5251_s3   ;;  %s743_s20 = scalar_lea.vmem [#allocation5], %s5526_s25 }
  0xde   : > { %s740_s30 = scalar_lea.sflag [#allocation6], %s739_s2 }
  0xdf   : > { %5059 = dma.done.wait (%p6860_p9), %s740_s30, 512  }
  0xe0   : > { %5061 = vsyncadd (%p6860_p9), %s740_s30, 4294966784  ;;  %s752_s21 = scalar_lea.vmem [#allocation7], %s5526_s25  ;;  %p6861_p8 = scmp.eq.s32.totalorder %s5251_s3, 0 }
  0xe2   : > { %5063 = dma.done.wait (%p6861_p8), [#allocation9], 4096   ;;  %p6862_p4 = pmov %p6861_p8 }
  0xe4   : > { %5065 = vsyncadd (%p6862_p4), [#allocation9], 4294963200  ;;  %p6863_p12 = pmov %p6862_p4 }
  0xe5   : > { %p6864_p2 = pmov %p6862_p4 }
  0xe6   : > { %5067 = dma.done.wait (%p6863_p12), [#allocation12], 2048  }
  0xe7   : > { %5069 = vsyncadd (%p6864_p2), [#allocation12], 4294965248  ;;  %v883_v0 = vld [vmem:[%s6758_s5] sm:$0xff]  ;;  %v884_v1 = vld [vmem:[%s6758_s5 + $0x8] sm:$0xff]  ;;  %p858_p11 = scmp.lt.s32.totalorder %s5092_s24, 1  ;;  %s6865_s9 = sld [smem:[#allocation43_spill]] }
  0xe8   : > { %v985_v2 = vld [vmem:[%s6760_s7] sm:$0xff]  ;;  %v4367_v3 = vpack.c.bf16 %v884_v1, %v883_v0  ;;  %v986_v4 = vld [vmem:[%s6760_s7 + $0x8] sm:$0xff]  ;;  %v885_v5 = vld [vmem:[%s6758_s5 + $0x10] sm:$0xff]  ;;  %s6866_s11 = sld [smem:[#allocation39_spill]]  ;;  %s6867_s28 = sld [smem:[#allocation49_spill]]  ;;  %vm2292_vm0 = vcmask 64512  }
  0xe9   : > { %v886_v6 = vld [vmem:[%s6758_s5 + $0x18] sm:$0xff]  ;;  %v4399_v7 = vpack.c.bf16 %v986_v4, %v985_v2  ;;  %v987_v9 = vld [vmem:[%s6760_s7 + $0x10] sm:$0xff]  ;;  %v887_v11 = vld [vmem:[%s6758_s5 + $0x20] sm:$0xff]  ;;  %s5651_s0 = scalar_select %p858_p11, %s5092_s24, 1  ;;  %vm3230_vm1 = vcmask 1041409   ;;  %vm3232_vm2 = vcmask 1042434  }
  0xea   : > { %v4371_v8 = vpack.c.bf16 %v886_v6, %v885_v5  ;;  %v988_v10 = vld [vmem:[%s6760_s7 + $0x18] sm:$0xff]  ;;  %4368 = vmatprep.subr.bf16.mxu0 %v4367_v3  ;;  %v888_v13 = vld [vmem:[%s6758_s5 + $0x28] sm:$0xff]  ;;  %v989_v14 = vld [vmem:[%s6760_s7 + $0x20] sm:$0xff]  ;;  %s6868_s10 = sld [smem:[#allocation50_spill]]  ;;  %s6869_s19 = sld [smem:[#allocation41_spill]]  ;;  %vm3234_vm3 = vcmask 1043459  }
  0xeb   : > { %v4403_v12 = vpack.c.bf16 %v988_v10, %v987_v9  ;;  %v990_v15 = vld [vmem:[%s6760_s7 + $0x28] sm:$0xff]  ;;  %4400 = vmatprep.subr.bf16.mxu1 %v4399_v7  ;;  %4370 = vmatpush3.bf16.msra.mxu0 %v4367_v3  ;;  %v4375_v16 = vpack.c.bf16 %v888_v13, %v887_v11  ;;  %v889_v18 = vld [vmem:[%s6758_s5 + $0x30] sm:$0xff]  ;;  %v890_v19 = vld [vmem:[%s6758_s5 + $0x38] sm:$0xff]  ;;  %s3684_s6 = sshll.u32 %s5651_s0, 8  ;;  %s6870_s30 = sld [smem:[#allocation42_spill]]  ;;  %vm3236_vm4 = vcmask 1044484  }
  0xec   : > { %4402 = vmatpush3.bf16.msra.mxu1 %v4399_v7  ;;  %4372 = vmatprep.subr.bf16.mxu0 %v4371_v8  ;;  %v4407_v17 = vpack.c.bf16 %v990_v15, %v989_v14  ;;  %v991_v20 = vld [vmem:[%s6760_s7 + $0x30] sm:$0xff]  ;;  %v992_v21 = vld [vmem:[%s6760_s7 + $0x38] sm:$0xff]  ;;  %v4379_v22 = vpack.c.bf16 %v890_v19, %v889_v18  ;;  %v891_v24 = vld [vmem:[%s6758_s5 + $0x40] sm:$0xff]  ;;  %s6871_s16 = sld [smem:[#allocation46_spill]]  ;;  %s3630_s8 = sshll.u32 %s5523_s14, 8  ;;  %vm3238_vm5 = vcmask 1045509  }
  0xed   : > { %4404 = vmatprep.subr.bf16.mxu1 %v4403_v12  ;;  %v4411_v23 = vpack.c.bf16 %v992_v21, %v991_v20  ;;  %v892_v25 = vld [vmem:[%s6758_s5 + $0x48] sm:$0xff]  ;;  %v881_v26 = vld [vmem:[%s734_s18] sm:$0xff]  ;;  %v894_v33 = vld [vmem:[%s6758_s5 + $0x58] sm:$0xff]  ;;  %s6875_s17 = sld [smem:[#allocation48_spill]]  ;;  %s6025_s0 = scalar_lea.vmem [#allocation14], %s3630_s8  ;;  %vm3240_vm6 = vcmask 1046534  }
  0xee   : > { %v993_v27 = vld [vmem:[%s6760_s7 + $0x40] sm:$0xff]  ;;  %v994_v28 = vld [vmem:[%s6760_s7 + $0x48] sm:$0xff]  ;;  %3969 = vmatprep.mubr.f32.mxu0 %v881_v26  ;;  %v4383_v30 = vpack.c.bf16 %v892_v25, %v891_v24  ;;  %v893_v32 = vld [vmem:[%s6758_s5 + $0x50] sm:$0xff]  ;;  %s5665_s1 = scalar_lea.vmem %s6866_s11, %s3684_s6  ;;  %s6874_s11 = sld [smem:[#allocation40_spill]]  ;;  %vm3242_vm7 = vcmask 1047559  }
  0xef   : > { %4374 = vmatpush3.bf16.msra.mxu0 %v4371_v8  ;;  %v983_v29 = vld [vmem:[%s743_s20] sm:$0xff]  ;;  %v4415_v31 = vpack.c.bf16 %v994_v28, %v993_v27  ;;  %v996_v35 = vld [vmem:[%s6760_s7 + $0x58] sm:$0xff]  ;;  %v4387_v36 = vpack.c.bf16 %v894_v33, %v893_v32  ;;  %v896_v39 = vld [vmem:[%s6758_s5 + $0x68] sm:$0xff]  ;;  %s3687_s2 = sshll.u32 %s5092_s24, 12  ;;  %s3370_s12 = sshll.u32 %s6025_s0, 4  ;;  %s6662_s12 = int_to_ptr.vmem [resolvable:$true] %s3370_s12 }
  0xf0   : > { %4406 = vmatpush3.bf16.msra.mxu1 %v4403_v12  ;;  %4376 = vmatprep.subr.bf16.mxu0 %v4375_v16  ;;  %v995_v34 = vld [vmem:[%s6760_s7 + $0x50] sm:$0xff]  ;;  %v895_v38 = vld [vmem:[%s6758_s5 + $0x60] sm:$0xff]  ;;  %v998_v41 = vld [vmem:[%s6760_s7 + $0x68] sm:$0xff]  ;;  %s3336_s26 = scalar_lea.sflag [#allocation15], %s5523_s14 }
  0xf1   : > { %4408 = vmatprep.subr.bf16.mxu1 %v4407_v17  ;;  %4004 = vmatprep.mubr.f32.mxu1 %v983_v29  ;;  %v4419_v37 = vpack.c.bf16 %v996_v35, %v995_v34  ;;  %v997_v40 = vld [vmem:[%s6760_s7 + $0x60] sm:$0xff]  ;;  %v4391_v42 = vpack.c.bf16 %v896_v39, %v895_v38  ;;  %v897_v44 = vld [vmem:[%s6758_s5 + $0x70] sm:$0xff]  ;;  %v898_v45 = vld [vmem:[%s6758_s5 + $0x78] sm:$0xff] }
  0xf2   : > { %v4423_v43 = vpack.c.bf16 %v998_v41, %v997_v40  ;;  %v999_v46 = vld [vmem:[%s6760_s7 + $0x70] sm:$0xff]  ;;  %v1000_v47 = vld [vmem:[%s6760_s7 + $0x78] sm:$0xff]  ;;  %v4395_v48 = vpack.c.bf16 %v898_v45, %v897_v44  ;;  %v1215_v50 = vld [vmem:[#allocation8] sm:$0xff] }
  0xf3   : > { %4378 = vmatpush3.bf16.msra.mxu0 %v4375_v16  ;;  %v4427_v49 = vpack.c.bf16 %v1000_v47, %v999_v46  ;;  %v1216_v51 = vld [vmem:[#allocation8 + $0x8] sm:$0xff]  ;;  %v1085_v52 = vld [vmem:[%s6865_s9] sm:$0xff]  ;;  %v1217_v55 = vld [vmem:[#allocation8 + $0x10] sm:$0xff] }
  0xf4   : > { %4410 = vmatpush3.bf16.msra.mxu1 %v4407_v17  ;;  %4380 = vmatprep.subr.bf16.mxu0 %v4379_v22  ;;  %v1086_v53 = vld [vmem:[%s6865_s9 + $0x8] sm:$0xff]  ;;  %v4463_v54 = vpack.c.bf16 %v1216_v51, %v1215_v50  ;;  %v1218_v57 = vld [vmem:[#allocation8 + $0x18] sm:$0xff]  ;;  %v1087_v58 = vld [vmem:[%s6865_s9 + $0x10] sm:$0xff]  ;;  %s6008_s27 = scalar_lea.vmem %s6874_s11, %s3684_s6  ;;  %s4974_s11 = scalar_lea.vmem %s6662_s12, 4096 }
  0xf5   : > { %4412 = vmatprep.subr.bf16.mxu1 %v4411_v23  ;;  %v4431_v56 = vpack.c.bf16 %v1086_v53, %v1085_v52  ;;  %v1088_v59 = vld [vmem:[%s6865_s9 + $0x18] sm:$0xff]  ;;  %v4467_v62 = vpack.c.bf16 %v1218_v57, %v1217_v55  ;;  %v1183_v63 = vld [vmem:[%s5665_s1] sm:$0xff]  ;;  %v1090_v2 = vld [vmem:[%s6865_s9 + $0x28] sm:$0xff]  ;;  %p4975_p10 = scmp.ne.s32.totalorder %s6662_s12, %s4974_s11 }
  0xf6   : > { %v882_v60 = vld [vmem:[%s734_s18 + $0x8] sm:$0xff]  ;;  %v4435_v0 = vpack.c.bf16 %v1088_v59, %v1087_v58  ;;  %v1089_v1 = vld [vmem:[%s6865_s9 + $0x20] sm:$0xff]  ;;  %v1091_v7 = vld [vmem:[%s6865_s9 + $0x30] sm:$0xff] }
  0xf7   : > { %4382 = vmatpush3.bf16.msra.mxu0 %v4379_v22  ;;  %v984_v61 = vld [vmem:[%s743_s20 + $0x8] sm:$0xff]  ;;  %v1219_v3 = vld [vmem:[#allocation8 + $0x20] sm:$0xff]  ;;  %v4439_v5 = vpack.c.bf16 %v1090_v2, %v1089_v1  ;;  %v1221_v9 = vld [vmem:[#allocation8 + $0x30] sm:$0xff]  ;;  %s6890_s20 = sld [smem:[#allocation52_spill]] }
  0xf8   : > { %4414 = vmatpush3.bf16.msra.mxu1 %v4411_v23  ;;  %4384 = vmatprep.subr.bf16.mxu0 %v4383_v30  ;;  %v1220_v4 = vld [vmem:[#allocation8 + $0x28] sm:$0xff]  ;;  %v1092_v8 = vld [vmem:[%s6865_s9 + $0x38] sm:$0xff]  ;;  %v1093_v13 = vld [vmem:[%s6865_s9 + $0x40] sm:$0xff] }
  0xf9   : > { %4416 = vmatprep.subr.bf16.mxu1 %v4415_v31  ;;  %v4471_v6 = vpack.c.bf16 %v1220_v4, %v1219_v3  ;;  %v1222_v10 = vld [vmem:[#allocation8 + $0x38] sm:$0xff]  ;;  %v4443_v11 = vpack.c.bf16 %v1092_v8, %v1091_v7  ;;  %v1094_v14 = vld [vmem:[%s6865_s9 + $0x48] sm:$0xff]  ;;  %v1223_v15 = vld [vmem:[#allocation8 + $0x40] sm:$0xff] }
  0xfa   : > { %v4475_v12 = vpack.c.bf16 %v1222_v10, %v1221_v9  ;;  %v1224_v16 = vld [vmem:[#allocation8 + $0x48] sm:$0xff]  ;;  %v4447_v17 = vpack.c.bf16 %v1094_v14, %v1093_v13  ;;  %v1095_v19 = vld [vmem:[%s6865_s9 + $0x50] sm:$0xff]  ;;  %v1096_v20 = vld [vmem:[%s6865_s9 + $0x58] sm:$0xff] }
  0xfb   : > { %4386 = vmatpush3.bf16.msra.mxu0 %v4383_v30  ;;  %v4479_v18 = vpack.c.bf16 %v1224_v16, %v1223_v15  ;;  %v1225_v21 = vld [vmem:[#allocation8 + $0x50] sm:$0xff]  ;;  %v1226_v22 = vld [vmem:[#allocation8 + $0x58] sm:$0xff]  ;;  %v4451_v23 = vpack.c.bf16 %v1096_v20, %v1095_v19  ;;  %v1097_v25 = vld [vmem:[%s6865_s9 + $0x60] sm:$0xff] }
  0xfc   : > { %4418 = vmatpush3.bf16.msra.mxu1 %v4415_v31  ;;  %4388 = vmatprep.subr.bf16.mxu0 %v4387_v36  ;;  %v4483_v24 = vpack.c.bf16 %v1226_v22, %v1225_v21  ;;  %v1098_v26 = vld [vmem:[%s6865_s9 + $0x68] sm:$0xff]  ;;  %v1227_v27 = vld [vmem:[#allocation8 + $0x60] sm:$0xff]  ;;  %v1229_v31 = vld [vmem:[#allocation8 + $0x70] sm:$0xff] }
  0xfd   : > { %4420 = vmatprep.subr.bf16.mxu1 %v4419_v37  ;;  %v1228_v28 = vld [vmem:[#allocation8 + $0x68] sm:$0xff]  ;;  %v4455_v29 = vpack.c.bf16 %v1098_v26, %v1097_v25  ;;  %v1230_v32 = vld [vmem:[#allocation8 + $0x78] sm:$0xff]  ;;  %v1987_v34 = vld [vmem:[%s6867_s28] sm:$0xff] }
  0xfe   : > { %v4487_v30 = vpack.c.bf16 %v1228_v28, %v1227_v27  ;;  %v4491_v33 = vpack.c.bf16 %v1230_v32, %v1229_v31  ;;  %v1988_v35 = vld [vmem:[%s6867_s28 + $0x8] sm:$0xff]  ;;  %v1990_v38 = vld [vmem:[%s6867_s28 + $0x18] sm:$0xff]  ;;  %v1185_v40 = vld [vmem:[%s5665_s1 + $0x10] sm:$0xff] }
  0xff   : > { %4390 = vmatpush3.bf16.msra.mxu0 %v4387_v36  ;;  %v4527_v36 = vpack.c.bf16 %v1988_v35, %v1987_v34  ;;  %v1184_v39 = vld [vmem:[%s5665_s1 + $0x8] sm:$0xff]  ;;  %v1186_v44 = vld [vmem:[%s5665_s1 + $0x18] sm:$0xff]  ;;  %v1187_v45 = vld [vmem:[%s5665_s1 + $0x20] sm:$0xff] }
 0x100   : > { %4422 = vmatpush3.bf16.msra.mxu1 %v4419_v37  ;;  %4392 = vmatprep.subr.bf16.mxu0 %v4391_v42  ;;  %v1989_v37 = vld [vmem:[%s6867_s28 + $0x10] sm:$0xff]  ;;  %v1190_v52 = vld [vmem:[%s5665_s1 + $0x38] sm:$0xff]  ;;  %v1191_v53 = vld [vmem:[%s5665_s1 + $0x40] sm:$0xff] }
 0x101   : > { %4424 = vmatprep.subr.bf16.mxu1 %v4423_v43  ;;  %v4531_v41 = vpack.c.bf16 %v1990_v38, %v1989_v37  ;;  %v1993_v47 = vld [vmem:[%s6867_s28 + $0x30] sm:$0xff]  ;;  %v1195_v57 = vld [vmem:[%s5665_s1 + $0x60] sm:$0xff]  ;;  %v1196_v58 = vld [vmem:[%s5665_s1 + $0x68] sm:$0xff] }
 0x102   : > { %v1189_v50 = vld [vmem:[%s5665_s1 + $0x30] sm:$0xff]  ;;  %v1203_v1 = vld [vmem:[%s5665_s1 + $0xa0] sm:$0xff]  ;;  %v1204_v2 = vld [vmem:[%s5665_s1 + $0xa8] sm:$0xff] }
 0x103   : > { %4394 = vmatpush3.bf16.msra.mxu0 %v4391_v42  ;;  %v1991_v42 = vld [vmem:[%s6867_s28 + $0x20] sm:$0xff]  ;;  %v1193_v55 = vld [vmem:[%s5665_s1 + $0x50] sm:$0xff]  ;;  %v1206_v4 = vld [vmem:[%s5665_s1 + $0xb8] sm:$0xff] }
 0x104   : > { %4426 = vmatpush3.bf16.msra.mxu1 %v4423_v43  ;;  %4396 = vmatprep.subr.bf16.mxu0 %v4395_v48  ;;  %v1992_v43 = vld [vmem:[%s6867_s28 + $0x28] sm:$0xff]  ;;  %v1197_v59 = vld [vmem:[%s5665_s1 + $0x70] sm:$0xff]  ;;  %v1210_v8 = vld [vmem:[%s5665_s1 + $0xd8] sm:$0xff] }
 0x105   : > { %4428 = vmatprep.subr.bf16.mxu1 %v4427_v49  ;;  %v4535_v46 = vpack.c.bf16 %v1992_v43, %v1991_v42  ;;  %v1205_v3 = vld [vmem:[%s5665_s1 + $0xb0] sm:$0xff]  ;;  %v1211_v9 = vld [vmem:[%s5665_s1 + $0xe0] sm:$0xff]  ;;  %v1212_v13 = vld [vmem:[%s5665_s1 + $0xe8] sm:$0xff] }
 0x106   : > { %v1209_v7 = vld [vmem:[%s5665_s1 + $0xd0] sm:$0xff]  ;;  %v1707_v15 = vld [vmem:[#allocation11] sm:$0xff]  ;;  %v1708_v16 = vld [vmem:[#allocation11 + $0x8] sm:$0xff] }
 0x107   : > { %4398 = vmatpush3.bf16.msra.mxu0 %v4395_v48  ;;  %v1994_v48 = vld [vmem:[%s6867_s28 + $0x38] sm:$0xff]  ;;  %v1099_v10 = vld [vmem:[%s6865_s9 + $0x70] sm:$0xff]  ;;  %v1999_v35 = vld [vmem:[%s6867_s28 + $0x60] sm:$0xff] }
 0x108   : > { %4430 = vmatpush3.bf16.msra.mxu1 %v4427_v49  ;;  %4432 = vmatprep.subr.bf16.mxu0 %v4431_v56  ;;  %v1188_v49 = vld [vmem:[%s5665_s1 + $0x28] sm:$0xff]  ;;  %v4539_v51 = vpack.c.bf16 %v1994_v48, %v1993_v47  ;;  %v1213_v14 = vld [vmem:[%s5665_s1 + $0xf0] sm:$0xff]  ;;  %v1710_v22 = vld [vmem:[#allocation11 + $0x18] sm:$0xff] }
 0x109   : > { %4464 = vmatprep.subr.bf16.mxu1 %v4463_v54  ;;  %v1083_v19 = vld [vmem:[%s752_s21] sm:$0xff]  ;;  %v1084_v20 = vld [vmem:[%s752_s21 + $0x8] sm:$0xff]  ;;  %s6889_s21 = sld [smem:[#allocation25_spill]] }
 0x10a   : > { %3970 = vmatmul.mubr.f32.vlgmr.msra.gmra.mrb[0].mxu0 %v882_v60  ;;  %v1198_v60 = vld [vmem:[%s5665_s1 + $0x78] sm:$0xff]  ;;  %v1709_v21 = vld [vmem:[#allocation11 + $0x10] sm:$0xff]  ;;  %v1719_v48 = vld [vmem:[#allocation11 + $0x60] sm:$0xff] }
 0x10b   : > { %4005 = vmatmul.mubr.f32.vlgmr.msra.gmra.mrb[0].mxu1 %v984_v61  ;;  %4434 = vmatpush3.bf16.msra.mxu0 %v4431_v56  ;;  %v1194_v56 = vld [vmem:[%s5665_s1 + $0x58] sm:$0xff]  ;;  %v1199_v61 = vld [vmem:[%s5665_s1 + $0x80] sm:$0xff]  ;;  %v4499_v25 = vpack.c.bf16 %v1710_v22, %v1709_v21  ;;  %v1997_v26 = vld [vmem:[%s6867_s28 + $0x50] sm:$0xff] }
 0x10c   : > { %4466 = vmatpush3.bf16.msra.mxu1 %v4463_v54  ;;  %4074 = vmatprep.mubr.f32.mxu1 %v1183_v63  ;;  %v1192_v54 = vld [vmem:[%s5665_s1 + $0x48] sm:$0xff]  ;;  %v1201_v63 = vld [vmem:[%s5665_s1 + $0x90] sm:$0xff]  ;;  %v1998_v28 = vld [vmem:[%s6867_s28 + $0x58] sm:$0xff] }
 0x10d   : > { %4468 = vmatprep.subr.bf16.mxu1 %v4467_v62  ;;  %4436 = vmatprep.subr.bf16.mxu0 %v4435_v0  ;;  %v4547_v31 = vpack.c.bf16 %v1998_v28, %v1997_v26  ;;  %v1714_v34 = vld [vmem:[#allocation11 + $0x38] sm:$0xff] }
 0x10e   : > { %4039 = vmatprep.mubr.f32.mxu0 %v1083_v19  ;;  %v2002_v42 = vld [vmem:[%s6867_s28 + $0x78] sm:$0xff] }
 0x10f   : > { %4438 = vmatpush3.bf16.msra.mxu0 %v4435_v0  ;;  %v1202_v0 = vld [vmem:[%s5665_s1 + $0x98] sm:$0xff]  ;;  %p6891_p1 = scmp.ne.s32.totalorder %s6889_s21, 0 }
 0x110   : > { %4470 = vmatpush3.bf16.msra.mxu1 %v4467_v62  ;;  %4440 = vmatprep.subr.bf16.mxu0 %v4439_v5  ;;  %v1200_v62 = vld [vmem:[%s5665_s1 + $0x88] sm:$0xff] }
 0x111   : > { %4472 = vmatprep.subr.bf16.mxu1 %v4471_v6  ;;  %p4976_p0 = pnand %p4975_p10, %p6891_p1 }
 0x113   : > { %4442 = vmatpush3.bf16.msra.mxu0 %v4439_v5  ;;  %v1207_v5 = vld [vmem:[%s5665_s1 + $0xc0] sm:$0xff]  ;;  %p4977_p13 = pneg %p4976_p0 }
 0x114   : > { %4474 = vmatpush3.bf16.msra.mxu1 %v4471_v6  ;;  %4444 = vmatprep.subr.bf16.mxu0 %v4443_v11  ;;  %v1208_v6 = vld [vmem:[%s5665_s1 + $0xc8] sm:$0xff] }
 0x115   : > { %4476 = vmatprep.subr.bf16.mxu1 %v4475_v12 }
 0x117   : > { %4446 = vmatpush3.bf16.msra.mxu0 %v4443_v11  ;;  %v1100_v11 = vld [vmem:[%s6865_s9 + $0x78] sm:$0xff] }
 0x118   : > { %4478 = vmatpush3.bf16.msra.mxu1 %v4475_v12  ;;  %4448 = vmatprep.subr.bf16.mxu0 %v4447_v17  ;;  %v4459_v12 = vpack.c.bf16 %v1100_v11, %v1099_v10 }
 0x119   : > { %4480 = vmatprep.subr.bf16.mxu1 %v4479_v18 }
 0x11b   : > { %4450 = vmatpush3.bf16.msra.mxu0 %v4447_v17  ;;  %v4495_v17 = vpack.c.bf16 %v1708_v16, %v1707_v15 }
 0x11c   : > { %4482 = vmatpush3.bf16.msra.mxu1 %v4479_v18  ;;  %4452 = vmatprep.subr.bf16.mxu0 %v4451_v23  ;;  %v1214_v18 = vld [vmem:[%s5665_s1 + $0xf8] sm:$0xff] }
 0x11d   : > { %4484 = vmatprep.subr.bf16.mxu1 %v4483_v24 }
 0x11f   : > { %4454 = vmatpush3.bf16.msra.mxu0 %v4451_v23  ;;  %v1995_v23 = vld [vmem:[%s6867_s28 + $0x40] sm:$0xff] }
 0x120   : > { %4486 = vmatpush3.bf16.msra.mxu1 %v4483_v24  ;;  %4456 = vmatprep.subr.bf16.mxu0 %v4455_v29  ;;  %v1996_v24 = vld [vmem:[%s6867_s28 + $0x48] sm:$0xff] }
 0x121   : > { %4488 = vmatprep.subr.bf16.mxu1 %v4487_v30  ;;  %v4543_v27 = vpack.c.bf16 %v1996_v24, %v1995_v23 }
 0x123   : > { %4458 = vmatpush3.bf16.msra.mxu0 %v4455_v29  ;;  %v1711_v29 = vld [vmem:[#allocation11 + $0x20] sm:$0xff] }
 0x124   : > { %4490 = vmatpush3.bf16.msra.mxu1 %v4487_v30  ;;  %4460 = vmatprep.subr.bf16.mxu0 %v4459_v12  ;;  %v1712_v30 = vld [vmem:[#allocation11 + $0x28] sm:$0xff] }
 0x125   : > { %4492 = vmatprep.subr.bf16.mxu1 %v4491_v33  ;;  %v4503_v32 = vpack.c.bf16 %v1712_v30, %v1711_v29 }
 0x127   : > { %4462 = vmatpush3.bf16.msra.mxu0 %v4459_v12 }
 0x128   : > { %4494 = vmatpush3.bf16.msra.mxu1 %v4491_v33  ;;  %4496 = vmatprep.subr.bf16.mxu0 %v4495_v17  ;;  %v1713_v33 = vld [vmem:[#allocation11 + $0x30] sm:$0xff] }
 0x129   : > { %4528 = vmatprep.subr.bf16.mxu1 %v4527_v36  ;;  %v4507_v37 = vpack.c.bf16 %v1714_v34, %v1713_v33 }
 0x12a   : > { %4040 = vmatmul.mubr.f32.vlgmr.msra.gmra.mrb[2].mxu0 %v1084_v20 }
 0x12b   : > { %4075 = vmatmul.mubr.f32.vlgmr.msra.gmra.mrb[2].mxu1 %v1184_v39  ;;  %4498 = vmatpush3.bf16.msra.mxu0 %v4495_v17  ;;  %v1715_v39 = vld [vmem:[#allocation11 + $0x40] sm:$0xff] }
 0x12c   : > { %4077 = vmatprep.mubr.f32.mxu1 %v1185_v40  ;;  %4530 = vmatpush3.bf16.msra.mxu1 %v4527_v36  ;;  %v2000_v36 = vld [vmem:[%s6867_s28 + $0x68] sm:$0xff] }
 0x12d   : > { %4532 = vmatprep.subr.bf16.mxu1 %v4531_v41  ;;  %4500 = vmatprep.subr.bf16.mxu0 %v4499_v25  ;;  %v4551_v38 = vpack.c.bf16 %v2000_v36, %v1999_v35  ;;  %v1716_v40 = vld [vmem:[#allocation11 + $0x48] sm:$0xff] }
 0x12e   : > { %v4511_v43 = vpack.c.bf16 %v1716_v40, %v1715_v39 }
 0x12f   : > { %4078 = vmatmul.mubr.f32.gmra.mrb[4].mxu1 %v1186_v44  ;;  %4502 = vmatpush3.bf16.msra.mxu0 %v4499_v25 }
 0x130   : > { %4080 = vmatprep.mubr.f32.mxu1 %v1187_v45  ;;  %4534 = vmatpush3.bf16.msra.mxu1 %v4531_v41  ;;  %v2001_v41 = vld [vmem:[%s6867_s28 + $0x70] sm:$0xff] }
 0x131   : > { %4536 = vmatprep.subr.bf16.mxu1 %v4535_v46  ;;  %4504 = vmatprep.subr.bf16.mxu0 %v4503_v32  ;;  %v4555_v44 = vpack.c.bf16 %v2002_v42, %v2001_v41  ;;  %v1717_v45 = vld [vmem:[#allocation11 + $0x50] sm:$0xff] }
 0x133   : > { %4081 = vmatmul.mubr.f32.gmra.mrb[6].mxu1 %v1188_v49  ;;  %4506 = vmatpush3.bf16.msra.mxu0 %v4503_v32  ;;  %v1720_v49 = vld [vmem:[#allocation11 + $0x68] sm:$0xff] }
 0x134   : > { %4083 = vmatprep.mubr.f32.mxu1 %v1189_v50  ;;  %4538 = vmatpush3.bf16.msra.mxu1 %v4535_v46  ;;  %v1718_v46 = vld [vmem:[#allocation11 + $0x58] sm:$0xff]  ;;  %v4519_v50 = vpack.c.bf16 %v1720_v49, %v1719_v48 }
 0x135   : > { %4540 = vmatprep.subr.bf16.mxu1 %v4539_v51  ;;  %4508 = vmatprep.subr.bf16.mxu0 %v4507_v37  ;;  %v4515_v47 = vpack.c.bf16 %v1718_v46, %v1717_v45 }
 0x137   : > { %4084 = vmatmul.mubr.f32.gmra.mrb[8].mxu1 %v1190_v52  ;;  %4510 = vmatpush3.bf16.msra.mxu0 %v4507_v37  ;;  %v1722_v52 = vld [vmem:[#allocation11 + $0x78] sm:$0xff] }
 0x138   : > { %4086 = vmatprep.mubr.f32.mxu1 %v1191_v53  ;;  %4542 = vmatpush3.bf16.msra.mxu1 %v4539_v51  ;;  %v1721_v51 = vld [vmem:[#allocation11 + $0x70] sm:$0xff] }
 0x139   : > { %4544 = vmatprep.subr.bf16.mxu1 %v4543_v27  ;;  %4512 = vmatprep.subr.bf16.mxu0 %v4511_v43  ;;  %v4523_v53 = vpack.c.bf16 %v1722_v52, %v1721_v51 }
 0x13b   : > { %4087 = vmatmul.mubr.f32.gmra.mrb[10].mxu1 %v1192_v54  ;;  %4514 = vmatpush3.bf16.msra.mxu0 %v4511_v43  ;;  %v5800_v54 = vld [vmem:[%s6868_s10] sm:$0xff] }
 0x13c   : > { %4089 = vmatprep.mubr.f32.mxu1 %v1193_v55  ;;  %4546 = vmatpush3.bf16.msra.mxu1 %v4543_v27  ;;  %v5110_v55 = vmov 1966171168  }
 0x13d   : > { %4548 = vmatprep.subr.bf16.mxu1 %v4547_v31  ;;  %4516 = vmatprep.subr.bf16.mxu0 %v4515_v47 }
 0x13f   : > { %4090 = vmatmul.mubr.f32.gmra.mrb[12].mxu1 %v1194_v56  ;;  %4518 = vmatpush3.bf16.msra.mxu0 %v4515_v47  ;;  %v1467_v56 = vunpack.c.l.s4 %v5110_v55 }
 0x140   : > { %4092 = vmatprep.mubr.f32.mxu1 %v1195_v57  ;;  %4550 = vmatpush3.bf16.msra.mxu1 %v4547_v31  ;;  %v1469_v57 = vlaneseq }
 0x141   : > { %4552 = vmatprep.subr.bf16.mxu1 %v4551_v38  ;;  %4520 = vmatprep.subr.bf16.mxu0 %v4519_v50 }
 0x143   : > { %4093 = vmatmul.mubr.f32.gmra.mrb[14].mxu1 %v1196_v58  ;;  %4522 = vmatpush3.bf16.msra.mxu0 %v4519_v50  ;;  %v1468_v58 = vunpack.c.0.s8 %v1467_v56 }
 0x144   : > { %4095 = vmatprep.mubr.f32.mxu1 %v1197_v59  ;;  %4554 = vmatpush3.bf16.msra.mxu1 %v4551_v38  ;;  %v1470_v59 = vshrl.u32 %v1469_v57, 7 }
 0x145   : > { %4556 = vmatprep.subr.bf16.mxu1 %v4555_v44  ;;  %4524 = vmatprep.subr.bf16.mxu0 %v4523_v53 }
 0x147   : > { %4096 = vmatmul.mubr.f32.gmra.mrb[16].mxu1 %v1198_v60  ;;  %4526 = vmatpush3.bf16.msra.mxu0 %v4523_v53  ;;  %v3635_v60 = vld [vmem:[%s6869_s19] ss:$0 sm:$0xff]  ;;  %s6886_s19 = sld [smem:[#allocation44_spill]] }
 0x148   : > { %4098 = vmatprep.mubr.f32.mxu1 %v1199_v61  ;;  %4558 = vmatpush3.bf16.msra.mxu1 %v4555_v44 }
 0x149   : > { %4282 = vmatprep.subr.mxu0 %v5800_v54 }
 0x14b   : > { %4099 = vmatmul.mubr.f32.gmra.mrb[18].mxu1 %v1200_v62 }
 0x14c   : > { %4101 = vmatprep.mubr.f32.mxu1 %v1201_v63  ;;  %v5806_v63 = vsub.s32 %v1468_v58, %v1470_v59 }
 0x14f   : > { %4102 = vmatmul.mubr.f32.gmra.mrb[20].mxu1 %v1202_v0 }
 0x150   : > { %4104 = vmatprep.mubr.f32.mxu1 %v1203_v1 }
 0x153   : > { %4105 = vmatmul.mubr.f32.gmra.mrb[22].mxu1 %v1204_v2 }
 0x154   : > { %4107 = vmatprep.mubr.f32.mxu1 %v1205_v3 }
 0x157   : > { %4108 = vmatmul.mubr.f32.gmra.mrb[24].mxu1 %v1206_v4 }
 0x158   : > { %4110 = vmatprep.mubr.f32.mxu1 %v1207_v5  ;;  %v3636_v5 = vld [vmem:[%s6870_s30] ss:$0 sm:$0xff] }
 0x15b   : > { %4111 = vmatmul.mubr.f32.gmra.mrb[26].mxu1 %v1208_v6 }
 0x15c   : > { %4113 = vmatprep.mubr.f32.mxu1 %v1209_v7 }
 0x15f   : > { %4114 = vmatmul.mubr.f32.gmra.mrb[28].mxu1 %v1210_v8 }
 0x160   : > { %4116 = vmatprep.mubr.f32.mxu1 %v1211_v9  ;;  %v5812_v9 = vsub.s32 0, %v1470_v59 }
 0x163   : > { %4117 = vmatmul.mubr.f32.gmra.mrb[30].mxu1 %v1212_v13 }
 0x164   : > { %4119 = vmatprep.mubr.f32.mxu1 %v1213_v14 }
 0x167   : > { %4120 = vmatmul.mubr.f32.gmra.mrb[32].mxu1 %v1214_v18 }
 0x1dd   : > { %v3971_v61 = vpop.f32.mrb[0].mxu0 }
 0x1de   : > { %v978_v62 = vadd.f32 %v3971_v61, %v3635_v60  ;;  %v4006_v0 = vpop.f32.mrb[0].mxu1  ;;  %v972_v1 = vpop.f32.mrb[1].mxu0 }
 0x1df   : > { %v973_v2 = vadd.f32 %v3635_v60, %v972_v1  ;;  %v1074_v3 = vpop.f32.mrb[1].mxu1  ;;  %v5817_v15 = vadd.f32 %v4006_v0, %v3636_v5 }
 0x1e0   : > { %v982_v4 = vmul.f32 0.25, %v978_v62  ;;  %v5821_v19 = vadd.f32 %v3636_v5, %v1074_v3 }
 0x1e1   : > { %v981_v6 = vmul.f32 0.25, %v973_v2 }
 0x1e2   : > { %v1514_v7 = vcombine.high %v982_v4, %v982_v4  ;;  %v1521_v8 = vrot.slane %v982_v4, %v5806_v63 }
 0x1e3   : > { %v1465_v10 = vcombine.high %v981_v6, %v981_v6  ;;  %v1472_v11 = vrot.slane %v981_v6, %v5806_v63 }
 0x1e4   : > { %v1528_v12 = vrot.slane %v1514_v7, %v5806_v63  ;;  %v1529_v13 = vcombine.high %v1521_v8, %v1521_v8  ;;  %v1537_v14 = vrot.slane %v1521_v8, %v5806_v63 }
 0x1e5   : > { %v1479_v16 = vrot.slane %v1465_v10, %v5806_v63  ;;  %v1480_v17 = vcombine.high %v1472_v11, %v1472_v11  ;;  %v1488_v18 = vrot.slane %v1472_v11, %v5806_v63 }
 0x1e6   : > { %v1530_v20 = vcombine.high %v1528_v12, %v1528_v12  ;;  %v1544_v21 = vrot.slane %v1528_v12, %v5806_v63  ;;  %v1551_v22 = vrot.slane %v1529_v13, %v5806_v63  ;;  %v1559_v23 = vcombine.high %v1537_v14, %v1537_v14 }
 0x1e7   : > { %v1481_v24 = vcombine.high %v1479_v16, %v1479_v16  ;;  %v1495_v25 = vrot.slane %v1479_v16, %v5806_v63  ;;  %v1502_v26 = vrot.slane %v1480_v17, %v5806_v63  ;;  %v1510_v27 = vcombine.high %v1488_v18, %v1488_v18 }
 0x1e8   : > { %v1566_v28 = vrot.slane %v1488_v18, %v5812_v9  ;;  %v1598_v29 = vrot.slane %v1537_v14, %v5812_v9  ;;  %v1602_v30 = vrot.slane %v1551_v22, %v5812_v9  ;;  %v1606_v31 = vrot.slane %v1559_v23, %v5812_v9 }
 0x1e9   : > { %v1570_v32 = vrot.slane %v1502_v26, %v5812_v9  ;;  %v1574_v33 = vrot.slane %v1510_v27, %v5812_v9  ;;  %v1512_v34 = vcombine.high %v1502_v26, %v1502_v26  ;;  %v1582_v35 = vrot.slane %v1495_v25, %v5812_v9 }
 0x1ea   : > { %v1644_v36 = vmul.f32 %v1566_v28, %v5817_v15  ;;  %v1643_v37 = vmul.f32 %v1566_v28, %v5821_v19  ;;  %v1509_v38 = vrot.slane %v1481_v24, %v5806_v63  ;;  %v1511_v39 = vcombine.high %v1495_v25, %v1495_v25  ;;  %v5936_v24 = vld [vmem:[%s6871_s16] ss:$0 sm:$0xff]  ;;  %s6659_s16 = scalar_lea.hbm %s6890_s20, %s3687_s2 }
 0x1eb   : > { %v1646_v40 = vmul.f32 %v1570_v32, %v5817_v15  ;;  %v1645_v41 = vmul.f32 %v1570_v32, %v5821_v19  ;;  %v5840_v42 = vmul.f32 %v1574_v33, %v5817_v15  ;;  %v5843_v43 = vmul.f32 %v1574_v33, %v5821_v19 }
 0x1ec   : > { %v1578_v44 = vrot.slane %v1512_v34, %v5812_v9  ;;  %v5847_v45 = vmul.f32 %v1582_v35, %v5817_v15  ;;  %v5850_v46 = vmul.f32 %v1582_v35, %v5821_v19  ;;  %v1586_v47 = vrot.slane %v1509_v38, %v5812_v9 }
 0x1ed   : > { %v1590_v48 = vrot.slane %v1511_v39, %v5812_v9  ;;  %v1513_v49 = vcombine.high %v1509_v38, %v1509_v38  ;;  %v5855_v50 = vmul.f32 %v1598_v29, %v5817_v15  ;;  %v5858_v51 = vmul.f32 %v1598_v29, %v5821_v19 }
 0x1ee   : > { %v5861_v52 = vmul.f32 %v1578_v44, %v5817_v15  ;;  %v5864_v53 = vmul.f32 %v1578_v44, %v5821_v19  ;;  %v5867_v55 = vmul.f32 %v1586_v47, %v5817_v15  ;;  %v5870_v56 = vmul.f32 %v1586_v47, %v5821_v19 }
 0x1ef   : > { %v5873_v57 = vmul.f32 %v1590_v48, %v5817_v15  ;;  %v5876_v58 = vmul.f32 %v1590_v48, %v5821_v19  ;;  %v1594_v59 = vrot.slane %v1513_v49, %v5812_v9  ;;  %v5880_v60 = vmul.f32 %v1602_v30, %v5817_v15 }
 0x1f0   : > { %v5883_v61 = vmul.f32 %v1602_v30, %v5821_v19  ;;  %v5886_v62 = vmul.f32 %v1606_v31, %v5817_v15  ;;  %v5889_v0 = vmul.f32 %v1606_v31, %v5821_v19  ;;  %v1561_v1 = vcombine.high %v1551_v22, %v1551_v22 }
 0x1f1   : > { %v5892_v2 = vmul.f32 %v1594_v59, %v5817_v15  ;;  %v5895_v3 = vmul.f32 %v1594_v59, %v5821_v19  ;;  %v1614_v4 = vrot.slane %v1544_v21, %v5812_v9  ;;  %v1558_v5 = vrot.slane %v1530_v20, %v5806_v63 }
 0x1f2   : > { %v1610_v6 = vrot.slane %v1561_v1, %v5812_v9  ;;  %v1560_v7 = vcombine.high %v1544_v21, %v1544_v21 }
 0x1f3   : > { %v5901_v8 = vmul.f32 %v1614_v4, %v5817_v15  ;;  %v5904_v10 = vmul.f32 %v1614_v4, %v5821_v19  ;;  %v1618_v11 = vrot.slane %v1558_v5, %v5812_v9  ;;  %v1562_v12 = vcombine.high %v1558_v5, %v1558_v5 }
 0x1f4   : > { %v5908_v13 = vmul.f32 %v1610_v6, %v5817_v15  ;;  %v5911_v14 = vmul.f32 %v1610_v6, %v5821_v19  ;;  %v1622_v63 = vrot.slane %v1560_v7, %v5812_v9 }
 0x1f5   : > { %v5915_v16 = vmul.f32 %v1618_v11, %v5817_v15  ;;  %v5918_v17 = vmul.f32 %v1618_v11, %v5821_v19  ;;  %v1626_v18 = vrot.slane %v1562_v12, %v5812_v9 }
 0x1f6   : > { %v5922_v20 = vmul.f32 %v1622_v63, %v5817_v15  ;;  %v5925_v21 = vmul.f32 %v1622_v63, %v5821_v19 }
 0x1f7   : > { %v5928_v22 = vmul.f32 %v1626_v18, %v5817_v15  ;;  %v5931_v23 = vmul.f32 %v1626_v18, %v5821_v19 }
 0x1fe   : > { %v4076_v25 = vpop.f32.mrb[2].mxu1 }
 0x1ff   : > { %v1310_v9 = vadd.f32 %v4076_v25, %v5936_v24  ;;  %v1304_v26 = vpop.f32.mrb[3].mxu1 }
 0x200   : > { %v1305_v27 = vadd.f32 %v5936_v24, %v1304_v26 }
 0x201   : > { %v1676_v28 = vmul.f32 %v1644_v36, %v1310_v9 }
 0x202   : > { %v1675_v29 = vmul.f32 %v1643_v37, %v1305_v27  ;;  %v4079_v30 = vpop.f32.mrb[4].mxu1 }
 0x203   : > { %v1320_v15 = vadd.f32 %v4079_v30, %v5936_v24  ;;  %v1314_v31 = vpop.f32.mrb[5].mxu1 }
 0x204   : > { %v1315_v19 = vadd.f32 %v5936_v24, %v1314_v31  ;;  %4154 = vmatprep.mubr.f32.mxu0 %v1675_v29  ;;  %4234 = vmatprep.mubr.f32.mxu1 %v1675_v29 }
 0x205   : > { %v1678_v32 = vmul.f32 %v1646_v40, %v1320_v15  ;;  %4155 = vmatmul.mubr.f32.vlgmr.msra.gmra.mrb[4].mxu0 %v1676_v28  ;;  %4235 = vmatmul.mubr.f32.vlgmr.msra.gmra.mrb[34].mxu1 %v1676_v28 }
 0x206   : > { %v1677_v33 = vmul.f32 %v1645_v41, %v1315_v19  ;;  %v4082_v34 = vpop.f32.mrb[6].mxu1  ;;  %4283 = vmatpush3.msra.mxu0 %v5800_v54 }
 0x207   : > { %v1330_v35 = vadd.f32 %v4082_v34, %v5936_v24  ;;  %v1324_v38 = vpop.f32.mrb[7].mxu1 }
 0x208   : > { %v1325_v36 = vadd.f32 %v5936_v24, %v1324_v38  ;;  %4157 = vmatprep.mubr.f32.mxu0 %v1677_v33  ;;  %4237 = vmatprep.mubr.f32.mxu1 %v1677_v33 }
 0x209   : > { %v1680_v37 = vmul.f32 %v5840_v42, %v1330_v35  ;;  %4158 = vmatmul.mubr.f32.gmra.mrb[6].mxu0 %v1678_v32  ;;  %4238 = vmatmul.mubr.f32.gmra.mrb[36].mxu1 %v1678_v32 }
 0x20a   : > { %v1679_v39 = vmul.f32 %v5843_v43, %v1325_v36  ;;  %v4085_v40 = vpop.f32.mrb[8].mxu1 }
 0x20b   : > { %v1340_v44 = vadd.f32 %v4085_v40, %v5936_v24  ;;  %v1334_v41 = vpop.f32.mrb[9].mxu1 }
 0x20c   : > { %v1335_v47 = vadd.f32 %v5936_v24, %v1334_v41  ;;  %4160 = vmatprep.mubr.f32.mxu0 %v1679_v39  ;;  %4240 = vmatprep.mubr.f32.mxu1 %v1679_v39 }
 0x20d   : > { %v1682_v54 = vmul.f32 %v5861_v52, %v1340_v44  ;;  %4161 = vmatmul.mubr.f32.gmra.mrb[8].mxu0 %v1680_v37  ;;  %4241 = vmatmul.mubr.f32.gmra.mrb[38].mxu1 %v1680_v37 }
 0x20e   : > { %v1681_v48 = vmul.f32 %v5864_v53, %v1335_v47  ;;  %v4088_v49 = vpop.f32.mrb[10].mxu1 }
 0x20f   : > { %v1350_v42 = vadd.f32 %v4088_v49, %v5936_v24  ;;  %v1344_v59 = vpop.f32.mrb[11].mxu1 }
 0x210   : > { %v1345_v43 = vadd.f32 %v5936_v24, %v1344_v59  ;;  %4163 = vmatprep.mubr.f32.mxu0 %v1681_v48  ;;  %4243 = vmatprep.mubr.f32.mxu1 %v1681_v48 }
 0x211   : > { %v1684_v1 = vmul.f32 %v5847_v45, %v1350_v42  ;;  %4164 = vmatmul.mubr.f32.gmra.mrb[10].mxu0 %v1682_v54  ;;  %4244 = vmatmul.mubr.f32.gmra.mrb[40].mxu1 %v1682_v54 }
 0x212   : > { %v1683_v4 = vmul.f32 %v5850_v46, %v1345_v43  ;;  %v4091_v5 = vpop.f32.mrb[12].mxu1 }
 0x213   : > { %v1360_v52 = vadd.f32 %v4091_v5, %v5936_v24  ;;  %v1354_v6 = vpop.f32.mrb[13].mxu1 }
 0x214   : > { %v1355_v53 = vadd.f32 %v5936_v24, %v1354_v6  ;;  %4166 = vmatprep.mubr.f32.mxu0 %v1683_v4  ;;  %4246 = vmatprep.mubr.f32.mxu1 %v1683_v4  ;;  %v5994_v6 = vpop.f32.mrb[2].mxu0 }
 0x215   : > { %v1686_v7 = vmul.f32 %v5867_v55, %v1360_v52  ;;  %4167 = vmatmul.mubr.f32.gmra.mrb[12].mxu0 %v1684_v1  ;;  %4247 = vmatmul.mubr.f32.gmra.mrb[42].mxu1 %v1684_v1  ;;  %6872 = vst [vmem:[#allocation29_spill] sm:$0xff] %v5994_v6 }
 0x216   : > { %v1685_v11 = vmul.f32 %v5870_v56, %v1355_v53  ;;  %v4094_v12 = vpop.f32.mrb[14].mxu1 }
 0x217   : > { %v1370_v45 = vadd.f32 %v4094_v12, %v5936_v24  ;;  %v1364_v63 = vpop.f32.mrb[15].mxu1 }
 0x218   : > { %v1365_v46 = vadd.f32 %v5936_v24, %v1364_v63  ;;  %4169 = vmatprep.mubr.f32.mxu0 %v1685_v11  ;;  %4249 = vmatprep.mubr.f32.mxu1 %v1685_v11 }
 0x219   : > { %v1688_v18 = vmul.f32 %v5873_v57, %v1370_v45  ;;  %4170 = vmatmul.mubr.f32.gmra.mrb[14].mxu0 %v1686_v7  ;;  %4250 = vmatmul.mubr.f32.gmra.mrb[44].mxu1 %v1686_v7 }
 0x21a   : > { %v1687_v25 = vmul.f32 %v5876_v58, %v1365_v46  ;;  %v4097_v9 = vpop.f32.mrb[16].mxu1 }
 0x21b   : > { %v1380_v55 = vadd.f32 %v4097_v9, %v5936_v24  ;;  %v1374_v26 = vpop.f32.mrb[17].mxu1 }
 0x21c   : > { %v1375_v56 = vadd.f32 %v5936_v24, %v1374_v26  ;;  %4172 = vmatprep.mubr.f32.mxu0 %v1687_v25  ;;  %4252 = vmatprep.mubr.f32.mxu1 %v1687_v25 }
 0x21d   : > { %v1690_v27 = vmul.f32 %v5892_v2, %v1380_v55  ;;  %4173 = vmatmul.mubr.f32.gmra.mrb[16].mxu0 %v1688_v18  ;;  %4253 = vmatmul.mubr.f32.gmra.mrb[46].mxu1 %v1688_v18 }
 0x21e   : > { %v1689_v28 = vmul.f32 %v5895_v3, %v1375_v56  ;;  %v4100_v29 = vpop.f32.mrb[18].mxu1  ;;  %v2231_v56 = vld [vmem:[%s6008_s27 + $0x18] sm:$0xff] }
 0x21f   : > { %v1390_v57 = vadd.f32 %v4100_v29, %v5936_v24  ;;  %v1384_v30 = vpop.f32.mrb[19].mxu1 }
 0x220   : > { %v1385_v58 = vadd.f32 %v5936_v24, %v1384_v30  ;;  %4175 = vmatprep.mubr.f32.mxu0 %v1689_v28  ;;  %4255 = vmatprep.mubr.f32.mxu1 %v1689_v28  ;;  %v2230_v28 = vld [vmem:[%s6008_s27 + $0x10] sm:$0xff] }
 0x221   : > { %v1692_v15 = vmul.f32 %v5855_v50, %v1390_v57  ;;  %4176 = vmatmul.mubr.f32.gmra.mrb[18].mxu0 %v1690_v27  ;;  %4256 = vmatmul.mubr.f32.gmra.mrb[48].mxu1 %v1690_v27 }
 0x222   : > { %v1691_v31 = vmul.f32 %v5858_v51, %v1385_v58  ;;  %v4103_v19 = vpop.f32.mrb[20].mxu1 }
 0x223   : > { %v1400_v2 = vadd.f32 %v4103_v19, %v5936_v24  ;;  %v1394_v32 = vpop.f32.mrb[21].mxu1 }
 0x224   : > { %v1395_v3 = vadd.f32 %v5936_v24, %v1394_v32  ;;  %4178 = vmatprep.mubr.f32.mxu0 %v1691_v31  ;;  %4258 = vmatprep.mubr.f32.mxu1 %v1691_v31 }
 0x225   : > { %v1694_v33 = vmul.f32 %v5880_v60, %v1400_v2  ;;  %4179 = vmatmul.mubr.f32.gmra.mrb[20].mxu0 %v1692_v15  ;;  %4259 = vmatmul.mubr.f32.gmra.mrb[50].mxu1 %v1692_v15 }
 0x226   : > { %v1693_v34 = vmul.f32 %v5883_v61, %v1395_v3  ;;  %v4106_v35 = vpop.f32.mrb[22].mxu1 }
 0x227   : > { %v1410_v50 = vadd.f32 %v4106_v35, %v5936_v24  ;;  %v1404_v38 = vpop.f32.mrb[23].mxu1 }
 0x228   : > { %v1405_v51 = vadd.f32 %v5936_v24, %v1404_v38  ;;  %4181 = vmatprep.mubr.f32.mxu0 %v1693_v34  ;;  %4261 = vmatprep.mubr.f32.mxu1 %v1693_v34 }
 0x229   : > { %v1696_v36 = vmul.f32 %v5886_v62, %v1410_v50  ;;  %4182 = vmatmul.mubr.f32.gmra.mrb[22].mxu0 %v1694_v33  ;;  %4262 = vmatmul.mubr.f32.gmra.mrb[52].mxu1 %v1694_v33  ;;  %v2233_v33 = vld [vmem:[%s6008_s27 + $0x28] sm:$0xff]  ;;  %v2232_v50 = vld [vmem:[%s6008_s27 + $0x20] sm:$0xff] }
 0x22a   : > { %v1695_v37 = vmul.f32 %v5889_v0, %v1405_v51  ;;  %v4109_v39 = vpop.f32.mrb[24].mxu1 }
 0x22b   : > { %v1420_v60 = vadd.f32 %v4109_v39, %v5936_v24  ;;  %v1414_v40 = vpop.f32.mrb[25].mxu1 }
 0x22c   : > { %v1415_v61 = vadd.f32 %v5936_v24, %v1414_v40  ;;  %4184 = vmatprep.mubr.f32.mxu0 %v1695_v37  ;;  %4264 = vmatprep.mubr.f32.mxu1 %v1695_v37 }
 0x22d   : > { %v1698_v44 = vmul.f32 %v5908_v13, %v1420_v60  ;;  %4185 = vmatmul.mubr.f32.gmra.mrb[24].mxu0 %v1696_v36  ;;  %4265 = vmatmul.mubr.f32.gmra.mrb[54].mxu1 %v1696_v36 }
 0x22e   : > { %v1697_v41 = vmul.f32 %v5911_v14, %v1415_v61  ;;  %v4112_v47 = vpop.f32.mrb[26].mxu1 }
 0x22f   : > { %v1430_v62 = vadd.f32 %v4112_v47, %v5936_v24  ;;  %v1424_v54 = vpop.f32.mrb[27].mxu1 }
 0x230   : > { %v1425_v0 = vadd.f32 %v5936_v24, %v1424_v54  ;;  %4187 = vmatprep.mubr.f32.mxu0 %v1697_v41  ;;  %4267 = vmatprep.mubr.f32.mxu1 %v1697_v41 }
 0x231   : > { %v1700_v48 = vmul.f32 %v5901_v8, %v1430_v62  ;;  %4188 = vmatmul.mubr.f32.gmra.mrb[26].mxu0 %v1698_v44  ;;  %4268 = vmatmul.mubr.f32.gmra.mrb[56].mxu1 %v1698_v44 }
 0x232   : > { %v1699_v49 = vmul.f32 %v5904_v10, %v1425_v0  ;;  %v4115_v42 = vpop.f32.mrb[28].mxu1 }
 0x233   : > { %v1440_v13 = vadd.f32 %v4115_v42, %v5936_v24  ;;  %v1434_v59 = vpop.f32.mrb[29].mxu1 }
 0x234   : > { %v1435_v14 = vadd.f32 %v5936_v24, %v1434_v59  ;;  %4190 = vmatprep.mubr.f32.mxu0 %v1699_v49  ;;  %4270 = vmatprep.mubr.f32.mxu1 %v1699_v49  ;;  %v2234_v49 = vld [vmem:[%s6008_s27 + $0x30] sm:$0xff] }
 0x235   : > { %v1702_v43 = vmul.f32 %v5915_v16, %v1440_v13  ;;  %4191 = vmatmul.mubr.f32.gmra.mrb[28].mxu0 %v1700_v48  ;;  %4271 = vmatmul.mubr.f32.gmra.mrb[58].mxu1 %v1700_v48  ;;  %v2235_v48 = vld [vmem:[%s6008_s27 + $0x38] sm:$0xff] }
 0x236   : > { %v1701_v1 = vmul.f32 %v5918_v17, %v1435_v14  ;;  %v4118_v4 = vpop.f32.mrb[30].mxu1  ;;  %v5997_v17 = vpop.f32.mrb[3].mxu0 }
 0x237   : > { %v1450_v8 = vadd.f32 %v4118_v4, %v5936_v24  ;;  %v1444_v5 = vpop.f32.mrb[31].mxu1  ;;  %6873 = vst [vmem:[#allocation30_spill] sm:$0xff] %v5997_v17 }
 0x238   : > { %v1445_v10 = vadd.f32 %v5936_v24, %v1444_v5  ;;  %4193 = vmatprep.mubr.f32.mxu0 %v1701_v1  ;;  %4273 = vmatprep.mubr.f32.mxu1 %v1701_v1 }
 0x239   : > { %v1704_v52 = vmul.f32 %v5922_v20, %v1450_v8  ;;  %4194 = vmatmul.mubr.f32.gmra.mrb[30].mxu0 %v1702_v43  ;;  %4274 = vmatmul.mubr.f32.gmra.mrb[60].mxu1 %v1702_v43 }
 0x23a   : > { %v1703_v16 = vmul.f32 %v5925_v21, %v1445_v10  ;;  %v4121_v53 = vpop.f32.mrb[32].mxu1  ;;  %v6014_v21 = vld [vmem:[%s6875_s17] ss:$0 sm:$0xff] }
 0x23b   : > { %v1460_v7 = vadd.f32 %v4121_v53, %v5936_v24  ;;  %v1454_v11 = vpop.f32.mrb[33].mxu1 }
 0x23c   : > { %v1455_v12 = vadd.f32 %v5936_v24, %v1454_v11  ;;  %4196 = vmatprep.mubr.f32.mxu0 %v1703_v16  ;;  %4276 = vmatprep.mubr.f32.mxu1 %v1703_v16 }
 0x23d   : > { %v1706_v20 = vmul.f32 %v5928_v22, %v1460_v7  ;;  %4197 = vmatmul.mubr.f32.gmra.mrb[32].mxu0 %v1704_v52  ;;  %4277 = vmatmul.mubr.f32.gmra.mrb[62].mxu1 %v1704_v52  ;;  %v2229_v22 = vld [vmem:[%s6008_s27 + $0x8] sm:$0xff] }
 0x23e   : > { %v1705_v45 = vmul.f32 %v5931_v23, %v1455_v12  ;;  %v2228_v23 = vld [vmem:[%s6008_s27] sm:$0xff]  ;;  %v2237_v12 = vld [vmem:[%s6008_s27 + $0x48] sm:$0xff] }
 0x240   : > { %4199 = vmatprep.mubr.f32.mxu0 %v1705_v45  ;;  %4279 = vmatprep.mubr.f32.mxu1 %v1705_v45 }
 0x241   : > { %4200 = vmatmul.mubr.f32.gmra.mrb[34].mxu0 %v1706_v20  ;;  %4280 = vmatmul.mubr.f32.gmra.mrb[64].mxu1 %v1706_v20  ;;  %v2236_v20 = vld [vmem:[%s6008_s27 + $0x40] sm:$0xff] }
 0x2d8   : > { %v4156_v24 = vpop.f32.mrb[4].mxu0  ;;  %v4236_v63 = vpop.f32.mrb[34].mxu1 }
 0x2d9   : > { %v1802_v46 = vadd.f32 %v4156_v24, %v6014_v21  ;;  %v6019_v18 = vadd.f32 %v4236_v63, %v2229_v22  ;;  %v1796_v25 = vpop.f32.mrb[5].mxu0  ;;  %v2069_v9 = vpop.f32.mrb[35].mxu1 }
 0x2da   : > { %v1797_v55 = vadd.f32 %v6014_v21, %v1796_v25  ;;  %v6022_v26 = vadd.f32 %v2228_v23, %v2069_v9 }
 0x2db   : > { %1956 = vst [vmem:[%s6025_s0 + $0x8] sm:$0xff] %v1802_v46  ;;  %v2294_v27 = vsel %vm2292_vm0, %v6019_v18, -inf }
 0x2dc   : > { %1955 = vst [vmem:[%s6025_s0] sm:$0xff] %v1797_v55  ;;  %v2293_v29 = vsel %vm2292_vm0, %v6022_v26, -inf  ;;  %v4159_v57 = vpop.f32.mrb[6].mxu0  ;;  %v4239_v30 = vpop.f32.mrb[36].mxu1 }
 0x2dd   : > { %v2295_v58 = vmax.f32 %v2293_v29, %v2294_v27  ;;  %v1812_v15 = vadd.f32 %v4159_v57, %v6014_v21  ;;  %v6035_v31 = vadd.f32 %v4239_v30, %v2231_v56  ;;  %v1806_v19 = vpop.f32.mrb[7].mxu0  ;;  %v2079_v2 = vpop.f32.mrb[37].mxu1 }
 0x2de   : > { %v1807_v32 = vadd.f32 %v6014_v21, %v1806_v19  ;;  %v6038_v3 = vadd.f32 %v2230_v28, %v2079_v2  ;;  %v2239_v2 = vld [vmem:[%s6008_s27 + $0x58] sm:$0xff] }
 0x2df   : > { %v2296_v34 = vrot.slane %v2295_v58, 4  ;;  %1958 = vst [vmem:[%s6025_s0 + $0x18] sm:$0xff] %v1812_v15  ;;  %v2303_v35 = vsel %vm2292_vm0, %v6035_v31, -inf }
 0x2e0   : > { %1957 = vst [vmem:[%s6025_s0 + $0x10] sm:$0xff] %v1807_v32  ;;  %v2302_v38 = vsel %vm2292_vm0, %v6038_v3, -inf  ;;  %v4162_v51 = vpop.f32.mrb[8].mxu0  ;;  %v4242_v36 = vpop.f32.mrb[38].mxu1 }
 0x2e1   : > { %v2297_v37 = vmax.f32 %v2295_v58, %v2296_v34  ;;  %v2304_v39 = vmax.f32 %v2302_v38, %v2303_v35  ;;  %v1822_v60 = vadd.f32 %v4162_v51, %v6014_v21  ;;  %v6049_v40 = vadd.f32 %v4242_v36, %v2233_v33  ;;  %v1816_v61 = vpop.f32.mrb[9].mxu0  ;;  %v2089_v44 = vpop.f32.mrb[39].mxu1 }
 0x2e2   : > { %v1817_v41 = vadd.f32 %v6014_v21, %v1816_v61  ;;  %v6052_v47 = vadd.f32 %v2232_v50, %v2089_v44 }
 0x2e3   : > { %v2298_v62 = vrot.slane %v2297_v37, 2  ;;  %v2305_v54 = vrot.slane %v2304_v39, 4  ;;  %1960 = vst [vmem:[%s6025_s0 + $0x28] sm:$0xff] %v1822_v60  ;;  %v2312_v0 = vsel %vm2292_vm0, %v6049_v40, -inf }
 0x2e4   : > { %1959 = vst [vmem:[%s6025_s0 + $0x20] sm:$0xff] %v1817_v41  ;;  %v2311_v42 = vsel %vm2292_vm0, %v6052_v47, -inf  ;;  %v4165_v13 = vpop.f32.mrb[10].mxu0  ;;  %v4245_v59 = vpop.f32.mrb[40].mxu1 }
 0x2e5   : > { %v2299_v14 = vmax.f32 %v2297_v37, %v2298_v62  ;;  %v2306_v43 = vmax.f32 %v2304_v39, %v2305_v54  ;;  %v2313_v1 = vmax.f32 %v2311_v42, %v2312_v0  ;;  %v1832_v4 = vadd.f32 %v4165_v13, %v6014_v21  ;;  %v1826_v8 = vpop.f32.mrb[11].mxu0  ;;  %v2099_v5 = vpop.f32.mrb[41].mxu1  ;;  %v2238_v0 = vld [vmem:[%s6008_s27 + $0x50] sm:$0xff] }
 0x2e6   : > { %v6063_v10 = vadd.f32 %v4245_v59, %v2235_v48  ;;  %v1827_v52 = vadd.f32 %v6014_v21, %v1826_v8  ;;  %v6066_v16 = vadd.f32 %v2234_v49, %v2099_v5 }
 0x2e7   : > { %v2300_v53 = vrot.slane %v2299_v14, 1  ;;  %v2307_v7 = vrot.slane %v2306_v43, 2  ;;  %v2314_v11 = vrot.slane %v2313_v1, 4  ;;  %1962 = vst [vmem:[%s6025_s0 + $0x38] sm:$0xff] %v1832_v4 }
 0x2e8   : > { %v2321_v45 = vsel %vm2292_vm0, %v6063_v10, -inf  ;;  %1961 = vst [vmem:[%s6025_s0 + $0x30] sm:$0xff] %v1827_v52  ;;  %v2320_v22 = vsel %vm2292_vm0, %v6066_v16, -inf  ;;  %v4168_v23 = vpop.f32.mrb[12].mxu0  ;;  %v4248_v24 = vpop.f32.mrb[42].mxu1 }
 0x2e9   : > { %v2301_v63 = vmax.f32 %v2299_v14, %v2300_v53  ;;  %v2308_v46 = vmax.f32 %v2306_v43, %v2307_v7  ;;  %v2315_v25 = vmax.f32 %v2313_v1, %v2314_v11  ;;  %v2322_v9 = vmax.f32 %v2320_v22, %v2321_v45  ;;  %v1836_v55 = vpop.f32.mrb[13].mxu0  ;;  %v2109_v56 = vpop.f32.mrb[43].mxu1  ;;  %v2241_v14 = vld [vmem:[%s6008_s27 + $0x68] sm:$0xff]  ;;  %v2240_v45 = vld [vmem:[%s6008_s27 + $0x60] sm:$0xff] }
 0x2ea   : > { %v1842_v27 = vadd.f32 %v4168_v23, %v6014_v21  ;;  %v6077_v28 = vadd.f32 %v4248_v24, %v2237_v12  ;;  %v1837_v29 = vadd.f32 %v6014_v21, %v1836_v55  ;;  %v6080_v57 = vadd.f32 %v2236_v20, %v2109_v56 }
 0x2eb   : > { %v2437_v30 = vsub.f32 %v6022_v26, %v2301_v63  ;;  %v2438_v58 = vsub.f32 %v6019_v18, %v2301_v63  ;;  %v2309_v15 = vrot.slane %v2308_v46, 1  ;;  %v2316_v19 = vrot.slane %v2315_v25, 2 }
 0x2ec   : > { %v2323_v32 = vrot.slane %v2322_v9, 4  ;;  %1964 = vst [vmem:[%s6025_s0 + $0x48] sm:$0xff] %v1842_v27  ;;  %v2330_v33 = vsel %vm2292_vm0, %v6077_v28, -inf  ;;  %1963 = vst [vmem:[%s6025_s0 + $0x40] sm:$0xff] %v1837_v29  ;;  %v2329_v34 = vsel %vm2292_vm0, %v6080_v57, -inf  ;;  %v4171_v35 = vpop.f32.mrb[14].mxu0 }
 0x2ed   : > { %v4251_v50 = vpop.f32.mrb[44].mxu1  ;;  %v2469_v38 = vmul.f32 1.442695, %v2437_v30  ;;  %v2471_v51 = vmul.f32 1.442695, %v2438_v58  ;;  %v2310_v26 = vmax.f32 %v2308_v46, %v2309_v15  ;;  %v2317_v18 = vmax.f32 %v2315_v25, %v2316_v19  ;;  %v1846_v36 = vpop.f32.mrb[15].mxu0 }
 0x2ee   : > { %v2119_v37 = vpop.f32.mrb[45].mxu1  ;;  %v2324_v39 = vmax.f32 %v2322_v9, %v2323_v32  ;;  %v2331_v60 = vmax.f32 %v2329_v34, %v2330_v33  ;;  %v1852_v61 = vadd.f32 %v4171_v35, %v6014_v21  ;;  %v6092_v44 = vadd.f32 %v4251_v50, %v2239_v2  ;;  %v2243_v25 = vld [vmem:[%s6008_s27 + $0x78] sm:$0xff]  ;;  %v2242_v50 = vld [vmem:[%s6008_s27 + $0x70] sm:$0xff] }
 0x2ef   : > { %4704 = vpow2.f32 %v2469_v38  ;;  %v2439_v41 = vsub.f32 %v6038_v3, %v2310_v26  ;;  %v2440_v62 = vsub.f32 %v6035_v31, %v2310_v26  ;;  %v2318_v54 = vrot.slane %v2317_v18, 1 }
 0x2f0   : > { %4706 = vpow2.f32 %v2471_v51  ;;  %v2325_v48 = vrot.slane %v2324_v39, 2  ;;  %v2332_v49 = vrot.slane %v2331_v60, 4  ;;  %1966 = vst [vmem:[%s6025_s0 + $0x58] sm:$0xff] %v1852_v61  ;;  %v2339_v42 = vsel %vm2292_vm0, %v6092_v44, -inf  ;;  %v4174_v13 = vpop.f32.mrb[16].mxu0  ;;  %v4254_v59 = vpop.f32.mrb[46].mxu1 }
 0x2f1   : > { %v2473_v43 = vmul.f32 1.442695, %v2439_v41  ;;  %v2475_v1 = vmul.f32 1.442695, %v2440_v62  ;;  %v2319_v4 = vmax.f32 %v2317_v18, %v2318_v54  ;;  %v1847_v3 = vadd.f32 %v6014_v21, %v1846_v36  ;;  %v1856_v31 = vpop.f32.mrb[17].mxu0  ;;  %v2129_v8 = vpop.f32.mrb[47].mxu1 }
 0x2f2   : > { %v2326_v5 = vmax.f32 %v2324_v39, %v2325_v48  ;;  %v2333_v52 = vmax.f32 %v2331_v60, %v2332_v49  ;;  %v6102_v53 = vadd.f32 %v2238_v0, %v2119_v37  ;;  %v1862_v7 = vadd.f32 %v4174_v13, %v6014_v21 }
 0x2f3   : > { %4708 = vpow2.f32 %v2473_v43  ;;  %v2441_v11 = vsub.f32 %v6052_v47, %v2319_v4  ;;  %v2442_v12 = vsub.f32 %v6049_v40, %v2319_v4  ;;  %1965 = vst [vmem:[%s6025_s0 + $0x50] sm:$0xff] %v1847_v3  ;;  %v6108_v20 = vadd.f32 %v4254_v59, %v2241_v14 }
 0x2f4   : > { %4710 = vpow2.f32 %v2475_v1  ;;  %v2327_v22 = vrot.slane %v2326_v5, 1  ;;  %v2334_v23 = vrot.slane %v2333_v52, 2  ;;  %v2338_v24 = vsel %vm2292_vm0, %v6102_v53, -inf  ;;  %1968 = vst [vmem:[%s6025_s0 + $0x68] sm:$0xff] %v1862_v7  ;;  %v4177_v63 = vpop.f32.mrb[18].mxu0  ;;  %v4257_v46 = vpop.f32.mrb[48].mxu1 }
 0x2f5   : > { %v2477_v9 = vmul.f32 1.442695, %v2441_v11  ;;  %v2479_v55 = vmul.f32 1.442695, %v2442_v12  ;;  %v2340_v56 = vmax.f32 %v2338_v24, %v2339_v42  ;;  %v2348_v40 = vsel %vm2292_vm0, %v6108_v20, -inf  ;;  %v1866_v47 = vpop.f32.mrb[19].mxu0 }
 0x2f6   : > { %v2328_v27 = vmax.f32 %v2326_v5, %v2327_v22  ;;  %v2335_v29 = vmax.f32 %v2333_v52, %v2334_v23  ;;  %v1857_v30 = vadd.f32 %v6014_v21, %v1856_v31  ;;  %v6118_v58 = vadd.f32 %v2240_v45, %v2129_v8  ;;  %v2139_v15 = vpop.f32.mrb[49].mxu1 }
 0x2f7   : > { %4712 = vpow2.f32 %v2477_v9  ;;  %v2341_v19 = vrot.slane %v2340_v56, 4  ;;  %v1872_v2 = vadd.f32 %v4177_v63, %v6014_v21  ;;  %v6121_v32 = vadd.f32 %v4257_v46, %v2243_v25  ;;  %v2245_v63 = vld [vmem:[%s6008_s27 + $0x88] sm:$0xff] }
 0x2f8   : > { %4714 = vpow2.f32 %v2479_v55  ;;  %v2443_v33 = vsub.f32 %v6066_v16, %v2328_v27  ;;  %v2444_v34 = vsub.f32 %v6063_v10, %v2328_v27  ;;  %v2336_v35 = vrot.slane %v2335_v29, 1  ;;  %1967 = vst [vmem:[%s6025_s0 + $0x60] sm:$0xff] %v1857_v30  ;;  %v4180_v38 = vpop.f32.mrb[20].mxu0  ;;  %v4260_v51 = vpop.f32.mrb[50].mxu1 }
 0x2f9   : > { %v6127_v26 = vpop.eup %4704  ;;  %v2342_v18 = vmax.f32 %v2340_v56, %v2341_v19  ;;  %v2347_v36 = vsel %vm2292_vm0, %v6118_v58, -inf  ;;  %1970 = vst [vmem:[%s6025_s0 + $0x78] sm:$0xff] %v1872_v2  ;;  %v2357_v37 = vsel %vm2292_vm0, %v6121_v32, -inf  ;;  %v1867_v16 = vadd.f32 %v6014_v21, %v1866_v47  ;;  %v6135_v39 = vpop.f32.mrb[21].mxu0 }
 0x2fa   : > { %v6137_v10 = vpop.f32.mrb[51].mxu1  ;;  %v6139_v60 = vpop.eup %4706  ;;  %v2533_v61 = vsel %vm2292_vm0, %v6127_v26, 0.0  ;;  %v2481_v41 = vmul.f32 1.442695, %v2443_v33  ;;  %v2483_v62 = vmul.f32 1.442695, %v2444_v34  ;;  %v2337_v54 = vmax.f32 %v2335_v29, %v2336_v35 }
 0x2fb   : > { %v2534_v0 = vsel %vm2292_vm0, %v6139_v60, 0.0  ;;  %v2343_v48 = vrot.slane %v2342_v18, 2  ;;  %v2349_v49 = vmax.f32 %v2347_v36, %v2348_v40  ;;  %1969 = vst [vmem:[%s6025_s0 + $0x70] sm:$0xff] %v1867_v16  ;;  %v6146_v42 = vadd.f32 %v2242_v50, %v2139_v15 }
 0x2fc   : > { %v2535_v13 = vadd.f32 %v2534_v0, %v2533_v61  ;;  %4716 = vpow2.f32 %v2481_v41  ;;  %v2445_v59 = vsub.f32 %v6080_v57, %v2337_v54  ;;  %v2446_v14 = vsub.f32 %v6077_v28, %v2337_v54  ;;  %v6150_v43 = vpop.f32.mrb[22].mxu0  ;;  %v6152_v1 = vpop.f32.mrb[52].mxu1 }
 0x2fd   : > { %v6154_v4 = vpop.eup %4708  ;;  %4718 = vpow2.f32 %v2483_v62  ;;  %v2344_v3 = vmax.f32 %v2342_v18, %v2343_v48  ;;  %v2350_v31 = vrot.slane %v2349_v49, 4  ;;  %v2356_v8 = vsel %vm2292_vm0, %v6146_v42, -inf  ;;  %v6158_v5 = vpop.f32.mrb[23].mxu0  ;;  %v2244_v62 = vld [vmem:[%s6008_s27 + $0x80] sm:$0xff] }
 0x2fe   : > { %v6160_v52 = vpop.f32.mrb[53].mxu1  ;;  %v6162_v57 = vpop.eup %4710  ;;  %v2536_v28 = vrot.slane %v2535_v13, 4  ;;  %v2542_v7 = vsel %vm2292_vm0, %v6154_v4, 0.0  ;;  %v2485_v11 = vmul.f32 1.442695, %v2445_v59  ;;  %v2358_v24 = vmax.f32 %v2356_v8, %v2357_v37 }
 0x2ff   : > { %v2487_v12 = vmul.f32 1.442695, %v2446_v14  ;;  %v2543_v45 = vsel %vm2292_vm0, %v6162_v57, 0.0  ;;  %v2345_v22 = vrot.slane %v2344_v3, 1  ;;  %v2351_v23 = vmax.f32 %v2349_v49, %v2350_v31 }
 0x300   : > { %v2537_v46 = vadd.f32 %v2536_v28, %v2535_v13  ;;  %v2544_v25 = vadd.f32 %v2543_v45, %v2542_v7  ;;  %4720 = vpow2.f32 %v2485_v11  ;;  %v1882_v9 = vadd.f32 %v4180_v38, %v6014_v21  ;;  %v6170_v55 = vpop.f32.mrb[24].mxu0  ;;  %v6172_v56 = vpop.f32.mrb[54].mxu1  ;;  %v2247_v45 = vld [vmem:[%s6008_s27 + $0x98] sm:$0xff] }
 0x301   : > { %v6174_v40 = vpop.eup %4712  ;;  %4722 = vpow2.f32 %v2487_v12  ;;  %v2346_v47 = vmax.f32 %v2344_v3, %v2345_v22  ;;  %v2352_v27 = vrot.slane %v2351_v23, 2  ;;  %v2359_v29 = vrot.slane %v2358_v24, 4  ;;  %v6176_v30 = vpop.f32.mrb[25].mxu0 }
 0x302   : > { %v6178_v15 = vpop.f32.mrb[55].mxu1  ;;  %v6180_v19 = vpop.eup %4714  ;;  %v2538_v2 = vrot.slane %v2537_v46, 2  ;;  %v2545_v33 = vrot.slane %v2544_v25, 4  ;;  %v2551_v34 = vsel %vm2292_vm0, %v6174_v40, 0.0  ;;  %1972 = vst [vmem:[%s6025_s0 + $0x88] sm:$0xff] %v1882_v9  ;;  %v6185_v35 = vadd.f32 %v4260_v51, %v2245_v63 }
 0x303   : > { %v2552_v50 = vsel %vm2292_vm0, %v6180_v19, 0.0  ;;  %v2447_v38 = vsub.f32 %v6102_v53, %v2346_v47  ;;  %v2448_v18 = vsub.f32 %v6092_v44, %v2346_v47  ;;  %v2353_v36 = vmax.f32 %v2351_v23, %v2352_v27 }
 0x304   : > { %v6191_v37 = vadd.f32 %v2538_v2, %v2537_v46  ;;  %v2546_v16 = vadd.f32 %v2545_v33, %v2544_v25  ;;  %v2553_v61 = vadd.f32 %v2552_v50, %v2551_v34  ;;  %v2360_v41 = vmax.f32 %v2358_v24, %v2359_v29  ;;  %v6194_v54 = vpop.f32.mrb[26].mxu0  ;;  %v6196_v0 = vpop.f32.mrb[56].mxu1 }
 0x305   : > { %v2489_v51 = vmul.f32 1.442695, %v2447_v38  ;;  %v2491_v48 = vmul.f32 1.442695, %v2448_v18  ;;  %v2354_v49 = vrot.slane %v2353_v36, 1  ;;  %v2366_v53 = vsel %vm2292_vm0, %v6185_v35, -inf }
 0x306   : > { %v6200_v13 = vpop.eup %4716  ;;  %v2547_v44 = vrot.slane %v2546_v16, 2  ;;  %v2554_v59 = vrot.slane %v2553_v61, 4  ;;  %v2361_v14 = vrot.slane %v2360_v41, 2  ;;  %v1877_v3 = vadd.f32 %v6014_v21, %v6135_v39  ;;  %v6204_v31 = vpop.f32.mrb[27].mxu0 }
 0x307   : > { %v6206_v8 = vpop.f32.mrb[57].mxu1  ;;  %v6208_v28 = vpop.eup %4718  ;;  %v2560_v7 = vsel %vm2292_vm0, %v6200_v13, 0.0  ;;  %4724 = vpow2.f32 %v2489_v51  ;;  %v2355_v11 = vmax.f32 %v2353_v36, %v2354_v49  ;;  %v6213_v12 = vadd.f32 %v2244_v62, %v6137_v10 }
 0x308   : > { %v6216_v22 = vadd.f32 %v2547_v44, %v2546_v16  ;;  %v2555_v23 = vadd.f32 %v2554_v59, %v2553_v61  ;;  %v2561_v39 = vsel %vm2292_vm0, %v6208_v28, 0.0  ;;  %4726 = vpow2.f32 %v2491_v48  ;;  %1971 = vst [vmem:[%s6025_s0 + $0x80] sm:$0xff] %v1877_v3  ;;  %v6221_v24 = vpop.f32.mrb[28].mxu0  ;;  %v6223_v63 = vpop.f32.mrb[58].mxu1  ;;  %v2249_v59 = vld [vmem:[%s6008_s27 + $0xa8] sm:$0xff] }
 0x309   : > { %v2562_v46 = vadd.f32 %v2561_v39, %v2560_v7  ;;  %v2449_v25 = vsub.f32 %v6118_v58, %v2355_v11  ;;  %v2450_v9 = vsub.f32 %v6108_v20, %v2355_v11  ;;  %v2362_v10 = vmax.f32 %v2360_v41, %v2361_v14  ;;  %v6227_v47 = vpop.f32.mrb[29].mxu0  ;;  %v6229_v27 = vpop.f32.mrb[59].mxu1 }
 0x30a   : > { %v6231_v29 = vpop.eup %4720  ;;  %v2556_v2 = vrot.slane %v2555_v23, 2  ;;  %v2365_v33 = vsel %vm2292_vm0, %v6213_v12, -inf  ;;  %v1892_v34 = vadd.f32 %v6150_v43, %v6014_v21  ;;  %v6238_v58 = vadd.f32 %v6152_v1, %v2247_v45  ;;  %v2246_v43 = vld [vmem:[%s6008_s27 + $0x90] sm:$0xff] }
 0x30b   : > { %v6240_v20 = vpop.eup %4722  ;;  %v2563_v50 = vrot.slane %v2562_v46, 4  ;;  %v2569_v38 = vsel %vm2292_vm0, %v6231_v29, 0.0  ;;  %v2493_v18 = vmul.f32 1.442695, %v2449_v25  ;;  %v2495_v36 = vmul.f32 1.442695, %v2450_v9 }
 0x30c   : > { %6876 = vst [vmem:[#allocation31_spill] sm:$0xff] %v6240_v20  ;;  %v6244_v16 = vadd.f32 %v2556_v2, %v2555_v23  ;;  %v2570_v61 = vsel %vm2292_vm0, %v6240_v20, 0.0  ;;  %v2363_v41 = vrot.slane %v2362_v10, 1  ;;  %v2367_v62 = vmax.f32 %v2365_v33, %v2366_v53  ;;  %1974 = vst [vmem:[%s6025_s0 + $0x98] sm:$0xff] %v1892_v34  ;;  %v6250_v1 = vpop.f32.mrb[30].mxu0  ;;  %v6252_v51 = vpop.f32.mrb[60].mxu1 }
 0x30d   : > { %v2564_v48 = vadd.f32 %v2563_v50, %v2562_v46  ;;  %v2571_v49 = vadd.f32 %v2570_v61, %v2569_v38  ;;  %4728 = vpow2.f32 %v2493_v18  ;;  %v2375_v44 = vsel %vm2292_vm0, %v6238_v58, -inf  ;;  %v6257_v14 = vpop.f32.mrb[31].mxu0  ;;  %v6259_v3 = vpop.f32.mrb[61].mxu1 }
 0x30e   : > { %4730 = vpow2.f32 %v2495_v36  ;;  %v2364_v53 = vmax.f32 %v2362_v10, %v2363_v41  ;;  %v2368_v7 = vrot.slane %v2367_v62, 4  ;;  %v1887_v11 = vadd.f32 %v6014_v21, %v6158_v5 }
 0x30f   : > { %v2565_v45 = vrot.slane %v2564_v48, 2  ;;  %v2572_v23 = vrot.slane %v2571_v49, 4  ;;  %v6264_v39 = vadd.f32 %v2246_v43, %v6160_v52  ;;  %v1902_v46 = vadd.f32 %v6170_v55, %v6014_v21  ;;  %v2248_v55 = vld [vmem:[%s6008_s27 + $0xa0] sm:$0xff] }
 0x310   : > { %v2451_v25 = vsub.f32 %v6146_v42, %v2364_v53  ;;  %v2452_v9 = vsub.f32 %v6121_v32, %v2364_v53  ;;  %v2369_v2 = vmax.f32 %v2367_v62, %v2368_v7  ;;  %1973 = vst [vmem:[%s6025_s0 + $0x90] sm:$0xff] %v1887_v11  ;;  %v6272_v10 = vadd.f32 %v6172_v56, %v2249_v59  ;;  %v6274_v5 = vpop.f32.mrb[32].mxu0  ;;  %v6276_v33 = vpop.f32.mrb[62].mxu1  ;;  %v2251_v59 = vld [vmem:[%s6008_s27 + $0xb8] sm:$0xff] }
 0x311   : > { %v6278_v34 = vpop.eup %4724  ;;  %v6280_v52 = vadd.f32 %v2565_v45, %v2564_v48  ;;  %v2573_v50 = vadd.f32 %v2572_v23, %v2571_v49  ;;  %v2374_v42 = vsel %vm2292_vm0, %v6264_v39, -inf  ;;  %1976 = vst [vmem:[%s6025_s0 + $0xa8] sm:$0xff] %v1902_v46  ;;  %v1897_v32 = vadd.f32 %v6014_v21, %v6176_v30  ;;  %v6288_v56 = vpop.f32.mrb[33].mxu0  ;;  %v2250_v45 = vld [vmem:[%s6008_s27 + $0xb0] sm:$0xff] }
 0x312   : > { %6877 = vst [vmem:[#allocation32_spill] sm:$0xff] %v6278_v34  ;;  %v6290_v38 = vpop.f32.mrb[63].mxu1  ;;  %v6292_v18 = vpop.eup %4726  ;;  %v2578_v36 = vsel %vm2292_vm0, %v6278_v34, 0.0  ;;  %v2497_v61 = vmul.f32 1.442695, %v2451_v25  ;;  %v2370_v62 = vrot.slane %v2369_v2, 2  ;;  %v2376_v49 = vmax.f32 %v2374_v42, %v2375_v44 }
 0x313   : > { %6878 = vst [vmem:[#allocation33_spill] sm:$0xff] %v6292_v18  ;;  %v2499_v41 = vmul.f32 1.442695, %v2452_v9  ;;  %v2574_v43 = vrot.slane %v2573_v50, 2  ;;  %v2579_v48 = vsel %vm2292_vm0, %v6292_v18, 0.0  ;;  %v2384_v30 = vsel %vm2292_vm0, %v6272_v10, -inf }
 0x314   : > { %1975 = vst [vmem:[%s6025_s0 + $0xa0] sm:$0xff] %v1897_v32  ;;  %v2580_v53 = vadd.f32 %v2579_v48, %v2578_v36  ;;  %4732 = vpow2.f32 %v2497_v61  ;;  %v2371_v7 = vmax.f32 %v2369_v2, %v2370_v62  ;;  %v6303_v11 = vadd.f32 %v2248_v55, %v6178_v15  ;;  %v6306_v23 = vpop.f32.mrb[34].mxu0  ;;  %v6308_v46 = vpop.f32.mrb[64].mxu1 }
 0x315   : > { %v6310_v25 = vadd.f32 %v2574_v43, %v2573_v50  ;;  %4734 = vpow2.f32 %v2499_v41  ;;  %v2377_v44 = vrot.slane %v2376_v49, 4  ;;  %v1912_v9 = vadd.f32 %v6194_v54, %v6014_v21  ;;  %v6314_v42 = vpop.f32.mrb[35].mxu0  ;;  %v6316_v32 = vpop.f32.mrb[65].mxu1 }
 0x316   : > { %v2581_v2 = vrot.slane %v2580_v53, 4  ;;  %v2372_v15 = vrot.slane %v2371_v7, 1  ;;  %v2383_v55 = vsel %vm2292_vm0, %v6303_v11, -inf  ;;  %v6321_v36 = vadd.f32 %v6196_v0, %v2251_v59 }
 0x317   : > { %v6323_v50 = vpop.eup %4728  ;;  %v2378_v61 = vmax.f32 %v2376_v49, %v2377_v44  ;;  %v2385_v41 = vmax.f32 %v2383_v55, %v2384_v30  ;;  %1978 = vst [vmem:[%s6025_s0 + $0xb8] sm:$0xff] %v1912_v9  ;;  %v1907_v54 = vadd.f32 %v6014_v21, %v6204_v31  ;;  %v6329_v62 = vadd.f32 %v2250_v45, %v6206_v8  ;;  %v2253_v9 = vld [vmem:[%s6008_s27 + $0xc8] sm:$0xff] }
 0x318   : > { %6879 = vst [vmem:[#allocation34_spill] sm:$0xff] %v6323_v50  ;;  %v6331_v43 = vpop.eup %4730  ;;  %v2582_v48 = vadd.f32 %v2581_v2, %v2580_v53  ;;  %v2587_v17 = vsel %vm2292_vm0, %v6323_v50, 0.0  ;;  %v2373_v0 = vmax.f32 %v2371_v7, %v2372_v15  ;;  %v2393_v49 = vsel %vm2292_vm0, %v6321_v36, -inf }
 0x319   : > { %6880 = vst [vmem:[#allocation35_spill] sm:$0xff] %v6331_v43  ;;  %v2588_v30 = vsel %vm2292_vm0, %v6331_v43, 0.0  ;;  %v2379_v59 = vrot.slane %v2378_v61, 2  ;;  %v2386_v31 = vrot.slane %v2385_v41, 4  ;;  %1977 = vst [vmem:[%s6025_s0 + $0xb0] sm:$0xff] %v1907_v54  ;;  %v2392_v8 = vsel %vm2292_vm0, %v6329_v62, -inf }
 0x31a   : > { %v2583_v45 = vrot.slane %v2582_v48, 2  ;;  %v2589_v44 = vadd.f32 %v2588_v30, %v2587_v17  ;;  %v2453_v53 = vsub.f32 %v6213_v12, %v2373_v0  ;;  %v2454_v7 = vsub.f32 %v6185_v35, %v2373_v0  ;;  %v2252_v43 = vld [vmem:[%s6008_s27 + $0xc0] sm:$0xff] }
 0x31b   : > { %v2380_v2 = vmax.f32 %v2378_v61, %v2379_v59  ;;  %v2387_v15 = vmax.f32 %v2385_v41, %v2386_v31  ;;  %v2394_v55 = vmax.f32 %v2392_v8, %v2393_v49  ;;  %v1922_v6 = vadd.f32 %v6221_v24, %v6014_v21 }
 0x31c   : > { %v6348_v50 = vadd.f32 %v2583_v45, %v2582_v48  ;;  %v2590_v54 = vrot.slane %v2589_v44, 4  ;;  %v2501_v18 = vmul.f32 1.442695, %v2453_v53  ;;  %v2503_v34 = vmul.f32 1.442695, %v2454_v7 }
 0x31d   : > { %v2381_v20 = vrot.slane %v2380_v2, 1  ;;  %v2388_v17 = vrot.slane %v2387_v15, 2  ;;  %v2395_v30 = vrot.slane %v2394_v55, 4  ;;  %1980 = vst [vmem:[%s6025_s0 + $0xc8] sm:$0xff] %v1922_v6  ;;  %v6352_v35 = vadd.f32 %v6223_v63, %v2253_v9 }
 0x31e   : > { %v6354_v12 = vpop.eup %4732  ;;  %v2591_v61 = vadd.f32 %v2590_v54, %v2589_v44  ;;  %4736 = vpow2.f32 %v2501_v18  ;;  %v1917_v24 = vadd.f32 %v6014_v21, %v6227_v47  ;;  %v6359_v41 = vadd.f32 %v2252_v43, %v6229_v27 }
 0x31f   : > { %v6361_v48 = vpop.eup %4734  ;;  %v2596_v6 = vsel %vm2292_vm0, %v6354_v12, 0.0  ;;  %4738 = vpow2.f32 %v2503_v34  ;;  %v2382_v0 = vmax.f32 %v2380_v2, %v2381_v20  ;;  %v2389_v63 = vmax.f32 %v2387_v15, %v2388_v17  ;;  %v2255_v34 = vld [vmem:[%s6008_s27 + $0xd8] sm:$0xff]  ;;  %v2254_v17 = vld [vmem:[%s6008_s27 + $0xd0] sm:$0xff] }
 0x320   : > { %v2592_v49 = vrot.slane %v2591_v61, 2  ;;  %v2597_v59 = vsel %vm2292_vm0, %v6361_v48, 0.0  ;;  %v2396_v18 = vmax.f32 %v2394_v55, %v2395_v30  ;;  %v2402_v47 = vsel %vm2292_vm0, %v6352_v35, -inf  ;;  %1979 = vst [vmem:[%s6025_s0 + $0xc0] sm:$0xff] %v1917_v24  ;;  %v2257_v24 = vld [vmem:[%s6008_s27 + $0xe8] sm:$0xff] }
 0x321   : > { %v2598_v27 = vadd.f32 %v2597_v59, %v2596_v6  ;;  %v2455_v43 = vsub.f32 %v6264_v39, %v2382_v0  ;;  %v2456_v31 = vsub.f32 %v6238_v58, %v2382_v0  ;;  %v2390_v8 = vrot.slane %v2389_v63, 1 }
 0x322   : > { %v6373_v20 = vadd.f32 %v2592_v49, %v2591_v61  ;;  %v2397_v45 = vrot.slane %v2396_v18, 2  ;;  %v2401_v44 = vsel %vm2292_vm0, %v6359_v41, -inf  ;;  %v1932_v53 = vadd.f32 %v6250_v1, %v6014_v21 }
 0x323   : > { %v2599_v7 = vrot.slane %v2598_v27, 4  ;;  %v2505_v9 = vmul.f32 1.442695, %v2455_v43  ;;  %v2507_v2 = vmul.f32 1.442695, %v2456_v31  ;;  %v2391_v15 = vmax.f32 %v2389_v63, %v2390_v8 }
 0x324   : > { %v2398_v39 = vmax.f32 %v2396_v18, %v2397_v45  ;;  %v2403_v58 = vmax.f32 %v2401_v44, %v2402_v47  ;;  %1982 = vst [vmem:[%s6025_s0 + $0xd8] sm:$0xff] %v1932_v53  ;;  %v6381_v55 = vadd.f32 %v6252_v51, %v2255_v34  ;;  %v1927_v54 = vadd.f32 %v6014_v21, %v6257_v14  ;;  %v2256_v34 = vld [vmem:[%s6008_s27 + $0xe0] sm:$0xff] }
 0x325   : > { %v2600_v30 = vadd.f32 %v2599_v7, %v2598_v27  ;;  %4740 = vpow2.f32 %v2505_v9  ;;  %v2457_v61 = vsub.f32 %v6303_v11, %v2391_v15  ;;  %v2458_v1 = vsub.f32 %v6272_v10, %v2391_v15 }
 0x326   : > { %4742 = vpow2.f32 %v2507_v2  ;;  %v2399_v6 = vrot.slane %v2398_v39, 1  ;;  %v2404_v0 = vrot.slane %v2403_v58, 4  ;;  %v2411_v63 = vsel %vm2292_vm0, %v6381_v55, -inf  ;;  %1981 = vst [vmem:[%s6025_s0 + $0xd0] sm:$0xff] %v1927_v54  ;;  %v2259_v2 = vld [vmem:[%s6008_s27 + $0xf8] sm:$0xff] }
 0x327   : > { %v2601_v51 = vrot.slane %v2600_v30, 2  ;;  %v2509_v49 = vmul.f32 1.442695, %v2457_v61  ;;  %v2511_v59 = vmul.f32 1.442695, %v2458_v1  ;;  %v6393_v14 = vadd.f32 %v2254_v17, %v6259_v3  ;;  %v2258_v61 = vld [vmem:[%s6008_s27 + $0xf0] sm:$0xff] }
 0x328   : > { %v6395_v18 = vpop.eup %4736  ;;  %v2400_v11 = vmax.f32 %v2398_v39, %v2399_v6  ;;  %v2405_v10 = vmax.f32 %v2403_v58, %v2404_v0  ;;  %v1942_v47 = vadd.f32 %v6274_v5, %v6014_v21  ;;  %v6400_v27 = vadd.f32 %v6276_v33, %v2257_v24  ;;  %s5111_s27 = smov [#allocation14]  }
 0x329   : > { %v6402_v43 = vpop.eup %4738  ;;  %v6404_v31 = vadd.f32 %v2601_v51, %v2600_v30  ;;  %v2605_v3 = vsel %vm2292_vm0, %v6395_v18, 0.0  ;;  %4744 = vpow2.f32 %v2509_v49  ;;  %v2410_v8 = vsel %vm2292_vm0, %v6393_v14, -inf  ;;  %s4978_s8 = sshll.u32 %s5111_s27, 4  ;;  %s4979_s8 = int_to_ptr.vmem [resolvable:$false] %s4978_s8 }
 0x32a   : > { %v2606_v45 = vsel %vm2292_vm0, %v6402_v43, 0.0  ;;  %4746 = vpow2.f32 %v2511_v59  ;;  %v2459_v5 = vsub.f32 %v6329_v62, %v2400_v11  ;;  %v2460_v33 = vsub.f32 %v6321_v36, %v2400_v11  ;;  %1984 = vst [vmem:[%s6025_s0 + $0xe8] sm:$0xff] %v1942_v47  ;;  %s4980_s3 = scalar_lea.vmem %s4979_s8, 8192  ;;  %p4981_p5 = scmp.lt.s32.totalorder %s6662_s12, %s4979_s8 }
 0x32b   : > { %v2607_v44 = vadd.f32 %v2606_v45, %v2605_v3  ;;  %v2406_v53 = vrot.slane %v2405_v10, 2  ;;  %v2412_v7 = vmax.f32 %v2410_v8, %v2411_v63  ;;  %v2420_v9 = vsel %vm2292_vm0, %v6400_v27, -inf  ;;  %p4982_p3 = scmp.lt.s32.totalorder %s4980_s3, %s4974_s11 }
 0x32c   : > { %v2513_v15 = vmul.f32 1.442695, %v2459_v5  ;;  %v2515_v39 = vmul.f32 1.442695, %v2460_v33  ;;  %v1937_v58 = vadd.f32 %v6014_v21, %v6288_v56  ;;  %v6422_v54 = vadd.f32 %v2256_v34, %v6290_v38 }
 0x32d   : > { %v2608_v62 = vrot.slane %v2607_v44, 4  ;;  %v2407_v36 = vmax.f32 %v2405_v10, %v2406_v53  ;;  %v2413_v17 = vrot.slane %v2412_v7, 4  ;;  %v1952_v30 = vadd.f32 %v6306_v23, %v6014_v21  ;;  %p4983_p6 = por %p4982_p3, %p4981_p5 }
 0x32e   : > { %4748 = vpow2.f32 %v2513_v15  ;;  %1983 = vst [vmem:[%s6025_s0 + $0xe0] sm:$0xff] %v1937_v58  ;;  %v2419_v1 = vsel %vm2292_vm0, %v6422_v54, -inf  ;;  %v6431_v24 = vadd.f32 %v6308_v46, %v2259_v2  ;;  %v1947_v56 = vadd.f32 %v6014_v21, %v6314_v42 }
 0x32f   : > { %v6435_v38 = vpop.eup %4740  ;;  %v2609_v6 = vadd.f32 %v2608_v62, %v2607_v44  ;;  %4750 = vpow2.f32 %v2515_v39  ;;  %v2408_v0 = vrot.slane %v2407_v36, 1  ;;  %v2414_v63 = vmax.f32 %v2412_v7, %v2413_v17  ;;  %1986 = vst [vmem:[%s6025_s0 + $0xf8] sm:$0xff] %v1952_v30  ;;  %p4984_p7 = pnand %p4983_p6, %p4977_p13 }
 0x330   : > { %v6438_v23 = vpop.eup %4742  ;;  %v2614_v51 = vsel %vm2292_vm0, %v6435_v38, 0.0  ;;  %v2421_v49 = vmax.f32 %v2419_v1, %v2420_v9  ;;  %v2429_v46 = vsel %vm2292_vm0, %v6431_v24, -inf  ;;  %1985 = vst [vmem:[%s6025_s0 + $0xf0] sm:$0xff] %v1947_v56  ;;  %v6446_v59 = vadd.f32 %v2258_v61, %v6316_v32 }
 0x331   : > { %v2610_v21 = vrot.slane %v2609_v6, 2  ;;  %v2615_v42 = vsel %vm2292_vm0, %v6438_v23, 0.0  ;;  %v2409_v11 = vmax.f32 %v2407_v36, %v2408_v0  ;;  %v2415_v10 = vrot.slane %v2414_v63, 2 }
 0x332   : > { %v2616_v47 = vadd.f32 %v2615_v42, %v2614_v51  ;;  %v2422_v3 = vrot.slane %v2421_v49, 4  ;;  %v2428_v8 = vsel %vm2292_vm0, %v6446_v59, -inf  ;;  %v2540_v34 = vrot.slane %v6191_v37, 1 }
 0x333   : > { %v6453_v45 = vpop.eup %4744  ;;  %v6455_v5 = vadd.f32 %v2610_v21, %v2609_v6  ;;  %v2461_v32 = vsub.f32 %v6359_v41, %v2409_v11  ;;  %v2462_v33 = vsub.f32 %v6352_v35, %v2409_v11  ;;  %v2416_v44 = vmax.f32 %v2414_v63, %v2415_v10 }
 0x334   : > { %v6459_v53 = vpop.eup %4746  ;;  %v2617_v7 = vrot.slane %v2616_v47, 4  ;;  %v2623_v9 = vsel %vm2292_vm0, %v6453_v45, 0.0  ;;  %v2423_v2 = vmax.f32 %v2421_v49, %v2422_v3  ;;  %v2430_v15 = vmax.f32 %v2428_v8, %v2429_v46 }
 0x335   : > { %v2624_v39 = vsel %vm2292_vm0, %v6459_v53, 0.0  ;;  %v2517_v58 = vmul.f32 1.442695, %v2461_v32  ;;  %v2519_v62 = vmul.f32 1.442695, %v2462_v33  ;;  %v2417_v36 = vrot.slane %v2416_v44, 1 }
 0x336   : > { %v2618_v17 = vadd.f32 %v2617_v7, %v2616_v47  ;;  %v2625_v30 = vadd.f32 %v2624_v39, %v2623_v9  ;;  %v2424_v41 = vrot.slane %v2423_v2, 2  ;;  %v2431_v61 = vrot.slane %v2430_v15, 4 }
 0x337   : > { %4752 = vpow2.f32 %v2517_v58  ;;  %v2418_v35 = vmax.f32 %v2416_v44, %v2417_v36  ;;  %v2541_v1 = vadd.f32 %v2540_v34, %v6191_v37  ;;  %v2549_v56 = vrot.slane %v6216_v22, 1 }
 0x338   : > { %v6467_v6 = vpop.eup %4748  ;;  %v2619_v0 = vrot.slane %v2618_v17, 2  ;;  %v2626_v63 = vrot.slane %v2625_v30, 4  ;;  %4754 = vpow2.f32 %v2519_v62  ;;  %v2425_v51 = vmax.f32 %v2423_v2, %v2424_v41 }
 0x339   : > { %v6469_v49 = vpop.eup %4750  ;;  %v2632_v46 = vsel %vm2292_vm0, %v6467_v6, 0.0  ;;  %v2463_v21 = vsub.f32 %v6393_v14, %v2418_v35  ;;  %v2464_v42 = vsub.f32 %v6381_v55, %v2418_v35  ;;  %v2432_v11 = vmax.f32 %v2430_v15, %v2431_v61 }
 0x33a   : > { %v6475_v10 = vadd.f32 %v2619_v0, %v2618_v17  ;;  %v2627_v37 = vadd.f32 %v2626_v63, %v2625_v30  ;;  %v2633_v47 = vsel %vm2292_vm0, %v6469_v49, 0.0  ;;  %v2426_v3 = vrot.slane %v2425_v51, 1 }
 0x33b   : > { %v2634_v8 = vadd.f32 %v2633_v47, %v2632_v46  ;;  %v2521_v34 = vmul.f32 1.442695, %v2463_v21  ;;  %v2523_v32 = vmul.f32 1.442695, %v2464_v42  ;;  %v2433_v33 = vrot.slane %v2432_v11, 2 }
 0x33c   : > { %v2628_v44 = vrot.slane %v2627_v37, 2  ;;  %v2427_v7 = vmax.f32 %v2425_v51, %v2426_v3  ;;  %4756 = vrcp.f32 %v2541_v1  ;;  %v2550_v9 = vadd.f32 %v2549_v56, %v6216_v22 }
 0x33d   : > { %v2635_v14 = vrot.slane %v2634_v8, 4  ;;  %4758 = vpow2.f32 %v2521_v34  ;;  %v2434_v55 = vmax.f32 %v2432_v11, %v2433_v33  ;;  %v2558_v2 = vrot.slane %v6244_v16, 1 }
 0x33e   : > { %v6481_v15 = vadd.f32 %v2628_v44, %v2627_v37  ;;  %4760 = vpow2.f32 %v2523_v32  ;;  %v2465_v39 = vsub.f32 %v6422_v54, %v2427_v7  ;;  %v2466_v58 = vsub.f32 %v6400_v27, %v2427_v7 }
 0x33f   : > { %v2636_v62 = vadd.f32 %v2635_v14, %v2634_v8  ;;  %v2435_v36 = vrot.slane %v2434_v55, 1  ;;  %4762 = vrcp.f32 %v2550_v9  ;;  %v2559_v17 = vadd.f32 %v2558_v2, %v6244_v16 }
 0x340   : > { %v2525_v30 = vmul.f32 1.442695, %v2465_v39  ;;  %v2527_v41 = vmul.f32 1.442695, %v2466_v58  ;;  %v2567_v22 = vrot.slane %v6280_v52, 1  ;;  %v2576_v61 = vrot.slane %v6310_v25, 1 }
 0x341   : > { %v6488_v35 = vpop.eup %4752  ;;  %v2637_v1 = vrot.slane %v2636_v62, 2  ;;  %v2436_v56 = vmax.f32 %v2434_v55, %v2435_v36  ;;  %4764 = vrcp.f32 %v2559_v17  ;;  %v2585_v54 = vrot.slane %v6348_v50, 1 }
 0x342   : > { %v6491_v0 = vpop.eup %4754  ;;  %v2641_v27 = vsel %vm2292_vm0, %v6488_v35, 0.0  ;;  %4766 = vpow2.f32 %v2525_v30  ;;  %v2568_v16 = vadd.f32 %v2567_v22, %v6280_v52  ;;  %v2577_v63 = vadd.f32 %v2576_v61, %v6310_v25 }
 0x343   : > { %v2638_v51 = vadd.f32 %v2637_v1, %v2636_v62  ;;  %v2642_v46 = vsel %vm2292_vm0, %v6491_v0, 0.0  ;;  %4768 = vpow2.f32 %v2527_v41  ;;  %v2467_v21 = vsub.f32 %v6446_v59, %v2436_v56 }
 0x344   : > { %v2643_v42 = vadd.f32 %v2642_v46, %v2641_v27  ;;  %v2468_v11 = vsub.f32 %v6431_v24, %v2436_v56  ;;  %4770 = vrcp.f32 %v2568_v16  ;;  %v2586_v37 = vadd.f32 %v2585_v54, %v6348_v50 }
 0x345   : > { %v2529_v47 = vmul.f32 1.442695, %v2467_v21  ;;  %4772 = vrcp.f32 %v2577_v63  ;;  %v2594_v3 = vrot.slane %v6373_v20, 1  ;;  %v2603_v52 = vrot.slane %v6404_v31, 1 }
 0x346   : > { %v4757_v25 = vpop.eup %4756  ;;  %v2644_v8 = vrot.slane %v2643_v42, 4  ;;  %v2531_v34 = vmul.f32 1.442695, %v2468_v11  ;;  %4774 = vrcp.f32 %v2586_v37  ;;  %v2612_v32 = vrot.slane %v6455_v5, 1  ;;  %v6881_v11 = vld [vmem:[#allocation31_spill] sm:$0xff] }
 0x347   : > { %v6505_v33 = vpop.eup %4758  ;;  %4776 = vpow2.f32 %v2529_v47  ;;  %v2693_v24 = vmul.f32 %v4757_v25, %v6127_v26  ;;  %v2694_v59 = vmul.f32 %v4757_v25, %v6139_v60  ;;  %v2595_v50 = vadd.f32 %v2594_v3, %v6373_v20 }
 0x348   : > { %v6510_v44 = vpop.eup %4760  ;;  %v2645_v7 = vadd.f32 %v2644_v8, %v2643_v42  ;;  %v2650_v9 = vsel %vm2292_vm0, %v6505_v33, 0.0  ;;  %4778 = vpow2.f32 %v2531_v34  ;;  %v2604_v14 = vadd.f32 %v2603_v52, %v6404_v31  ;;  %v6882_v52 = vld [vmem:[#allocation32_spill] sm:$0xff]  ;;  %v6883_v8 = vld [vmem:[#allocation33_spill] sm:$0xff] }
 0x349   : > { %v4763_v55 = vpop.eup %4762  ;;  %v2651_v2 = vsel %vm2292_vm0, %v6510_v44, 0.0  ;;  %4284 = vmatprep.mubr.msk.f32.mxu0 %vm2292_vm0, %v2693_v24  ;;  %4780 = vrcp.f32 %v2595_v50  ;;  %v2613_v26 = vadd.f32 %v2612_v32, %v6455_v5  ;;  %v2621_v60 = vrot.slane %v6475_v10, 1 }
 0x34a   : > { %v2646_v20 = vrot.slane %v2645_v7, 2  ;;  %v2652_v39 = vadd.f32 %v2651_v2, %v2650_v9  ;;  %4285 = vmatmul.mubr.msk.f32.vlgmr.msra.gmra.mrb[36].mxu0 %vm2292_vm0, %v2694_v59  ;;  %v2695_v58 = vmul.f32 %v4763_v55, %v6154_v4  ;;  %v2696_v62 = vmul.f32 %v4763_v55, %v6162_v57  ;;  %v6884_v9 = vld [vmem:[#allocation34_spill] sm:$0xff]  ;;  %v6885_v55 = vld [vmem:[#allocation35_spill] sm:$0xff] }
 0x34b   : > { %v4765_v31 = vpop.eup %4764  ;;  %4782 = vrcp.f32 %v2604_v14  ;;  %v2622_v36 = vadd.f32 %v2621_v60, %v6475_v10  ;;  %v2630_v17 = vrot.slane %v6481_v15, 1  ;;  %v2639_v30 = vrot.slane %v2638_v51, 1 }
 0x34c   : > { %v6525_v41 = vpop.eup %4766  ;;  %v2647_v5 = vadd.f32 %v2646_v20, %v2645_v7  ;;  %v2653_v22 = vrot.slane %v2652_v39, 4  ;;  %4287 = vmatprep.mubr.msk.f32.mxu0 %vm2292_vm0, %v2695_v58  ;;  %v2697_v61 = vmul.f32 %v4765_v31, %v6174_v40  ;;  %v2698_v1 = vmul.f32 %v4765_v31, %v6180_v19 }
 0x34d   : > { %v6530_v4 = vpop.eup %4768  ;;  %v2659_v57 = vsel %vm2292_vm0, %v6525_v41, 0.0  ;;  %4784 = vrcp.f32 %v2613_v26  ;;  %v2631_v10 = vadd.f32 %v2630_v17, %v6481_v15  ;;  %v2640_v56 = vadd.f32 %v2639_v30, %v2638_v51 }
 0x34e   : > { %v4771_v54 = vpop.eup %4770  ;;  %v2654_v27 = vadd.f32 %v2653_v22, %v2652_v39  ;;  %v2660_v16 = vsel %vm2292_vm0, %v6530_v4, 0.0  ;;  %4288 = vmatmul.mubr.msk.f32.gmra.mrb[38].mxu0 %vm2292_vm0, %v2696_v62  ;;  %4786 = vrcp.f32 %v2622_v36  ;;  %v2648_v40 = vrot.slane %v2647_v5, 1 }
 0x34f   : > { %v4773_v63 = vpop.eup %4772  ;;  %v2661_v19 = vadd.f32 %v2660_v16, %v2659_v57  ;;  %4290 = vmatprep.mubr.msk.f32.mxu0 %vm2292_vm0, %v2697_v61  ;;  %v2699_v46 = vmul.f32 %v4771_v54, %v6200_v13  ;;  %v2700_v21 = vmul.f32 %v4771_v54, %v6208_v28  ;;  %4788 = vrcp.f32 %v2631_v10 }
 0x350   : > { %v4775_v15 = vpop.eup %4774  ;;  %v2655_v51 = vrot.slane %v2654_v27, 2  ;;  %v2701_v42 = vmul.f32 %v4773_v63, %v6231_v29  ;;  %v2702_v37 = vmul.f32 %v4773_v63, %v6881_v11  ;;  %4790 = vrcp.f32 %v2640_v56 }
 0x351   : > { %v6543_v47 = vpop.eup %4776  ;;  %v2662_v3 = vrot.slane %v2661_v19, 4  ;;  %v2703_v25 = vmul.f32 %v4775_v15, %v6882_v52  ;;  %v2704_v34 = vmul.f32 %v4775_v15, %v6883_v8  ;;  %v2649_v32 = vadd.f32 %v2648_v40, %v2647_v5  ;;  %v3197_v52 = vld [vmem:[#allocation10 + $0x30] sm:$0xff] }
 0x352   : > { %v6547_v24 = vpop.eup %4778  ;;  %v2656_v13 = vadd.f32 %v2655_v51, %v2654_v27  ;;  %v2668_v28 = vsel %vm2292_vm0, %v6543_v47, 0.0  ;;  %4291 = vmatmul.mubr.msk.f32.gmra.mrb[40].mxu0 %vm2292_vm0, %v2698_v1  ;;  %v3193_v51 = vld [vmem:[#allocation10 + $0x10] sm:$0xff] }
 0x353   : > { %v4781_v29 = vpop.eup %4780  ;;  %v2663_v59 = vadd.f32 %v2662_v3, %v2661_v19  ;;  %v2669_v50 = vsel %vm2292_vm0, %v6547_v24, 0.0  ;;  %4293 = vmatprep.mubr.msk.f32.mxu0 %vm2292_vm0, %v2699_v46  ;;  %4792 = vrcp.f32 %v2649_v32  ;;  %v3200_v32 = vld [vmem:[#allocation10 + $0x48] sm:$0xff] }
 0x354   : > { %v2670_v7 = vadd.f32 %v2669_v50, %v2668_v28  ;;  %v2705_v14 = vmul.f32 %v4781_v29, %v6884_v9  ;;  %v2706_v2 = vmul.f32 %v4781_v29, %v6885_v55  ;;  %v2657_v26 = vrot.slane %v2656_v13, 1  ;;  %v3202_v28 = vld [vmem:[#allocation10 + $0x58] sm:$0xff]  ;;  %v3204_v50 = vld [vmem:[#allocation10 + $0x68] sm:$0xff]  ;;  %v3205_v9 = vld [vmem:[#allocation10 + $0x70] sm:$0xff] }
 0x355   : > { %v4783_v60 = vpop.eup %4782  ;;  %v2664_v20 = vrot.slane %v2663_v59, 2 }
 0x356   : > { %v2671_v39 = vrot.slane %v2670_v7, 4  ;;  %4294 = vmatmul.mubr.msk.f32.gmra.mrb[42].mxu0 %vm2292_vm0, %v2700_v21  ;;  %v2707_v58 = vmul.f32 %v4783_v60, %v6354_v12  ;;  %v2708_v62 = vmul.f32 %v4783_v60, %v6361_v48  ;;  %v2658_v31 = vadd.f32 %v2657_v26, %v2656_v13  ;;  %v3201_v13 = vld [vmem:[#allocation10 + $0x50] sm:$0xff]  ;;  %v6887_v26 = vld [vmem:[#allocation29_spill] sm:$0xff] }
 0x357   : > { %v4785_v36 = vpop.eup %4784  ;;  %v2665_v17 = vadd.f32 %v2664_v20, %v2663_v59  ;;  %4296 = vmatprep.mubr.msk.f32.mxu0 %vm2292_vm0, %v2701_v42  ;;  %v3194_v42 = vld [vmem:[#allocation10 + $0x18] sm:$0xff]  ;;  %v4579_v29 = vpack.c.bf16 %v3202_v28, %v3201_v13  ;;  %v3203_v59 = vld [vmem:[#allocation10 + $0x60] sm:$0xff]  ;;  %v6888_v20 = vld [vmem:[#allocation30_spill] sm:$0xff] }
 0x358   : > { %v4787_v30 = vpop.eup %4786  ;;  %v2672_v5 = vadd.f32 %v2671_v39, %v2670_v7  ;;  %v2709_v22 = vmul.f32 %v4785_v36, %v6395_v18  ;;  %v2710_v61 = vmul.f32 %v4785_v36, %v6402_v43  ;;  %4794 = vrcp.f32 %v2658_v31 }
 0x359   : > { %v4789_v1 = vpop.eup %4788  ;;  %v2711_v57 = vmul.f32 %v4787_v30, %v6435_v38  ;;  %v2712_v10 = vmul.f32 %v4787_v30, %v6438_v23  ;;  %v2666_v12 = vrot.slane %v2665_v17, 1  ;;  %v4563_v11 = vpack.c.bf16 %v3194_v42, %v3193_v51 }
 0x35a   : > { %v4791_v56 = vpop.eup %4790  ;;  %v2673_v48 = vrot.slane %v2672_v5, 2  ;;  %4297 = vmatmul.mubr.msk.f32.gmra.mrb[44].mxu0 %vm2292_vm0, %v2702_v37  ;;  %v2713_v54 = vmul.f32 %v4789_v1, %v6453_v45  ;;  %v2714_v27 = vmul.f32 %v4789_v1, %v6459_v53  ;;  %v3195_v37 = vld [vmem:[#allocation10 + $0x20] sm:$0xff]  ;;  %v4583_v7 = vpack.c.bf16 %v3204_v50, %v3203_v59 }
 0x35b   : > { %4299 = vmatprep.mubr.msk.f32.mxu0 %vm2292_vm0, %v2703_v25  ;;  %v2715_v18 = vmul.f32 %v4791_v56, %v6467_v6  ;;  %v2716_v43 = vmul.f32 %v4791_v56, %v6469_v49  ;;  %v2667_v16 = vadd.f32 %v2666_v12, %v2665_v17  ;;  %v3198_v25 = vld [vmem:[#allocation10 + $0x38] sm:$0xff] }
 0x35c   : > { %v2674_v40 = vadd.f32 %v2673_v48, %v2672_v5  ;;  %v4571_v8 = vpack.c.bf16 %v3198_v25, %v3197_v52 }
 0x35d   : > { %v4793_v38 = vpop.eup %4792  ;;  %4796 = vrcp.f32 %v2667_v16 }
 0x35e   : > { %4300 = vmatmul.mubr.msk.f32.gmra.mrb[46].mxu0 %vm2292_vm0, %v2704_v34  ;;  %v2717_v23 = vmul.f32 %v4793_v38, %v6488_v35  ;;  %v2718_v63 = vmul.f32 %v4793_v38, %v6491_v0  ;;  %v2675_v19 = vrot.slane %v2674_v40, 1  ;;  %v3199_v34 = vld [vmem:[#allocation10 + $0x40] sm:$0xff] }
 0x35f   : > { %4302 = vmatprep.mubr.msk.f32.mxu0 %vm2292_vm0, %v2705_v14  ;;  %v3206_v14 = vld [vmem:[#allocation10 + $0x78] sm:$0xff] }
 0x360   : > { %v2676_v45 = vadd.f32 %v2675_v19, %v2674_v40  ;;  %v4587_v55 = vpack.c.bf16 %v3206_v14, %v3205_v9 }
 0x362   : > { %v4795_v53 = vpop.eup %4794  ;;  %4303 = vmatmul.mubr.msk.f32.gmra.mrb[48].mxu0 %vm2292_vm0, %v2706_v2  ;;  %4798 = vrcp.f32 %v2676_v45  ;;  %v3637_v2 = vld [vmem:[%s6886_s19] ss:$0 sm:$0xff] }
 0x363   : > { %4305 = vmatprep.mubr.msk.f32.mxu0 %vm2292_vm0, %v2707_v58  ;;  %v2719_v6 = vmul.f32 %v4795_v53, %v6505_v33  ;;  %v2720_v49 = vmul.f32 %v4795_v53, %v6510_v44  ;;  %v3191_v44 = vld [vmem:[#allocation10] sm:$0xff]  ;;  %v6604_v60 = vadd.f32 %v6887_v26, %v3637_v2  ;;  %v6607_v39 = vadd.f32 %v3637_v2, %v6888_v20 }
 0x366   : > { %4306 = vmatmul.mubr.msk.f32.gmra.mrb[50].mxu0 %vm2292_vm0, %v2708_v62 }
 0x367   : > { %v4797_v46 = vpop.eup %4796  ;;  %4308 = vmatprep.mubr.msk.f32.mxu0 %vm2292_vm0, %v2709_v22 }
 0x368   : > { %v2721_v35 = vmul.f32 %v4797_v46, %v6525_v41  ;;  %v2722_v0 = vmul.f32 %v4797_v46, %v6530_v4  ;;  %v3192_v41 = vld [vmem:[#allocation10 + $0x8] sm:$0xff] }
 0x369   : > { %v4559_v4 = vpack.c.bf16 %v3192_v41, %v3191_v44 }
 0x36a   : > { %4309 = vmatmul.mubr.msk.f32.gmra.mrb[52].mxu0 %vm2292_vm0, %v2710_v61 }
 0x36b   : > { %4311 = vmatprep.mubr.msk.f32.mxu0 %vm2292_vm0, %v2711_v57  ;;  %4560 = vmatprep.subr.bf16.mxu1 %v4559_v4 }
 0x36c   : > { %v4799_v21 = vpop.eup %4798  ;;  %4562 = vmatpush3.bf16.msra.mxu1 %v4559_v4 }
 0x36d   : > { %v2723_v15 = vmul.f32 %v4799_v21, %v6543_v47  ;;  %v2724_v33 = vmul.f32 %v4799_v21, %v6547_v24  ;;  %4564 = vmatprep.subr.bf16.mxu1 %v4563_v11  ;;  %v3196_v47 = vld [vmem:[#allocation10 + $0x28] sm:$0xff]  ;;  %v4575_v24 = vpack.c.bf16 %v3200_v32, %v3199_v34 }
 0x36e   : > { %4312 = vmatmul.mubr.msk.f32.gmra.mrb[54].mxu0 %vm2292_vm0, %v2712_v10  ;;  %v4567_v3 = vpack.c.bf16 %v3196_v47, %v3195_v37 }
 0x36f   : > { %4314 = vmatprep.mubr.msk.f32.mxu0 %vm2292_vm0, %v2713_v54 }
 0x370   : > { %4566 = vmatpush3.bf16.msra.mxu1 %v4563_v11 }
 0x371   : > { %4568 = vmatprep.subr.bf16.mxu1 %v4567_v3 }
 0x372   : > { %4315 = vmatmul.mubr.msk.f32.gmra.mrb[56].mxu0 %vm2292_vm0, %v2714_v27 }
 0x373   : > { %4317 = vmatprep.mubr.msk.f32.mxu0 %vm2292_vm0, %v2715_v18 }
 0x374   : > { %4570 = vmatpush3.bf16.msra.mxu1 %v4567_v3 }
 0x375   : > { %4572 = vmatprep.subr.bf16.mxu1 %v4571_v8 }
 0x376   : > { %4318 = vmatmul.mubr.msk.f32.gmra.mrb[58].mxu0 %vm2292_vm0, %v2716_v43 }
 0x377   : > { %4320 = vmatprep.mubr.msk.f32.mxu0 %vm2292_vm0, %v2717_v23 }
 0x378   : > { %4574 = vmatpush3.bf16.msra.mxu1 %v4571_v8 }
 0x379   : > { %4576 = vmatprep.subr.bf16.mxu1 %v4575_v24 }
 0x37a   : > { %4321 = vmatmul.mubr.msk.f32.gmra.mrb[60].mxu0 %vm2292_vm0, %v2718_v63 }
 0x37b   : > { %4323 = vmatprep.mubr.msk.f32.mxu0 %vm2292_vm0, %v2719_v6 }
 0x37c   : > { %4578 = vmatpush3.bf16.msra.mxu1 %v4575_v24 }
 0x37d   : > { %4580 = vmatprep.subr.bf16.mxu1 %v4579_v29 }
 0x37e   : > { %4324 = vmatmul.mubr.msk.f32.gmra.mrb[62].mxu0 %vm2292_vm0, %v2720_v49 }
 0x37f   : > { %4326 = vmatprep.mubr.msk.f32.mxu0 %vm2292_vm0, %v2721_v35 }
 0x380   : > { %4582 = vmatpush3.bf16.msra.mxu1 %v4579_v29 }
 0x381   : > { %4584 = vmatprep.subr.bf16.mxu1 %v4583_v7 }
 0x382   : > { %4327 = vmatmul.mubr.msk.f32.gmra.mrb[64].mxu0 %vm2292_vm0, %v2722_v0 }
 0x383   : > { %4329 = vmatprep.mubr.msk.f32.mxu0 %vm2292_vm0, %v2723_v15 }
 0x384   : > { %4586 = vmatpush3.bf16.msra.mxu1 %v4583_v7 }
 0x385   : > { %4588 = vmatprep.subr.bf16.mxu1 %v4587_v55 }
 0x386   : > { %4330 = vmatmul.mubr.msk.f32.gmra.mrb[66].mxu0 %vm2292_vm0, %v2724_v33 }
 0x388   : > { %4590 = vmatpush3.bf16.msra.mxu1 %v4587_v55 }
 0x41d   : > { %v4286_v58 = vpop.f32.mrb[36].mxu0 }
 0x41e   : > { %v3048_v62 = vmul.f32 %v4286_v58, %v6604_v60  ;;  %v2888_v31 = vpop.f32.mrb[37].mxu0 }
 0x41f   : > { %v3047_v36 = vmul.f32 %v2888_v31, %v6607_v39 }
 0x421   : > { %v3079_v17 = vadd.f32 %v3048_v62, %v3047_v36  ;;  %v4289_v30 = vpop.f32.mrb[38].mxu0 }
 0x422   : > { %v3050_v5 = vmul.f32 %v4289_v30, %v6604_v60  ;;  %v2898_v22 = vpop.f32.mrb[39].mxu0 }
 0x423   : > { %v3080_v61 = vrot.slane %v3079_v17, 4  ;;  %v3049_v1 = vmul.f32 %v2898_v22, %v6607_v39 }
 0x425   : > { %v3081_v57 = vadd.f32 %v3080_v61, %v3079_v17  ;;  %v3086_v10 = vadd.f32 %v3050_v5, %v3049_v1  ;;  %v4292_v12 = vpop.f32.mrb[40].mxu0 }
 0x426   : > { %v3052_v56 = vmul.f32 %v4292_v12, %v6604_v60  ;;  %v2908_v48 = vpop.f32.mrb[41].mxu0 }
 0x427   : > { %v3082_v54 = vrot.slane %v3081_v57, 2  ;;  %v3087_v27 = vrot.slane %v3086_v10, 4  ;;  %v3051_v18 = vmul.f32 %v2908_v48, %v6607_v39 }
 0x429   : > { %v3083_v43 = vadd.f32 %v3082_v54, %v3081_v57  ;;  %v3088_v16 = vadd.f32 %v3087_v27, %v3086_v10  ;;  %v3093_v40 = vadd.f32 %v3052_v56, %v3051_v18  ;;  %v4295_v38 = vpop.f32.mrb[42].mxu0 }
 0x42a   : > { %v3054_v23 = vmul.f32 %v4295_v38, %v6604_v60  ;;  %v2918_v63 = vpop.f32.mrb[43].mxu0 }
 0x42b   : > { %v3089_v19 = vrot.slane %v3088_v16, 2  ;;  %v3094_v45 = vrot.slane %v3093_v40, 4  ;;  %v3053_v53 = vmul.f32 %v2918_v63, %v6607_v39  ;;  %v3084_v6 = vrot.slane %v3083_v43, 1 }
 0x42d   : > { %v3090_v49 = vadd.f32 %v3089_v19, %v3088_v16  ;;  %v3095_v46 = vadd.f32 %v3094_v45, %v3093_v40  ;;  %v3100_v35 = vadd.f32 %v3054_v23, %v3053_v53  ;;  %v4298_v0 = vpop.f32.mrb[44].mxu0  ;;  %v3085_v51 = vadd.f32 %v3084_v6, %v3083_v43 }
 0x42e   : > { %v3056_v21 = vmul.f32 %v4298_v0, %v6604_v60  ;;  %v2928_v15 = vpop.f32.mrb[45].mxu0 }
 0x42f   : > { %v3091_v33 = vrot.slane %v3090_v49, 1  ;;  %v3096_v44 = vrot.slane %v3095_v46, 2  ;;  %v3101_v41 = vrot.slane %v3100_v35, 4  ;;  %v3055_v4 = vmul.f32 %v2928_v15, %v6607_v39 }
 0x431   : > { %v3092_v42 = vadd.f32 %v3091_v33, %v3090_v49  ;;  %v3097_v11 = vadd.f32 %v3096_v44, %v3095_v46  ;;  %v3102_v37 = vadd.f32 %v3101_v41, %v3100_v35  ;;  %v3107_v47 = vadd.f32 %v3056_v21, %v3055_v4  ;;  %v4301_v3 = vpop.f32.mrb[46].mxu0 }
 0x432   : > { %v3058_v52 = vmul.f32 %v4301_v3, %v6604_v60  ;;  %v2938_v25 = vpop.f32.mrb[47].mxu0 }
 0x433   : > { %v3231_v8 = vsel %vm3230_vm1, %v3092_v42, %v3085_v51  ;;  %v3098_v34 = vrot.slane %v3097_v11, 1  ;;  %v3103_v32 = vrot.slane %v3102_v37, 2  ;;  %v3108_v24 = vrot.slane %v3107_v47, 4 }
 0x434   : > { %v3057_v13 = vmul.f32 %v2938_v25, %v6607_v39 }
 0x435   : > { %v3099_v28 = vadd.f32 %v3098_v34, %v3097_v11  ;;  %v3104_v29 = vadd.f32 %v3103_v32, %v3102_v37  ;;  %v3109_v59 = vadd.f32 %v3108_v24, %v3107_v47  ;;  %v4304_v50 = vpop.f32.mrb[48].mxu0 }
 0x436   : > { %v3114_v7 = vadd.f32 %v3058_v52, %v3057_v13  ;;  %v3060_v9 = vmul.f32 %v4304_v50, %v6604_v60  ;;  %v2948_v14 = vpop.f32.mrb[49].mxu0 }
 0x437   : > { %v3105_v55 = vrot.slane %v3104_v29, 1  ;;  %v3110_v2 = vrot.slane %v3109_v59, 2  ;;  %v3059_v26 = vmul.f32 %v2948_v14, %v6607_v39  ;;  %v3233_v20 = vsel %vm3232_vm2, %v3099_v28, %v3231_v8 }
 0x438   : > { %v3115_v58 = vrot.slane %v3114_v7, 4 }
 0x439   : > { %v3106_v62 = vadd.f32 %v3105_v55, %v3104_v29  ;;  %v3111_v31 = vadd.f32 %v3110_v2, %v3109_v59  ;;  %v3121_v36 = vadd.f32 %v3060_v9, %v3059_v26  ;;  %v4307_v17 = vpop.f32.mrb[50].mxu0 }
 0x43a   : > { %v3116_v30 = vadd.f32 %v3115_v58, %v3114_v7  ;;  %v3062_v5 = vmul.f32 %v4307_v17, %v6604_v60  ;;  %v2958_v22 = vpop.f32.mrb[51].mxu0 }
 0x43b   : > { %v3112_v61 = vrot.slane %v3111_v31, 1  ;;  %v3122_v1 = vrot.slane %v3121_v36, 4  ;;  %v3061_v57 = vmul.f32 %v2958_v22, %v6607_v39  ;;  %v3235_v10 = vsel %vm3234_vm3, %v3106_v62, %v3233_v20 }
 0x43c   : > { %v3117_v12 = vrot.slane %v3116_v30, 2 }
 0x43d   : > { %v3113_v56 = vadd.f32 %v3112_v61, %v3111_v31  ;;  %v3123_v48 = vadd.f32 %v3122_v1, %v3121_v36  ;;  %v3128_v54 = vadd.f32 %v3062_v5, %v3061_v57  ;;  %v4310_v27 = vpop.f32.mrb[52].mxu0 }
 0x43e   : > { %v3118_v18 = vadd.f32 %v3117_v12, %v3116_v30  ;;  %v3064_v43 = vmul.f32 %v4310_v27, %v6604_v60  ;;  %v2968_v16 = vpop.f32.mrb[53].mxu0 }
 0x43f   : > { %v3124_v40 = vrot.slane %v3123_v48, 2  ;;  %v3129_v38 = vrot.slane %v3128_v54, 4  ;;  %v3063_v23 = vmul.f32 %v2968_v16, %v6607_v39  ;;  %v3237_v63 = vsel %vm3236_vm4, %v3113_v56, %v3235_v10 }
 0x440   : > { %v3119_v19 = vrot.slane %v3118_v18, 1 }
 0x441   : > { %v3125_v45 = vadd.f32 %v3124_v40, %v3123_v48  ;;  %v3130_v53 = vadd.f32 %v3129_v38, %v3128_v54  ;;  %v3135_v6 = vadd.f32 %v3064_v43, %v3063_v23  ;;  %v4313_v49 = vpop.f32.mrb[54].mxu0 }
 0x442   : > { %v3120_v46 = vadd.f32 %v3119_v19, %v3118_v18  ;;  %v3066_v35 = vmul.f32 %v4313_v49, %v6604_v60  ;;  %v2978_v0 = vpop.f32.mrb[55].mxu0 }
 0x443   : > { %v3126_v21 = vrot.slane %v3125_v45, 1  ;;  %v3131_v15 = vrot.slane %v3130_v53, 2  ;;  %v3136_v33 = vrot.slane %v3135_v6, 4  ;;  %v3065_v44 = vmul.f32 %v2978_v0, %v6607_v39 }
 0x444   : > { %v3239_v41 = vsel %vm3238_vm5, %v3120_v46, %v3237_v63 }
 0x445   : > { %v3132_v4 = vadd.f32 %v3131_v15, %v3130_v53  ;;  %v3137_v51 = vadd.f32 %v3136_v33, %v3135_v6  ;;  %v3142_v42 = vadd.f32 %v3066_v35, %v3065_v44  ;;  %v4316_v11 = vpop.f32.mrb[56].mxu0  ;;  %v3127_v37 = vadd.f32 %v3126_v21, %v3125_v45 }
 0x446   : > { %v3068_v47 = vmul.f32 %v4316_v11, %v6604_v60  ;;  %v2988_v3 = vpop.f32.mrb[57].mxu0 }
 0x447   : > { %v3138_v52 = vrot.slane %v3137_v51, 2  ;;  %v3143_v25 = vrot.slane %v3142_v42, 4  ;;  %v3067_v8 = vmul.f32 %v2988_v3, %v6607_v39  ;;  %v3133_v34 = vrot.slane %v3132_v4, 1 }
 0x448   : > { %v3241_v32 = vsel %vm3240_vm6, %v3127_v37, %v3239_v41 }
 0x449   : > { %v3139_v24 = vadd.f32 %v3138_v52, %v3137_v51  ;;  %v3144_v13 = vadd.f32 %v3143_v25, %v3142_v42  ;;  %v3149_v28 = vadd.f32 %v3068_v47, %v3067_v8  ;;  %v4319_v29 = vpop.f32.mrb[58].mxu0  ;;  %v3134_v59 = vadd.f32 %v3133_v34, %v3132_v4 }
 0x44a   : > { %v3070_v50 = vmul.f32 %v4319_v29, %v6604_v60  ;;  %v2998_v7 = vpop.f32.mrb[59].mxu0 }
 0x44b   : > { %v3145_v9 = vrot.slane %v3144_v13, 2  ;;  %v3150_v14 = vrot.slane %v3149_v28, 4  ;;  %v3069_v55 = vmul.f32 %v2998_v7, %v6607_v39  ;;  %v3140_v2 = vrot.slane %v3139_v24, 1 }
 0x44c   : > { %v3243_v26 = vsel %vm3242_vm7, %v3134_v59, %v3241_v32 }
 0x44d   : > { %v3146_v20 = vadd.f32 %v3145_v9, %v3144_v13  ;;  %v3151_v58 = vadd.f32 %v3150_v14, %v3149_v28  ;;  %v3156_v62 = vadd.f32 %v3070_v50, %v3069_v55  ;;  %4364 = vmatprep.mubr.f32.mxu1 %v3243_v26  ;;  %v4322_v31 = vpop.f32.mrb[60].mxu0  ;;  %v3141_v1 = vadd.f32 %v3140_v2, %v3139_v24 }
 0x44e   : > { %v3072_v36 = vmul.f32 %v4322_v31, %v6604_v60  ;;  %v3008_v17 = vpop.f32.mrb[61].mxu0 }
 0x44f   : > { %v3147_v30 = vrot.slane %v3146_v20, 1  ;;  %v3152_v5 = vrot.slane %v3151_v58, 2  ;;  %v3157_v22 = vrot.slane %v3156_v62, 4  ;;  %v3071_v61 = vmul.f32 %v3008_v17, %v6607_v39 }
 0x451   : > { %v3148_v57 = vadd.f32 %v3147_v30, %v3146_v20  ;;  %v3153_v10 = vadd.f32 %v3152_v5, %v3151_v58  ;;  %v3158_v12 = vadd.f32 %v3157_v22, %v3156_v62  ;;  %v3163_v56 = vadd.f32 %v3072_v36, %v3071_v61  ;;  %v4325_v48 = vpop.f32.mrb[62].mxu0 }
 0x452   : > { %v3074_v54 = vmul.f32 %v4325_v48, %v6604_v60  ;;  %v3018_v27 = vpop.f32.mrb[63].mxu0 }
 0x453   : > { %v3244_v18 = vsel %vm3230_vm1, %v3148_v57, %v3141_v1  ;;  %v3154_v43 = vrot.slane %v3153_v10, 1  ;;  %v3159_v16 = vrot.slane %v3158_v12, 2  ;;  %v3164_v40 = vrot.slane %v3163_v56, 4 }
 0x454   : > { %v3073_v38 = vmul.f32 %v3018_v27, %v6607_v39 }
 0x455   : > { %v3155_v23 = vadd.f32 %v3154_v43, %v3153_v10  ;;  %v3160_v63 = vadd.f32 %v3159_v16, %v3158_v12  ;;  %v3165_v19 = vadd.f32 %v3164_v40, %v3163_v56  ;;  %v4328_v45 = vpop.f32.mrb[64].mxu0 }
 0x456   : > { %v3170_v53 = vadd.f32 %v3074_v54, %v3073_v38  ;;  %v3076_v6 = vmul.f32 %v4328_v45, %v6604_v60  ;;  %v3028_v49 = vpop.f32.mrb[65].mxu0 }
 0x457   : > { %v3245_v46 = vsel %vm3232_vm2, %v3155_v23, %v3244_v18  ;;  %v3161_v35 = vrot.slane %v3160_v63, 1  ;;  %v3166_v0 = vrot.slane %v3165_v19, 2  ;;  %v3075_v21 = vmul.f32 %v3028_v49, %v6607_v39 }
 0x458   : > { %v3171_v15 = vrot.slane %v3170_v53, 4 }
 0x459   : > { %v3162_v33 = vadd.f32 %v3161_v35, %v3160_v63  ;;  %v3167_v44 = vadd.f32 %v3166_v0, %v3165_v19  ;;  %v3177_v41 = vadd.f32 %v3076_v6, %v3075_v21  ;;  %v4331_v4 = vpop.f32.mrb[66].mxu0 }
 0x45a   : > { %v3172_v51 = vadd.f32 %v3171_v15, %v3170_v53  ;;  %v3078_v42 = vmul.f32 %v4331_v4, %v6604_v60  ;;  %v3038_v11 = vpop.f32.mrb[67].mxu0 }
 0x45b   : > { %v3246_v37 = vsel %vm3234_vm3, %v3162_v33, %v3245_v46  ;;  %v3168_v47 = vrot.slane %v3167_v44, 1  ;;  %v3178_v3 = vrot.slane %v3177_v41, 4  ;;  %v3077_v52 = vmul.f32 %v3038_v11, %v6607_v39 }
 0x45c   : > { %v3173_v25 = vrot.slane %v3172_v51, 2 }
 0x45d   : > { %v3169_v8 = vadd.f32 %v3168_v47, %v3167_v44  ;;  %v3179_v34 = vadd.f32 %v3178_v3, %v3177_v41  ;;  %v3184_v32 = vadd.f32 %v3078_v42, %v3077_v52 }
 0x45e   : > { %v3174_v24 = vadd.f32 %v3173_v25, %v3172_v51 }
 0x45f   : > { %v3180_v13 = vrot.slane %v3179_v34, 2  ;;  %v3185_v28 = vrot.slane %v3184_v32, 4  ;;  %v3247_v29 = vsel %vm3236_vm4, %v3169_v8, %v3246_v37 }
 0x460   : > { %v3175_v59 = vrot.slane %v3174_v24, 1 }
 0x461   : > { %v3181_v60 = vadd.f32 %v3180_v13, %v3179_v34  ;;  %v3186_v50 = vadd.f32 %v3185_v28, %v3184_v32 }
 0x462   : > { %v3176_v7 = vadd.f32 %v3175_v59, %v3174_v24 }
 0x463   : > { %v3182_v9 = vrot.slane %v3181_v60, 1  ;;  %v3187_v14 = vrot.slane %v3186_v50, 2 }
 0x464   : > { %v3248_v39 = vsel %vm3238_vm5, %v3176_v7, %v3247_v29 }
 0x465   : > { %v3183_v55 = vadd.f32 %v3182_v9, %v3181_v60  ;;  %v3188_v2 = vadd.f32 %v3187_v14, %v3186_v50 }
 0x467   : > { %v3189_v26 = vrot.slane %v3188_v2, 1  ;;  %v3249_v20 = vsel %vm3240_vm6, %v3183_v55, %v3248_v39 }
 0x469   : > { %v3190_v58 = vadd.f32 %v3189_v26, %v3188_v2 }
 0x46b   : > { %v3250_v62 = vsel %vm3242_vm7, %v3190_v58, %v3249_v20 }
 0x46c   : > { %4365 = vmatmul.mubr.f32.vlgmr.msra.gmra.mrb[66].mxu1 %v3250_v62 }
 0x46d   : > { %4987 = shalt.err (!%p4984_p7)
}
 0x46e   : > { %s4988_s10 = scalar_lea.hbm %s6659_s16, 4096  ;;  %s4992_s6 = scalar_lea.hbm %s6890_s20, 8192 }
 0x46f   : > { %p4989_p9 = scmp.ne.s32.totalorder %s6659_s16, %s4988_s10  ;;  %p4993_p12 = scmp.lt.u32.totalorder %s6659_s16, %s6890_s20 }
 0x470   : > { %p4994_p2 = scmp.lt.u32.totalorder %s4992_s6, %s4988_s10  ;;  %p4996_p10 = scmp.lt.u32.totalorder %s4988_s10, %s6659_s16 }
 0x471   : > { %p4990_p8 = pnand %p4989_p9, %p6891_p1 }
 0x472   : > { %p4995_p11 = por %p4994_p2, %p4993_p12 }
 0x473   : > { %p4991_p4 = pneg %p4990_p8 }
 0x474   : > { %p4997_p0 = por %p4996_p10, %p4995_p11 }
 0x476   : > { %p4998_p13 = pnand %p4997_p0, %p4991_p4 }
 0x478   : > { %5001 = shalt.err (!%p4998_p13)
}
 0x479   : > { %s5112_s2 = smov 128   ;;  %s5113_s30 = smov 8  }
 0x47a   : > { %4610 = dma.vmem_to_hbm [thread:$0]  (%p6891_p1), %s6662_s12, 4096, %s6659_s16, %s3336_s26, %s5112_s2, %s5112_s2, %s5113_s30  }
 0x47b   : > { %s6892_s27 = sld [smem:[#allocation47_spill]]  ;;  %s848_s8 = scalar_lea.vmem [#allocation13], %s5526_s25 }
 0x47c   : > { %s3351_s3 = sshll.u32 %s848_s8, 4  ;;  %s3686_s10 = sshll.u32 %s5092_s24, 8  ;;  %s6696_s3 = int_to_ptr.vmem [resolvable:$true] %s3351_s3 }
 0x47d   : > { %s6893_s16 = sld [smem:[#allocation51_spill]]  ;;  %s3331_s26 = scalar_lea.sflag [#allocation4], %s5523_s14 }
 0x47e   : > { %s5002_s25 = scalar_lea.vmem %s6696_s3, 256  ;;  %s5114_s24 = smov [#allocation13]  }
 0x47f   : > { %p5003_p5 = scmp.ne.s32.totalorder %s6696_s3, %s5002_s25  ;;  %s5006_s6 = sshll.u32 %s5114_s24, 4  ;;  %s5007_s6 = int_to_ptr.vmem [resolvable:$false] %s5006_s6 }
 0x480   : > { %s5008_s1 = scalar_lea.vmem %s5007_s6, 512  ;;  %p5009_p7 = scmp.lt.s32.totalorder %s6696_s3, %s5007_s6 }
 0x481   : > { %v3672_v31 = vld [vmem:[%s6892_s27] ss:$0 sm:$0xff]  ;;  %p5004_p3 = pnand %p5003_p5, %p6891_p1  ;;  %p5010_p9 = scmp.lt.s32.totalorder %s5008_s1, %s5002_s25 }
 0x483   : > { %s6701_s12 = scalar_lea.hbm %s6893_s16, %s3686_s10  ;;  %p5005_p6 = pneg %p5004_p3 }
 0x484   : > { %p5011_p8 = por %p5010_p9, %p5009_p7 }
 0x486   : > { %p5012_p4 = pnand %p5011_p8, %p5005_p6 }
 0x53f   : > { %v4366_v36 = vpop.f32.mrb[66].mxu1 }
 0x540   : > { %v3325_v17 = vadd.f32 %v4366_v36, %v3672_v31  ;;  %v3319_v30 = vpop.f32.mrb[67].mxu1 }
 0x541   : > { %v3320_v5 = vadd.f32 %v3672_v31, %v3319_v30 }
 0x542   : > { %3329 = vst [vmem:[%s848_s8 + $0x8] sm:$0xff] %v3325_v17 }
 0x543   : > { %3328 = vst [vmem:[%s848_s8] sm:$0xff] %v3320_v5 }
 0x544   : > { %5015 = shalt.err (!%p5012_p4)
}
 0x545   : > { %s5016_s19 = scalar_lea.hbm %s6701_s12, 256  ;;  %s5020_s27 = scalar_lea.hbm %s6893_s16, 512 }
 0x546   : > { %p5017_p12 = scmp.ne.s32.totalorder %s6701_s12, %s5016_s19  ;;  %p5021_p10 = scmp.lt.u32.totalorder %s6701_s12, %s6893_s16 }
 0x547   : > { %p5022_p0 = scmp.lt.u32.totalorder %s5020_s27, %s5016_s19  ;;  %p5024_p5 = scmp.lt.u32.totalorder %s5016_s19, %s6701_s12 }
 0x548   : > { %p5018_p2 = pnand %p5017_p12, %p6891_p1 }
 0x549   : > { %p5023_p13 = por %p5022_p0, %p5021_p10 }
 0x54a   : > { %p5019_p11 = pneg %p5018_p2 }
 0x54b   : > { %p5025_p3 = por %p5024_p5, %p5023_p13 }
 0x54d   : > { %p5026_p6 = pnand %p5025_p3, %p5019_p11 }
 0x54f   : > { %5029 = shalt.err (!%p5026_p6)
}
 0x550   : > { %4609 = dma.vmem_to_hbm [thread:$0]  (%p6891_p1), %s6696_s3, 256, %s6701_s12, %s3331_s26, %s5112_s2, %s5112_s2, %s5113_s30  }
 0x551 PF: > { %s6894_s17 = sld [smem:[#allocation22_spill]]  ;;  %s6895_s0 = sld [smem:[#allocation26_spill]] }
 0x552   : > { %s6896_s25 = sld [smem:[#allocation24_spill]] }
 0x557   : > { %s3385_s24 = sand.u32 1, %s6894_s17   ;;  %p6897_p7 = scmp.ne.s32.totalorder %s6895_s0, 0 }
 0x558   : > { %p6898_p9 = scmp.ge.s32.totalorder %s6896_s25, 2  ;;  %s3386_s6 = scalar_lea.sflag [#allocation4], %s3385_s24 }
 0x55a   : > { %p4634_p8 = pnand %p6898_p9, %p6897_p7 }
 0x55c   : > { %5071 = dma.done.wait (!%p4634_p8), %s3386_s6, 256  }
 0x55d   : > { %5073 = vsyncadd (!%p4634_p8), %s3386_s6, 4294967040  ;;  %s3395_s21 = scalar_lea.sflag [#allocation15], %s3385_s24 }
 0x55e   : > { %5075 = dma.done.wait (!%p4634_p8), %s3395_s21, 4096  }
 0x55f   : > { %5077 = vsyncadd (!%p4634_p8), %s3395_s21, 4294963200  ;;  %s45_s25 = sadd.s32 1, %s6896_s25   ;;  %s6899_s14 = sld [smem:[#allocation28_spill]] }
 0x560   : > { %p42_p4 = scmp.ge.s32.totalorder %s45_s25, 4   ;;  %s6900_s24 = sld [smem:[#allocation23_spill]] }
 0x561   : > { %s6901_s2 = sld [smem:[#allocation27_spill]]  ;;  %s6902_s1 = smov %s5084_s22 }
 0x562   : > { %s6903_s22 = smov %s5088_s23  ;;  %44 = sbr.rel (!%p42_p4) target bundleno = 30 (0x1e), region = 200 }
 0x565   : > { %s6904_s23 = smov %s6899_s14 }
 0x569   :  { %3400 = vsyncpa [#allocation3], 1 }
 0x56a   :  { %3402 = vsyncpa [#allocation3 + $0x1], 1 }
 0x56b   :  { %3403 = vsyncpa [#allocation6], 1 }
 0x56c   :  { %3405 = vsyncpa [#allocation6 + $0x1], 1 }
 0x56d   :  { %3406 = vsyncpa [#allocation9], 1 }
 0x56e   :  { %3407 = vsyncpa [#allocation12], 1 }
 0x56f   :  { %3408 = vsyncpa [#allocation4], 1 }
 0x570   :  { %3410 = vsyncpa [#allocation4 + $0x1], 1 }
 0x571   :  { %3411 = vsyncpa [#allocation15], 1 }
 0x572   :  { %3413 = vsyncpa [#allocation15 + $0x1], 1 }

</bundles_post_ra>
